<compile_context>
chip_gen: v5e
topology: v5e:2x2
jax: 0.10.0
libtpu: 0.0.40
codegen_flags: <defaults>
</compile_context>

<pallas_src>
import functools

import jax
import jax.numpy as jnp
from jax.experimental import pallas as pl
from jax.experimental.pallas import tpu as pltpu


# ---------------------------------------------------------------------------
# Helpers
# ---------------------------------------------------------------------------
def _round_up(x, mult):
    return (x + mult - 1) // mult * mult


def _pad_gate_cols(w, H, Hp):
    """(..., 4H) with [z|i|f|o] blocks of width H -> (..., 4Hp), each gate block
    zero-padded to width Hp so gate slices are 128-lane aligned."""
    if Hp == H:
        return w
    parts = []
    for g in range(4):
        blk = w[..., g * H:(g + 1) * H]
        pad_width = [(0, 0)] * (w.ndim - 1) + [(0, Hp - H)]
        parts.append(jnp.pad(blk, pad_width))
    return jnp.concatenate(parts, axis=-1)


# ---------------------------------------------------------------------------
# Kernel: one grid step == `block_t` recurrent timesteps
# ---------------------------------------------------------------------------
def _slstm_seq_kernel(preact_ref, h0_ref, c0_ref, n0_ref, m0_ref, wh_ref,
                      hseq_ref, h_out, c_out, n_out, m_out,
                      *, seq_len, block_t, needs_mask):
    """
    preact_ref : (block_t, Bp, 4*Hp)  precomputed x@Wx + b  (streamed, double-buffered)
    h0..m0     : (Bp, Hp)             initial state          (resident)
    wh_ref     : (Hp, 4*Hp)           recurrent weights      (resident)
    hseq_ref   : (block_t, Bp, Hp)    per-step hidden output (streamed)
    h/c/n/m_out: (Bp, Hp)             state carriers (resident, constant block index)
    """
    tb = pl.program_id(0)
    Hp = h_out.shape[1]

    # First grid step: load initial state into the resident state carriers.
    @pl.when(tb == 0)
    def _():
        h_out[...] = h0_ref[...]
        c_out[...] = c0_ref[...]
        n_out[...] = n0_ref[...]
        m_out[...] = m0_ref[...]

    def step(i, carry):
        h, c, n, m = carry
        # Only the recurrent matmul runs inside the loop; x@Wx+b was hoisted.
        gates = preact_ref[i] + jnp.dot(h, wh_ref[...],
                                        preferred_element_type=jnp.float32)

        # Hp is a multiple of 128 -> lane-aligned zero-cost views.
        z_tilda = gates[:, 0 * Hp:1 * Hp]
        i_tilda = gates[:, 1 * Hp:2 * Hp]
        f_tilda = gates[:, 2 * Hp:3 * Hp]
        o_tilda = gates[:, 3 * Hp:4 * Hp]

        z_t = jnp.tanh(z_tilda)
        o_t = jax.nn.sigmoid(o_tilda)
        # Single-path stable log-sigmoid: log sigmoid(f) = min(f,0) - log1p(exp(-|f|)).
        log_f = jnp.minimum(f_tilda, 0.0) - jnp.log1p(jnp.exp(-jnp.abs(f_tilda)))
        f_t = jnp.exp(log_f)                      # == sigmoid(f_tilda)
        # log(i_t) = log(exp(i_tilda)) == i_tilda  (avoids exp overflow).
        m_t = jnp.maximum(log_f + m, i_tilda)
        i_prime = jnp.exp(i_tilda - m_t)

        c_t = f_t * c + i_prime * z_t
        n_t = f_t * n + i_prime
        h_t = o_t * (c_t / n_t)                   # exact division (recurrent feedback)

        hseq_ref[i] = h_t

        if needs_mask:  # static flag: only when T % block_t != 0
            valid = (tb * block_t + i) < seq_len
            h_t = jnp.where(valid, h_t, h)
            c_t = jnp.where(valid, c_t, c)
            n_t = jnp.where(valid, n_t, n)
            m_t = jnp.where(valid, m_t, m)
        return h_t, c_t, n_t, m_t

    carry = (h_out[...], c_out[...], n_out[...], m_out[...])
    h, c, n, m = jax.lax.fori_loop(0, block_t, step, carry, unroll=True)
    h_out[...] = h
    c_out[...] = c
    n_out[...] = n
    m_out[...] = m


# ---------------------------------------------------------------------------
# Wrappers
# ---------------------------------------------------------------------------
def slstm_sequence(x_seq, state, wx, wh, b, *, block_t=8):
    """Run the sLSTM cell over a whole sequence with one Pallas call.

    Args:
      x_seq: (T, B, input_size) float32
      state: (h, c, n, m), each (B, hidden_size) float32
      wx: (input_size, 4*hidden_size), wh: (hidden_size, 4*hidden_size)
      b:  (4*hidden_size,) or (1, 4*hidden_size)
    Returns:
      h_seq: (T, B, hidden_size) float32
      final_state: (h_T, c_T, n_T, m_T), each (B, hidden_size) float32
    """
    h, c, n, m = state
    T, B, I = x_seq.shape
    H = h.shape[1]

    Bp = _round_up(B, 8)
    Hp = _round_up(H, 128)
    TT = max(1, min(block_t, T))
    Tpad = _round_up(T, TT)
    n_blocks = Tpad // TT
    needs_mask = (Tpad != T)

    # ---- hoisted input projection: one big GEMM at full MXU efficiency ----
    wx_p = _pad_gate_cols(wx.astype(jnp.float32), H, Hp)                   # (I, 4Hp)
    b_p = _pad_gate_cols(jnp.reshape(b, (1, -1)).astype(jnp.float32), H, Hp)
    preact = (jnp.dot(x_seq.reshape(T * B, I).astype(jnp.float32), wx_p,
                      precision=jax.lax.Precision.HIGHEST)
              + b_p).reshape(T, B, 4 * Hp)
    preact = jnp.pad(preact, ((0, Tpad - T), (0, Bp - B), (0, 0)))

    pad_state = lambda s: jnp.pad(s.astype(jnp.float32),
                                  ((0, Bp - B), (0, Hp - H)))
    h_p, c_p, n_p, m_p = map(pad_state, (h, c, n, m))
    wh_p = jnp.pad(_pad_gate_cols(wh.astype(jnp.float32), H, Hp),
                   ((0, Hp - H), (0, 0)))                                  # (Hp, 4Hp)

    kernel = functools.partial(_slstm_seq_kernel, seq_len=T, block_t=TT,
                               needs_mask=needs_mask)

    out_state_sds = jax.ShapeDtypeStruct((Bp, Hp), jnp.float32)
    out_shape = (jax.ShapeDtypeStruct((Tpad, Bp, Hp), jnp.float32),
                 out_state_sds, out_state_sds, out_state_sds, out_state_sds)

    cost = pl.CostEstimate(
        flops=2 * Tpad * Bp * Hp * (4 * Hp) + 12 * Tpad * Bp * Hp,
        transcendentals=6 * Tpad * Bp * Hp,
        bytes_accessed=(preact.size * 4 + wh_p.size * 4
                        + (Tpad + 8) * Bp * Hp * 4),
    )

    def run(single_buffer_resident):
        def resident(shape):
            nd = len(shape)
            kwargs = {}
            if single_buffer_resident:
                kwargs["pipeline_mode"] = pl.Buffered(1)   # no double buffer
            return pl.BlockSpec(shape, lambda tb: (0,) * nd, **kwargs)

        in_specs = [
            pl.BlockSpec((TT, Bp, 4 * Hp), lambda tb: (tb, 0, 0)),  # pre-activations
            resident((Bp, Hp)),                                     # h0
            resident((Bp, Hp)),                                     # c0
            resident((Bp, Hp)),                                     # n0
            resident((Bp, Hp)),                                     # m0
            resident((Hp, 4 * Hp)),                                 # Wh (resident)
        ]
        out_specs = (
            pl.BlockSpec((TT, Bp, Hp), lambda tb: (tb, 0, 0)),      # per-step h
            resident((Bp, Hp)), resident((Bp, Hp)),                 # final h, c
            resident((Bp, Hp)), resident((Bp, Hp)),                 # final n, m
        )

        mult = 1 if single_buffer_resident else 2
        need = (wh_p.size * 4 * mult                  # resident weights
                + 2 * TT * Bp * 4 * Hp * 4            # streamed pre-activations
                + 2 * TT * Bp * Hp * 4                # streamed h_seq
                + 8 * Bp * Hp * 4 * mult              # 4 state in + 4 state out
                + 4 * Bp * 4 * Hp * 4)                # gate temporaries
        vmem_limit = int(min(64 << 20, max(2 * need + (2 << 20), 16 << 20)))

        return pl.pallas_call(
            kernel,
            grid=(n_blocks,),
            in_specs=in_specs,
            out_specs=out_specs,
            out_shape=out_shape,
            compiler_params=pltpu.CompilerParams(
                dimension_semantics=("arbitrary",),   # time axis is sequential
                vmem_limit_bytes=vmem_limit),
            cost_estimate=cost,
        )(preact, h_p, c_p, n_p, m_p, wh_p)

    try:
        h_seq, h_T, c_T, n_T, m_T = run(single_buffer_resident=True)
    except Exception:
        # Fallback if this jax version rejects Buffered(1) single-buffering:
        # identical kernel with default double-buffered resident blocks.
        h_seq, h_T, c_T, n_T, m_T = run(single_buffer_resident=False)

    # strip padding
    h_seq = h_seq[:T, :B, :H]
    final_state = tuple(s[:B, :H] for s in (h_T, c_T, n_T, m_T))
    return h_seq, final_state


def slstm_cell_forward(x, state, wx, wh, b):
    """Single cell step — matches the PyTorch module's forward semantics."""
    _, (h_t, c_t, n_t, m_t) = slstm_sequence(x[None], state, wx, wh, b)
    return h_t, c_t, n_t, m_t


# ---------------------------------------------------------------------------
# Pure-JAX reference (mirrors the PyTorch module, step by step)
# ---------------------------------------------------------------------------
def _reference_step(x, state, wx, wh, b):
    h, c, n, m = state
    gates = (jnp.dot(x, wx, precision=jax.lax.Precision.HIGHEST)
             + jnp.dot(h, wh, precision=jax.lax.Precision.HIGHEST)
             + jnp.reshape(b, (1, -1)))
    z_tilda, i_tilda, f_tilda, o_tilda = jnp.split(gates, 4, axis=1)
    z_t = jnp.tanh(z_tilda)
    i_t = jnp.exp(i_tilda)
    f_t = jax.nn.sigmoid(f_tilda)
    o_t = jax.nn.sigmoid(o_tilda)
    m_t = jnp.maximum(jnp.log(f_t) + m, jnp.log(i_t))
    i_prime = jnp.exp(i_tilda - m_t)
    c_t = f_t * c + i_prime * z_t
    n_t = f_t * n + i_prime
    h_t = o_t * (c_t / n_t)
    return h_t, c_t, n_t, m_t


if __name__ == "__main__":
    batch, input_size, hidden_size, seq_len = 2, 16, 32, 8

    key = jax.random.PRNGKey(0)
    kx, kh, kw, kb, kc, kn, km = jax.random.split(key, 7)

    # PyTorch nn.Linear-style init: weight (4H, I+H), bias (4H,).
    fan_in = input_size + hidden_size
    bound = 1.0 / (fan_in ** 0.5)
    w_full = jax.random.uniform(kw, (4 * hidden_size, fan_in),
                                jnp.float32, -bound, bound)
    b_full = jax.random.uniform(kb, (4 * hidden_size,),
                                jnp.float32, -bound, bound)

    # cat(x, h) @ W^T == x @ Wx + h @ Wh
    wt = w_full.T                       # (I+H, 4H)
    wx = wt[:input_size, :]             # (I, 4H)
    wh = wt[input_size:, :]             # (H, 4H)
    b = b_full                          # (4H,)

    x_seq = jax.random.normal(kx, (seq_len, batch, input_size), jnp.float32)
    h0 = jax.random.normal(kh, (batch, hidden_size), jnp.float32) * 0.1
    c0 = jax.random.normal(kc, (batch, hidden_size), jnp.float32) * 0.1
    n0 = jnp.abs(jax.random.normal(kn, (batch, hidden_size), jnp.float32)) + 1.0
    m0 = jax.random.normal(km, (batch, hidden_size), jnp.float32) * 0.1
    state = (h0, c0, n0, m0)

    # --- Pallas kernel over the whole sequence -------------------------------
    h_seq, final_state = slstm_sequence(x_seq, state, wx, wh, b)
    h_seq, final_state = jax.block_until_ready((h_seq, final_state))

    # --- pure-JAX reference ---------------------------------------------------
    def run_reference(xs, s0):
        s = s0
        hs = []
        for t in range(xs.shape[0]):
            s = _reference_step(xs[t], s, wx, wh, b)
            hs.append(s[0])
        return jnp.stack(hs), s

    h_ref, state_ref = run_reference(x_seq, state)

    assert h_seq.shape == (seq_len, batch, hidden_size)
    assert bool(jnp.all(jnp.isfinite(h_seq)))
    assert jnp.allclose(h_seq, h_ref, atol=2e-2, rtol=2e-2), "h_seq mismatch"
    for o, r in zip(final_state, state_ref):
        assert o.shape == (batch, hidden_size)
        assert jnp.allclose(o, r, atol=2e-2, rtol=2e-2), "final state mismatch"

    # --- ragged T (exercises the T % block_t != 0 masking path) --------------
    t_ragged = 11
    x_rag = jax.random.normal(jax.random.PRNGKey(1),
                              (t_ragged, batch, input_size), jnp.float32)
    h_rag, state_rag = slstm_sequence(x_rag, state, wx, wh, b, block_t=8)
    h_rag = jax.block_until_ready(h_rag)
    h_rag_ref, state_rag_ref = run_reference(x_rag, state)
    assert h_rag.shape == (t_ragged, batch, hidden_size)
    assert jnp.allclose(h_rag, h_rag_ref, atol=2e-2, rtol=2e-2), "ragged h_seq mismatch"
    for o, r in zip(state_rag, state_rag_ref):
        assert jnp.allclose(o, r, atol=2e-2, rtol=2e-2), "ragged final state mismatch"

    # --- single-step wrapper: exact PyTorch-forward semantics ----------------
    step_out = slstm_cell_forward(x_seq[0], state, wx, wh, b)
    step_out = jax.block_until_ready(step_out)
    step_ref = _reference_step(x_seq[0], state, wx, wh, b)
    for o, r in zip(step_out, step_ref):
        assert o.shape == (batch, hidden_size)
        assert jnp.allclose(o, r, atol=2e-2, rtol=2e-2), "single-step mismatch"

    print("KERNEL_OK")
</pallas_src>

<mosaic_0001>
module attributes {stable_mosaic.version = 11 : i64} {
  func.func @_slstm_seq_kernel(%arg0: i32, %arg1: memref<8x8x512xf32, #tpu.memory_space<vmem>>, %arg2: memref<8x128xf32, #tpu.memory_space<vmem>>, %arg3: memref<8x128xf32, #tpu.memory_space<vmem>>, %arg4: memref<8x128xf32, #tpu.memory_space<vmem>>, %arg5: memref<8x128xf32, #tpu.memory_space<vmem>>, %arg6: memref<128x512xf32, #tpu.memory_space<vmem>>, %arg7: memref<8x8x128xf32, #tpu.memory_space<vmem>>, %arg8: memref<8x128xf32, #tpu.memory_space<vmem>>, %arg9: memref<8x128xf32, #tpu.memory_space<vmem>>, %arg10: memref<8x128xf32, #tpu.memory_space<vmem>>, %arg11: memref<8x128xf32, #tpu.memory_space<vmem>>) attributes {dimension_semantics = [#tpu.dimension_semantics<arbitrary>], iteration_bounds = array<i64: 1>, scalar_prefetch = 0 : i64, scratch_operands = 0 : i64, tpu.core_type = #tpu.core_type<tc>, window_params = [{transform_indices = @transform_0, window_bounds = array<i64: 8, 8, 512>}, {pipeline_mode = #tpu.pipeline_mode<synchronous>, transform_indices = @transform_1, window_bounds = array<i64: 8, 128>}, {pipeline_mode = #tpu.pipeline_mode<synchronous>, transform_indices = @transform_2, window_bounds = array<i64: 8, 128>}, {pipeline_mode = #tpu.pipeline_mode<synchronous>, transform_indices = @transform_3, window_bounds = array<i64: 8, 128>}, {pipeline_mode = #tpu.pipeline_mode<synchronous>, transform_indices = @transform_4, window_bounds = array<i64: 8, 128>}, {pipeline_mode = #tpu.pipeline_mode<synchronous>, transform_indices = @transform_5, window_bounds = array<i64: 128, 512>}, {transform_indices = @transform_6, window_bounds = array<i64: 8, 8, 128>}, {pipeline_mode = #tpu.pipeline_mode<synchronous>, transform_indices = @transform_7, window_bounds = array<i64: 8, 128>}, {pipeline_mode = #tpu.pipeline_mode<synchronous>, transform_indices = @transform_8, window_bounds = array<i64: 8, 128>}, {pipeline_mode = #tpu.pipeline_mode<synchronous>, transform_indices = @transform_9, window_bounds = array<i64: 8, 128>}, {pipeline_mode = #tpu.pipeline_mode<synchronous>, transform_indices = @transform_10, window_bounds = array<i64: 8, 128>}]} {
    %c0_i32 = arith.constant 0 : i32
    %0 = arith.cmpi eq, %arg0, %c0_i32 : i32
    %1 = arith.extui %0 : i1 to i32
    %c0_i32_0 = arith.constant 0 : i32
    %2 = arith.cmpi ne, %1, %c0_i32_0 : i32
    scf.if %2 {
      %c0_96 = arith.constant 0 : index
      %c0_97 = arith.constant 0 : index
      %331 = vector.load %arg2[%c0_96, %c0_97] : memref<8x128xf32, #tpu.memory_space<vmem>>, vector<8x128xf32>
      %c0_98 = arith.constant 0 : index
      %c0_99 = arith.constant 0 : index
      %332 = vector.load %arg8[%c0_98, %c0_99] : memref<8x128xf32, #tpu.memory_space<vmem>>, vector<8x128xf32>
      tpu.vector_store %arg8[%c0_98, %c0_99], %331 {strides = array<i32>} : memref<8x128xf32, #tpu.memory_space<vmem>>, vector<8x128xf32>,
      %c0_100 = arith.constant 0 : index
      %c0_101 = arith.constant 0 : index
      %333 = vector.load %arg3[%c0_100, %c0_101] : memref<8x128xf32, #tpu.memory_space<vmem>>, vector<8x128xf32>
      %c0_102 = arith.constant 0 : index
      %c0_103 = arith.constant 0 : index
      %334 = vector.load %arg9[%c0_102, %c0_103] : memref<8x128xf32, #tpu.memory_space<vmem>>, vector<8x128xf32>
      tpu.vector_store %arg9[%c0_102, %c0_103], %333 {strides = array<i32>} : memref<8x128xf32, #tpu.memory_space<vmem>>, vector<8x128xf32>,
      %c0_104 = arith.constant 0 : index
      %c0_105 = arith.constant 0 : index
      %335 = vector.load %arg4[%c0_104, %c0_105] : memref<8x128xf32, #tpu.memory_space<vmem>>, vector<8x128xf32>
      %c0_106 = arith.constant 0 : index
      %c0_107 = arith.constant 0 : index
      %336 = vector.load %arg10[%c0_106, %c0_107] : memref<8x128xf32, #tpu.memory_space<vmem>>, vector<8x128xf32>
      tpu.vector_store %arg10[%c0_106, %c0_107], %335 {strides = array<i32>} : memref<8x128xf32, #tpu.memory_space<vmem>>, vector<8x128xf32>,
      %c0_108 = arith.constant 0 : index
      %c0_109 = arith.constant 0 : index
      %337 = vector.load %arg5[%c0_108, %c0_109] : memref<8x128xf32, #tpu.memory_space<vmem>>, vector<8x128xf32>
      %c0_110 = arith.constant 0 : index
      %c0_111 = arith.constant 0 : index
      %338 = vector.load %arg11[%c0_110, %c0_111] : memref<8x128xf32, #tpu.memory_space<vmem>>, vector<8x128xf32>
      tpu.vector_store %arg11[%c0_110, %c0_111], %337 {strides = array<i32>} : memref<8x128xf32, #tpu.memory_space<vmem>>, vector<8x128xf32>,
    } else {
    }
    %c0 = arith.constant 0 : index
    %c0_1 = arith.constant 0 : index
    %3 = vector.load %arg8[%c0, %c0_1] : memref<8x128xf32, #tpu.memory_space<vmem>>, vector<8x128xf32>
    %c0_2 = arith.constant 0 : index
    %c0_3 = arith.constant 0 : index
    %4 = vector.load %arg9[%c0_2, %c0_3] : memref<8x128xf32, #tpu.memory_space<vmem>>, vector<8x128xf32>
    %c0_4 = arith.constant 0 : index
    %c0_5 = arith.constant 0 : index
    %5 = vector.load %arg10[%c0_4, %c0_5] : memref<8x128xf32, #tpu.memory_space<vmem>>, vector<8x128xf32>
    %c0_6 = arith.constant 0 : index
    %c0_7 = arith.constant 0 : index
    %6 = vector.load %arg11[%c0_6, %c0_7] : memref<8x128xf32, #tpu.memory_space<vmem>>, vector<8x128xf32>
    %c0_i32_8 = arith.constant 0 : i32
    %7 = arith.index_cast %c0_i32_8 : i32 to index
    %c0_9 = arith.constant 0 : index
    %c0_10 = arith.constant 0 : index
    %8 = vector.load %arg1[%7, %c0_9, %c0_10] : memref<8x8x512xf32, #tpu.memory_space<vmem>>, vector<1x8x512xf32>
    %9 = vector.shape_cast %8 : vector<1x8x512xf32> to vector<8x512xf32>
    %c0_11 = arith.constant 0 : index
    %c0_12 = arith.constant 0 : index
    %10 = vector.load %arg6[%c0_11, %c0_12] : memref<128x512xf32, #tpu.memory_space<vmem>>, vector<128x512xf32>
    %cst = arith.constant dense<0.000000e+00> : vector<8x512xf32>
    %11 = tpu.matmul %3, %10, %cst {dimension_numbers = #tpu.dot_dimension_numbers<[1], [0], [0], [1], [0, 0, 1, 1], [], []>} : vector<8x128xf32>, vector<128x512xf32>, vector<8x512xf32> -> vector<8x512xf32>
    %12 = arith.addf %9, %11 : vector<8x512xf32>
    %13 = vector.extract_strided_slice %12 {offsets = [0, 0], sizes = [8, 128], strides = [1, 1]} : vector<8x512xf32> to vector<8x128xf32>
    %14 = vector.extract_strided_slice %12 {offsets = [0, 128], sizes = [8, 128], strides = [1, 1]} : vector<8x512xf32> to vector<8x128xf32>
    %15 = vector.extract_strided_slice %12 {offsets = [0, 256], sizes = [8, 128], strides = [1, 1]} : vector<8x512xf32> to vector<8x128xf32>
    %16 = vector.extract_strided_slice %12 {offsets = [0, 384], sizes = [8, 128], strides = [1, 1]} : vector<8x512xf32> to vector<8x128xf32>
    %17 = math.tanh %13 : vector<8x128xf32>
    %18 = arith.negf %16 : vector<8x128xf32>
    %19 = math.exp %18 : vector<8x128xf32>
    %cst_13 = arith.constant 1.000000e+00 : f32
    %20 = vector.broadcast %cst_13 : f32 to vector<8x128xf32>
    %21 = arith.addf %20, %19 : vector<8x128xf32>
    %22 = arith.divf %20, %21 : vector<8x128xf32>
    %cst_14 = arith.constant 0.000000e+00 : f32
    %23 = vector.broadcast %cst_14 : f32 to vector<8x128xf32>
    %24 = arith.minimumf %15, %23 : vector<8x128xf32>
    %25 = math.absf %15 : vector<8x128xf32>
    %cst_15 = arith.constant 0.000000e+00 : f32
    %26 = vector.broadcast %cst_15 : f32 to vector<8x128xf32>
    %27 = arith.subf %26, %25 : vector<8x128xf32>
    %28 = math.exp %27 : vector<8x128xf32>
    %29 = math.log1p %28 : vector<8x128xf32>
    %30 = arith.subf %24, %29 : vector<8x128xf32>
    %31 = math.exp %30 : vector<8x128xf32>
    %32 = arith.addf %30, %6 : vector<8x128xf32>
    %33 = arith.maximumf %32, %14 : vector<8x128xf32>
    %34 = arith.subf %14, %33 : vector<8x128xf32>
    %35 = math.exp %34 : vector<8x128xf32>
    %36 = arith.mulf %31, %4 : vector<8x128xf32>
    %37 = arith.mulf %35, %17 : vector<8x128xf32>
    %38 = arith.addf %36, %37 : vector<8x128xf32>
    %39 = arith.mulf %31, %5 : vector<8x128xf32>
    %40 = arith.addf %39, %35 : vector<8x128xf32>
    %41 = arith.divf %38, %40 : vector<8x128xf32>
    %42 = arith.mulf %22, %41 : vector<8x128xf32>
    %43 = arith.index_cast %c0_i32_8 : i32 to index
    %c0_16 = arith.constant 0 : index
    %c0_17 = arith.constant 0 : index
    %44 = vector.load %arg7[%43, %c0_16, %c0_17] : memref<8x8x128xf32, #tpu.memory_space<vmem>>, vector<1x8x128xf32>
    %45 = vector.shape_cast %44 : vector<1x8x128xf32> to vector<8x128xf32>
    %46 = vector.shape_cast %42 : vector<8x128xf32> to vector<1x8x128xf32>
    tpu.vector_store %arg7[%43, %c0_16, %c0_17], %46 {strides = array<i32>} : memref<8x8x128xf32, #tpu.memory_space<vmem>>, vector<1x8x128xf32>,
    %c1_i32 = arith.constant 1 : i32
    %47 = arith.index_cast %c1_i32 : i32 to index
    %c0_18 = arith.constant 0 : index
    %c0_19 = arith.constant 0 : index
    %48 = vector.load %arg1[%47, %c0_18, %c0_19] : memref<8x8x512xf32, #tpu.memory_space<vmem>>, vector<1x8x512xf32>
    %49 = vector.shape_cast %48 : vector<1x8x512xf32> to vector<8x512xf32>
    %c0_20 = arith.constant 0 : index
    %c0_21 = arith.constant 0 : index
    %50 = vector.load %arg6[%c0_20, %c0_21] : memref<128x512xf32, #tpu.memory_space<vmem>>, vector<128x512xf32>
    %cst_22 = arith.constant dense<0.000000e+00> : vector<8x512xf32>
    %51 = tpu.matmul %42, %50, %cst_22 {dimension_numbers = #tpu.dot_dimension_numbers<[1], [0], [0], [1], [0, 0, 1, 1], [], []>} : vector<8x128xf32>, vector<128x512xf32>, vector<8x512xf32> -> vector<8x512xf32>
    %52 = arith.addf %49, %51 : vector<8x512xf32>
    %53 = vector.extract_strided_slice %52 {offsets = [0, 0], sizes = [8, 128], strides = [1, 1]} : vector<8x512xf32> to vector<8x128xf32>
    %54 = vector.extract_strided_slice %52 {offsets = [0, 128], sizes = [8, 128], strides = [1, 1]} : vector<8x512xf32> to vector<8x128xf32>
    %55 = vector.extract_strided_slice %52 {offsets = [0, 256], sizes = [8, 128], strides = [1, 1]} : vector<8x512xf32> to vector<8x128xf32>
    %56 = vector.extract_strided_slice %52 {offsets = [0, 384], sizes = [8, 128], strides = [1, 1]} : vector<8x512xf32> to vector<8x128xf32>
    %57 = math.tanh %53 : vector<8x128xf32>
    %58 = arith.negf %56 : vector<8x128xf32>
    %59 = math.exp %58 : vector<8x128xf32>
    %cst_23 = arith.constant 1.000000e+00 : f32
    %60 = vector.broadcast %cst_23 : f32 to vector<8x128xf32>
    %61 = arith.addf %60, %59 : vector<8x128xf32>
    %62 = arith.divf %60, %61 : vector<8x128xf32>
    %cst_24 = arith.constant 0.000000e+00 : f32
    %63 = vector.broadcast %cst_24 : f32 to vector<8x128xf32>
    %64 = arith.minimumf %55, %63 : vector<8x128xf32>
    %65 = math.absf %55 : vector<8x128xf32>
    %cst_25 = arith.constant 0.000000e+00 : f32
    %66 = vector.broadcast %cst_25 : f32 to vector<8x128xf32>
    %67 = arith.subf %66, %65 : vector<8x128xf32>
    %68 = math.exp %67 : vector<8x128xf32>
    %69 = math.log1p %68 : vector<8x128xf32>
    %70 = arith.subf %64, %69 : vector<8x128xf32>
    %71 = math.exp %70 : vector<8x128xf32>
    %72 = arith.addf %70, %33 : vector<8x128xf32>
    %73 = arith.maximumf %72, %54 : vector<8x128xf32>
    %74 = arith.subf %54, %73 : vector<8x128xf32>
    %75 = math.exp %74 : vector<8x128xf32>
    %76 = arith.mulf %71, %38 : vector<8x128xf32>
    %77 = arith.mulf %75, %57 : vector<8x128xf32>
    %78 = arith.addf %76, %77 : vector<8x128xf32>
    %79 = arith.mulf %71, %40 : vector<8x128xf32>
    %80 = arith.addf %79, %75 : vector<8x128xf32>
    %81 = arith.divf %78, %80 : vector<8x128xf32>
    %82 = arith.mulf %62, %81 : vector<8x128xf32>
    %83 = arith.index_cast %c1_i32 : i32 to index
    %c0_26 = arith.constant 0 : index
    %c0_27 = arith.constant 0 : index
    %84 = vector.load %arg7[%83, %c0_26, %c0_27] : memref<8x8x128xf32, #tpu.memory_space<vmem>>, vector<1x8x128xf32>
    %85 = vector.shape_cast %84 : vector<1x8x128xf32> to vector<8x128xf32>
    %86 = vector.shape_cast %82 : vector<8x128xf32> to vector<1x8x128xf32>
    tpu.vector_store %arg7[%83, %c0_26, %c0_27], %86 {strides = array<i32>} : memref<8x8x128xf32, #tpu.memory_space<vmem>>, vector<1x8x128xf32>,
    %c2_i32 = arith.constant 2 : i32
    %87 = arith.index_cast %c2_i32 : i32 to index
    %c0_28 = arith.constant 0 : index
    %c0_29 = arith.constant 0 : index
    %88 = vector.load %arg1[%87, %c0_28, %c0_29] : memref<8x8x512xf32, #tpu.memory_space<vmem>>, vector<1x8x512xf32>
    %89 = vector.shape_cast %88 : vector<1x8x512xf32> to vector<8x512xf32>
    %c0_30 = arith.constant 0 : index
    %c0_31 = arith.constant 0 : index
    %90 = vector.load %arg6[%c0_30, %c0_31] : memref<128x512xf32, #tpu.memory_space<vmem>>, vector<128x512xf32>
    %cst_32 = arith.constant dense<0.000000e+00> : vector<8x512xf32>
    %91 = tpu.matmul %82, %90, %cst_32 {dimension_numbers = #tpu.dot_dimension_numbers<[1], [0], [0], [1], [0, 0, 1, 1], [], []>} : vector<8x128xf32>, vector<128x512xf32>, vector<8x512xf32> -> vector<8x512xf32>
    %92 = arith.addf %89, %91 : vector<8x512xf32>
    %93 = vector.extract_strided_slice %92 {offsets = [0, 0], sizes = [8, 128], strides = [1, 1]} : vector<8x512xf32> to vector<8x128xf32>
    %94 = vector.extract_strided_slice %92 {offsets = [0, 128], sizes = [8, 128], strides = [1, 1]} : vector<8x512xf32> to vector<8x128xf32>
    %95 = vector.extract_strided_slice %92 {offsets = [0, 256], sizes = [8, 128], strides = [1, 1]} : vector<8x512xf32> to vector<8x128xf32>
    %96 = vector.extract_strided_slice %92 {offsets = [0, 384], sizes = [8, 128], strides = [1, 1]} : vector<8x512xf32> to vector<8x128xf32>
    %97 = math.tanh %93 : vector<8x128xf32>
    %98 = arith.negf %96 : vector<8x128xf32>
    %99 = math.exp %98 : vector<8x128xf32>
    %cst_33 = arith.constant 1.000000e+00 : f32
    %100 = vector.broadcast %cst_33 : f32 to vector<8x128xf32>
    %101 = arith.addf %100, %99 : vector<8x128xf32>
    %102 = arith.divf %100, %101 : vector<8x128xf32>
    %cst_34 = arith.constant 0.000000e+00 : f32
    %103 = vector.broadcast %cst_34 : f32 to vector<8x128xf32>
    %104 = arith.minimumf %95, %103 : vector<8x128xf32>
    %105 = math.absf %95 : vector<8x128xf32>
    %cst_35 = arith.constant 0.000000e+00 : f32
    %106 = vector.broadcast %cst_35 : f32 to vector<8x128xf32>
    %107 = arith.subf %106, %105 : vector<8x128xf32>
    %108 = math.exp %107 : vector<8x128xf32>
    %109 = math.log1p %108 : vector<8x128xf32>
    %110 = arith.subf %104, %109 : vector<8x128xf32>
    %111 = math.exp %110 : vector<8x128xf32>
    %112 = arith.addf %110, %73 : vector<8x128xf32>
    %113 = arith.maximumf %112, %94 : vector<8x128xf32>
    %114 = arith.subf %94, %113 : vector<8x128xf32>
    %115 = math.exp %114 : vector<8x128xf32>
    %116 = arith.mulf %111, %78 : vector<8x128xf32>
    %117 = arith.mulf %115, %97 : vector<8x128xf32>
    %118 = arith.addf %116, %117 : vector<8x128xf32>
    %119 = arith.mulf %111, %80 : vector<8x128xf32>
    %120 = arith.addf %119, %115 : vector<8x128xf32>
    %121 = arith.divf %118, %120 : vector<8x128xf32>
    %122 = arith.mulf %102, %121 : vector<8x128xf32>
    %123 = arith.index_cast %c2_i32 : i32 to index
    %c0_36 = arith.constant 0 : index
    %c0_37 = arith.constant 0 : index
    %124 = vector.load %arg7[%123, %c0_36, %c0_37] : memref<8x8x128xf32, #tpu.memory_space<vmem>>, vector<1x8x128xf32>
    %125 = vector.shape_cast %124 : vector<1x8x128xf32> to vector<8x128xf32>
    %126 = vector.shape_cast %122 : vector<8x128xf32> to vector<1x8x128xf32>
    tpu.vector_store %arg7[%123, %c0_36, %c0_37], %126 {strides = array<i32>} : memref<8x8x128xf32, #tpu.memory_space<vmem>>, vector<1x8x128xf32>,
    %c3_i32 = arith.constant 3 : i32
    %127 = arith.index_cast %c3_i32 : i32 to index
    %c0_38 = arith.constant 0 : index
    %c0_39 = arith.constant 0 : index
    %128 = vector.load %arg1[%127, %c0_38, %c0_39] : memref<8x8x512xf32, #tpu.memory_space<vmem>>, vector<1x8x512xf32>
    %129 = vector.shape_cast %128 : vector<1x8x512xf32> to vector<8x512xf32>
    %c0_40 = arith.constant 0 : index
    %c0_41 = arith.constant 0 : index
    %130 = vector.load %arg6[%c0_40, %c0_41] : memref<128x512xf32, #tpu.memory_space<vmem>>, vector<128x512xf32>
    %cst_42 = arith.constant dense<0.000000e+00> : vector<8x512xf32>
    %131 = tpu.matmul %122, %130, %cst_42 {dimension_numbers = #tpu.dot_dimension_numbers<[1], [0], [0], [1], [0, 0, 1, 1], [], []>} : vector<8x128xf32>, vector<128x512xf32>, vector<8x512xf32> -> vector<8x512xf32>
    %132 = arith.addf %129, %131 : vector<8x512xf32>
    %133 = vector.extract_strided_slice %132 {offsets = [0, 0], sizes = [8, 128], strides = [1, 1]} : vector<8x512xf32> to vector<8x128xf32>
    %134 = vector.extract_strided_slice %132 {offsets = [0, 128], sizes = [8, 128], strides = [1, 1]} : vector<8x512xf32> to vector<8x128xf32>
    %135 = vector.extract_strided_slice %132 {offsets = [0, 256], sizes = [8, 128], strides = [1, 1]} : vector<8x512xf32> to vector<8x128xf32>
    %136 = vector.extract_strided_slice %132 {offsets = [0, 384], sizes = [8, 128], strides = [1, 1]} : vector<8x512xf32> to vector<8x128xf32>
    %137 = math.tanh %133 : vector<8x128xf32>
    %138 = arith.negf %136 : vector<8x128xf32>
    %139 = math.exp %138 : vector<8x128xf32>
    %cst_43 = arith.constant 1.000000e+00 : f32
    %140 = vector.broadcast %cst_43 : f32 to vector<8x128xf32>
    %141 = arith.addf %140, %139 : vector<8x128xf32>
    %142 = arith.divf %140, %141 : vector<8x128xf32>
    %cst_44 = arith.constant 0.000000e+00 : f32
    %143 = vector.broadcast %cst_44 : f32 to vector<8x128xf32>
    %144 = arith.minimumf %135, %143 : vector<8x128xf32>
    %145 = math.absf %135 : vector<8x128xf32>
    %cst_45 = arith.constant 0.000000e+00 : f32
    %146 = vector.broadcast %cst_45 : f32 to vector<8x128xf32>
    %147 = arith.subf %146, %145 : vector<8x128xf32>
    %148 = math.exp %147 : vector<8x128xf32>
    %149 = math.log1p %148 : vector<8x128xf32>
    %150 = arith.subf %144, %149 : vector<8x128xf32>
    %151 = math.exp %150 : vector<8x128xf32>
    %152 = arith.addf %150, %113 : vector<8x128xf32>
    %153 = arith.maximumf %152, %134 : vector<8x128xf32>
    %154 = arith.subf %134, %153 : vector<8x128xf32>
    %155 = math.exp %154 : vector<8x128xf32>
    %156 = arith.mulf %151, %118 : vector<8x128xf32>
    %157 = arith.mulf %155, %137 : vector<8x128xf32>
    %158 = arith.addf %156, %157 : vector<8x128xf32>
    %159 = arith.mulf %151, %120 : vector<8x128xf32>
    %160 = arith.addf %159, %155 : vector<8x128xf32>
    %161 = arith.divf %158, %160 : vector<8x128xf32>
    %162 = arith.mulf %142, %161 : vector<8x128xf32>
    %163 = arith.index_cast %c3_i32 : i32 to index
    %c0_46 = arith.constant 0 : index
    %c0_47 = arith.constant 0 : index
    %164 = vector.load %arg7[%163, %c0_46, %c0_47] : memref<8x8x128xf32, #tpu.memory_space<vmem>>, vector<1x8x128xf32>
    %165 = vector.shape_cast %164 : vector<1x8x128xf32> to vector<8x128xf32>
    %166 = vector.shape_cast %162 : vector<8x128xf32> to vector<1x8x128xf32>
    tpu.vector_store %arg7[%163, %c0_46, %c0_47], %166 {strides = array<i32>} : memref<8x8x128xf32, #tpu.memory_space<vmem>>, vector<1x8x128xf32>,
    %c4_i32 = arith.constant 4 : i32
    %167 = arith.index_cast %c4_i32 : i32 to index
    %c0_48 = arith.constant 0 : index
    %c0_49 = arith.constant 0 : index
    %168 = vector.load %arg1[%167, %c0_48, %c0_49] : memref<8x8x512xf32, #tpu.memory_space<vmem>>, vector<1x8x512xf32>
    %169 = vector.shape_cast %168 : vector<1x8x512xf32> to vector<8x512xf32>
    %c0_50 = arith.constant 0 : index
    %c0_51 = arith.constant 0 : index
    %170 = vector.load %arg6[%c0_50, %c0_51] : memref<128x512xf32, #tpu.memory_space<vmem>>, vector<128x512xf32>
    %cst_52 = arith.constant dense<0.000000e+00> : vector<8x512xf32>
    %171 = tpu.matmul %162, %170, %cst_52 {dimension_numbers = #tpu.dot_dimension_numbers<[1], [0], [0], [1], [0, 0, 1, 1], [], []>} : vector<8x128xf32>, vector<128x512xf32>, vector<8x512xf32> -> vector<8x512xf32>
    %172 = arith.addf %169, %171 : vector<8x512xf32>
    %173 = vector.extract_strided_slice %172 {offsets = [0, 0], sizes = [8, 128], strides = [1, 1]} : vector<8x512xf32> to vector<8x128xf32>
    %174 = vector.extract_strided_slice %172 {offsets = [0, 128], sizes = [8, 128], strides = [1, 1]} : vector<8x512xf32> to vector<8x128xf32>
    %175 = vector.extract_strided_slice %172 {offsets = [0, 256], sizes = [8, 128], strides = [1, 1]} : vector<8x512xf32> to vector<8x128xf32>
    %176 = vector.extract_strided_slice %172 {offsets = [0, 384], sizes = [8, 128], strides = [1, 1]} : vector<8x512xf32> to vector<8x128xf32>
    %177 = math.tanh %173 : vector<8x128xf32>
    %178 = arith.negf %176 : vector<8x128xf32>
    %179 = math.exp %178 : vector<8x128xf32>
    %cst_53 = arith.constant 1.000000e+00 : f32
    %180 = vector.broadcast %cst_53 : f32 to vector<8x128xf32>
    %181 = arith.addf %180, %179 : vector<8x128xf32>
    %182 = arith.divf %180, %181 : vector<8x128xf32>
    %cst_54 = arith.constant 0.000000e+00 : f32
    %183 = vector.broadcast %cst_54 : f32 to vector<8x128xf32>
    %184 = arith.minimumf %175, %183 : vector<8x128xf32>
    %185 = math.absf %175 : vector<8x128xf32>
    %cst_55 = arith.constant 0.000000e+00 : f32
    %186 = vector.broadcast %cst_55 : f32 to vector<8x128xf32>
    %187 = arith.subf %186, %185 : vector<8x128xf32>
    %188 = math.exp %187 : vector<8x128xf32>
    %189 = math.log1p %188 : vector<8x128xf32>
    %190 = arith.subf %184, %189 : vector<8x128xf32>
    %191 = math.exp %190 : vector<8x128xf32>
    %192 = arith.addf %190, %153 : vector<8x128xf32>
    %193 = arith.maximumf %192, %174 : vector<8x128xf32>
    %194 = arith.subf %174, %193 : vector<8x128xf32>
    %195 = math.exp %194 : vector<8x128xf32>
    %196 = arith.mulf %191, %158 : vector<8x128xf32>
    %197 = arith.mulf %195, %177 : vector<8x128xf32>
    %198 = arith.addf %196, %197 : vector<8x128xf32>
    %199 = arith.mulf %191, %160 : vector<8x128xf32>
    %200 = arith.addf %199, %195 : vector<8x128xf32>
    %201 = arith.divf %198, %200 : vector<8x128xf32>
    %202 = arith.mulf %182, %201 : vector<8x128xf32>
    %203 = arith.index_cast %c4_i32 : i32 to index
    %c0_56 = arith.constant 0 : index
    %c0_57 = arith.constant 0 : index
    %204 = vector.load %arg7[%203, %c0_56, %c0_57] : memref<8x8x128xf32, #tpu.memory_space<vmem>>, vector<1x8x128xf32>
    %205 = vector.shape_cast %204 : vector<1x8x128xf32> to vector<8x128xf32>
    %206 = vector.shape_cast %202 : vector<8x128xf32> to vector<1x8x128xf32>
    tpu.vector_store %arg7[%203, %c0_56, %c0_57], %206 {strides = array<i32>} : memref<8x8x128xf32, #tpu.memory_space<vmem>>, vector<1x8x128xf32>,
    %c5_i32 = arith.constant 5 : i32
    %207 = arith.index_cast %c5_i32 : i32 to index
    %c0_58 = arith.constant 0 : index
    %c0_59 = arith.constant 0 : index
    %208 = vector.load %arg1[%207, %c0_58, %c0_59] : memref<8x8x512xf32, #tpu.memory_space<vmem>>, vector<1x8x512xf32>
    %209 = vector.shape_cast %208 : vector<1x8x512xf32> to vector<8x512xf32>
    %c0_60 = arith.constant 0 : index
    %c0_61 = arith.constant 0 : index
    %210 = vector.load %arg6[%c0_60, %c0_61] : memref<128x512xf32, #tpu.memory_space<vmem>>, vector<128x512xf32>
    %cst_62 = arith.constant dense<0.000000e+00> : vector<8x512xf32>
    %211 = tpu.matmul %202, %210, %cst_62 {dimension_numbers = #tpu.dot_dimension_numbers<[1], [0], [0], [1], [0, 0, 1, 1], [], []>} : vector<8x128xf32>, vector<128x512xf32>, vector<8x512xf32> -> vector<8x512xf32>
    %212 = arith.addf %209, %211 : vector<8x512xf32>
    %213 = vector.extract_strided_slice %212 {offsets = [0, 0], sizes = [8, 128], strides = [1, 1]} : vector<8x512xf32> to vector<8x128xf32>
    %214 = vector.extract_strided_slice %212 {offsets = [0, 128], sizes = [8, 128], strides = [1, 1]} : vector<8x512xf32> to vector<8x128xf32>
    %215 = vector.extract_strided_slice %212 {offsets = [0, 256], sizes = [8, 128], strides = [1, 1]} : vector<8x512xf32> to vector<8x128xf32>
    %216 = vector.extract_strided_slice %212 {offsets = [0, 384], sizes = [8, 128], strides = [1, 1]} : vector<8x512xf32> to vector<8x128xf32>
    %217 = math.tanh %213 : vector<8x128xf32>
    %218 = arith.negf %216 : vector<8x128xf32>
    %219 = math.exp %218 : vector<8x128xf32>
    %cst_63 = arith.constant 1.000000e+00 : f32
    %220 = vector.broadcast %cst_63 : f32 to vector<8x128xf32>
    %221 = arith.addf %220, %219 : vector<8x128xf32>
    %222 = arith.divf %220, %221 : vector<8x128xf32>
    %cst_64 = arith.constant 0.000000e+00 : f32
    %223 = vector.broadcast %cst_64 : f32 to vector<8x128xf32>
    %224 = arith.minimumf %215, %223 : vector<8x128xf32>
    %225 = math.absf %215 : vector<8x128xf32>
    %cst_65 = arith.constant 0.000000e+00 : f32
    %226 = vector.broadcast %cst_65 : f32 to vector<8x128xf32>
    %227 = arith.subf %226, %225 : vector<8x128xf32>
    %228 = math.exp %227 : vector<8x128xf32>
    %229 = math.log1p %228 : vector<8x128xf32>
    %230 = arith.subf %224, %229 : vector<8x128xf32>
    %231 = math.exp %230 : vector<8x128xf32>
    %232 = arith.addf %230, %193 : vector<8x128xf32>
    %233 = arith.maximumf %232, %214 : vector<8x128xf32>
    %234 = arith.subf %214, %233 : vector<8x128xf32>
    %235 = math.exp %234 : vector<8x128xf32>
    %236 = arith.mulf %231, %198 : vector<8x128xf32>
    %237 = arith.mulf %235, %217 : vector<8x128xf32>
    %238 = arith.addf %236, %237 : vector<8x128xf32>
    %239 = arith.mulf %231, %200 : vector<8x128xf32>
    %240 = arith.addf %239, %235 : vector<8x128xf32>
    %241 = arith.divf %238, %240 : vector<8x128xf32>
    %242 = arith.mulf %222, %241 : vector<8x128xf32>
    %243 = arith.index_cast %c5_i32 : i32 to index
    %c0_66 = arith.constant 0 : index
    %c0_67 = arith.constant 0 : index
    %244 = vector.load %arg7[%243, %c0_66, %c0_67] : memref<8x8x128xf32, #tpu.memory_space<vmem>>, vector<1x8x128xf32>
    %245 = vector.shape_cast %244 : vector<1x8x128xf32> to vector<8x128xf32>
    %246 = vector.shape_cast %242 : vector<8x128xf32> to vector<1x8x128xf32>
    tpu.vector_store %arg7[%243, %c0_66, %c0_67], %246 {strides = array<i32>} : memref<8x8x128xf32, #tpu.memory_space<vmem>>, vector<1x8x128xf32>,
    %c6_i32 = arith.constant 6 : i32
    %247 = arith.index_cast %c6_i32 : i32 to index
    %c0_68 = arith.constant 0 : index
    %c0_69 = arith.constant 0 : index
    %248 = vector.load %arg1[%247, %c0_68, %c0_69] : memref<8x8x512xf32, #tpu.memory_space<vmem>>, vector<1x8x512xf32>
    %249 = vector.shape_cast %248 : vector<1x8x512xf32> to vector<8x512xf32>
    %c0_70 = arith.constant 0 : index
    %c0_71 = arith.constant 0 : index
    %250 = vector.load %arg6[%c0_70, %c0_71] : memref<128x512xf32, #tpu.memory_space<vmem>>, vector<128x512xf32>
    %cst_72 = arith.constant dense<0.000000e+00> : vector<8x512xf32>
    %251 = tpu.matmul %242, %250, %cst_72 {dimension_numbers = #tpu.dot_dimension_numbers<[1], [0], [0], [1], [0, 0, 1, 1], [], []>} : vector<8x128xf32>, vector<128x512xf32>, vector<8x512xf32> -> vector<8x512xf32>
    %252 = arith.addf %249, %251 : vector<8x512xf32>
    %253 = vector.extract_strided_slice %252 {offsets = [0, 0], sizes = [8, 128], strides = [1, 1]} : vector<8x512xf32> to vector<8x128xf32>
    %254 = vector.extract_strided_slice %252 {offsets = [0, 128], sizes = [8, 128], strides = [1, 1]} : vector<8x512xf32> to vector<8x128xf32>
    %255 = vector.extract_strided_slice %252 {offsets = [0, 256], sizes = [8, 128], strides = [1, 1]} : vector<8x512xf32> to vector<8x128xf32>
    %256 = vector.extract_strided_slice %252 {offsets = [0, 384], sizes = [8, 128], strides = [1, 1]} : vector<8x512xf32> to vector<8x128xf32>
    %257 = math.tanh %253 : vector<8x128xf32>
    %258 = arith.negf %256 : vector<8x128xf32>
    %259 = math.exp %258 : vector<8x128xf32>
    %cst_73 = arith.constant 1.000000e+00 : f32
    %260 = vector.broadcast %cst_73 : f32 to vector<8x128xf32>
    %261 = arith.addf %260, %259 : vector<8x128xf32>
    %262 = arith.divf %260, %261 : vector<8x128xf32>
    %cst_74 = arith.constant 0.000000e+00 : f32
    %263 = vector.broadcast %cst_74 : f32 to vector<8x128xf32>
    %264 = arith.minimumf %255, %263 : vector<8x128xf32>
    %265 = math.absf %255 : vector<8x128xf32>
    %cst_75 = arith.constant 0.000000e+00 : f32
    %266 = vector.broadcast %cst_75 : f32 to vector<8x128xf32>
    %267 = arith.subf %266, %265 : vector<8x128xf32>
    %268 = math.exp %267 : vector<8x128xf32>
    %269 = math.log1p %268 : vector<8x128xf32>
    %270 = arith.subf %264, %269 : vector<8x128xf32>
    %271 = math.exp %270 : vector<8x128xf32>
    %272 = arith.addf %270, %233 : vector<8x128xf32>
    %273 = arith.maximumf %272, %254 : vector<8x128xf32>
    %274 = arith.subf %254, %273 : vector<8x128xf32>
    %275 = math.exp %274 : vector<8x128xf32>
    %276 = arith.mulf %271, %238 : vector<8x128xf32>
    %277 = arith.mulf %275, %257 : vector<8x128xf32>
    %278 = arith.addf %276, %277 : vector<8x128xf32>
    %279 = arith.mulf %271, %240 : vector<8x128xf32>
    %280 = arith.addf %279, %275 : vector<8x128xf32>
    %281 = arith.divf %278, %280 : vector<8x128xf32>
    %282 = arith.mulf %262, %281 : vector<8x128xf32>
    %283 = arith.index_cast %c6_i32 : i32 to index
    %c0_76 = arith.constant 0 : index
    %c0_77 = arith.constant 0 : index
    %284 = vector.load %arg7[%283, %c0_76, %c0_77] : memref<8x8x128xf32, #tpu.memory_space<vmem>>, vector<1x8x128xf32>
    %285 = vector.shape_cast %284 : vector<1x8x128xf32> to vector<8x128xf32>
    %286 = vector.shape_cast %282 : vector<8x128xf32> to vector<1x8x128xf32>
    tpu.vector_store %arg7[%283, %c0_76, %c0_77], %286 {strides = array<i32>} : memref<8x8x128xf32, #tpu.memory_space<vmem>>, vector<1x8x128xf32>,
    %c7_i32 = arith.constant 7 : i32
    %287 = arith.index_cast %c7_i32 : i32 to index
    %c0_78 = arith.constant 0 : index
    %c0_79 = arith.constant 0 : index
    %288 = vector.load %arg1[%287, %c0_78, %c0_79] : memref<8x8x512xf32, #tpu.memory_space<vmem>>, vector<1x8x512xf32>
    %289 = vector.shape_cast %288 : vector<1x8x512xf32> to vector<8x512xf32>
    %c0_80 = arith.constant 0 : index
    %c0_81 = arith.constant 0 : index
    %290 = vector.load %arg6[%c0_80, %c0_81] : memref<128x512xf32, #tpu.memory_space<vmem>>, vector<128x512xf32>
    %cst_82 = arith.constant dense<0.000000e+00> : vector<8x512xf32>
    %291 = tpu.matmul %282, %290, %cst_82 {dimension_numbers = #tpu.dot_dimension_numbers<[1], [0], [0], [1], [0, 0, 1, 1], [], []>} : vector<8x128xf32>, vector<128x512xf32>, vector<8x512xf32> -> vector<8x512xf32>
    %292 = arith.addf %289, %291 : vector<8x512xf32>
    %293 = vector.extract_strided_slice %292 {offsets = [0, 0], sizes = [8, 128], strides = [1, 1]} : vector<8x512xf32> to vector<8x128xf32>
    %294 = vector.extract_strided_slice %292 {offsets = [0, 128], sizes = [8, 128], strides = [1, 1]} : vector<8x512xf32> to vector<8x128xf32>
    %295 = vector.extract_strided_slice %292 {offsets = [0, 256], sizes = [8, 128], strides = [1, 1]} : vector<8x512xf32> to vector<8x128xf32>
    %296 = vector.extract_strided_slice %292 {offsets = [0, 384], sizes = [8, 128], strides = [1, 1]} : vector<8x512xf32> to vector<8x128xf32>
    %297 = math.tanh %293 : vector<8x128xf32>
    %298 = arith.negf %296 : vector<8x128xf32>
    %299 = math.exp %298 : vector<8x128xf32>
    %cst_83 = arith.constant 1.000000e+00 : f32
    %300 = vector.broadcast %cst_83 : f32 to vector<8x128xf32>
    %301 = arith.addf %300, %299 : vector<8x128xf32>
    %302 = arith.divf %300, %301 : vector<8x128xf32>
    %cst_84 = arith.constant 0.000000e+00 : f32
    %303 = vector.broadcast %cst_84 : f32 to vector<8x128xf32>
    %304 = arith.minimumf %295, %303 : vector<8x128xf32>
    %305 = math.absf %295 : vector<8x128xf32>
    %cst_85 = arith.constant 0.000000e+00 : f32
    %306 = vector.broadcast %cst_85 : f32 to vector<8x128xf32>
    %307 = arith.subf %306, %305 : vector<8x128xf32>
    %308 = math.exp %307 : vector<8x128xf32>
    %309 = math.log1p %308 : vector<8x128xf32>
    %310 = arith.subf %304, %309 : vector<8x128xf32>
    %311 = math.exp %310 : vector<8x128xf32>
    %312 = arith.addf %310, %273 : vector<8x128xf32>
    %313 = arith.maximumf %312, %294 : vector<8x128xf32>
    %314 = arith.subf %294, %313 : vector<8x128xf32>
    %315 = math.exp %314 : vector<8x128xf32>
    %316 = arith.mulf %311, %278 : vector<8x128xf32>
    %317 = arith.mulf %315, %297 : vector<8x128xf32>
    %318 = arith.addf %316, %317 : vector<8x128xf32>
    %319 = arith.mulf %311, %280 : vector<8x128xf32>
    %320 = arith.addf %319, %315 : vector<8x128xf32>
    %321 = arith.divf %318, %320 : vector<8x128xf32>
    %322 = arith.mulf %302, %321 : vector<8x128xf32>
    %323 = arith.index_cast %c7_i32 : i32 to index
    %c0_86 = arith.constant 0 : index
    %c0_87 = arith.constant 0 : index
    %324 = vector.load %arg7[%323, %c0_86, %c0_87] : memref<8x8x128xf32, #tpu.memory_space<vmem>>, vector<1x8x128xf32>
    %325 = vector.shape_cast %324 : vector<1x8x128xf32> to vector<8x128xf32>
    %326 = vector.shape_cast %322 : vector<8x128xf32> to vector<1x8x128xf32>
    tpu.vector_store %arg7[%323, %c0_86, %c0_87], %326 {strides = array<i32>} : memref<8x8x128xf32, #tpu.memory_space<vmem>>, vector<1x8x128xf32>,
    %c8_i32 = arith.constant 8 : i32
    %c0_88 = arith.constant 0 : index
    %c0_89 = arith.constant 0 : index
    %327 = vector.load %arg8[%c0_88, %c0_89] : memref<8x128xf32, #tpu.memory_space<vmem>>, vector<8x128xf32>
    tpu.vector_store %arg8[%c0_88, %c0_89], %322 {strides = array<i32>} : memref<8x128xf32, #tpu.memory_space<vmem>>, vector<8x128xf32>,
    %c0_90 = arith.constant 0 : index
    %c0_91 = arith.constant 0 : index
    %328 = vector.load %arg9[%c0_90, %c0_91] : memref<8x128xf32, #tpu.memory_space<vmem>>, vector<8x128xf32>
    tpu.vector_store %arg9[%c0_90, %c0_91], %318 {strides = array<i32>} : memref<8x128xf32, #tpu.memory_space<vmem>>, vector<8x128xf32>,
    %c0_92 = arith.constant 0 : index
    %c0_93 = arith.constant 0 : index
    %329 = vector.load %arg10[%c0_92, %c0_93] : memref<8x128xf32, #tpu.memory_space<vmem>>, vector<8x128xf32>
    tpu.vector_store %arg10[%c0_92, %c0_93], %320 {strides = array<i32>} : memref<8x128xf32, #tpu.memory_space<vmem>>, vector<8x128xf32>,
    %c0_94 = arith.constant 0 : index
    %c0_95 = arith.constant 0 : index
    %330 = vector.load %arg11[%c0_94, %c0_95] : memref<8x128xf32, #tpu.memory_space<vmem>>, vector<8x128xf32>
    tpu.vector_store %arg11[%c0_94, %c0_95], %313 {strides = array<i32>} : memref<8x128xf32, #tpu.memory_space<vmem>>, vector<8x128xf32>,
    return
  }
  func.func @transform_0(%arg0: i32) -> (i32, i32, i32) {
    %c0_i32 = arith.constant 0 : i32
    %c0_i32_0 = arith.constant 0 : i32
    %c0_i32_1 = arith.constant 0 : i32
    return %arg0, %c0_i32, %c0_i32_0 : i32, i32, i32
  }
  func.func @transform_1(%arg0: i32) -> (i32, i32) {
    %c0_i32 = arith.constant 0 : i32
    %c0_i32_0 = arith.constant 0 : i32
    %c0_i32_1 = arith.constant 0 : i32
    return %c0_i32, %c0_i32_0 : i32, i32
  }
  func.func @transform_2(%arg0: i32) -> (i32, i32) {
    %c0_i32 = arith.constant 0 : i32
    %c0_i32_0 = arith.constant 0 : i32
    %c0_i32_1 = arith.constant 0 : i32
    return %c0_i32, %c0_i32_0 : i32, i32
  }
  func.func @transform_3(%arg0: i32) -> (i32, i32) {
    %c0_i32 = arith.constant 0 : i32
    %c0_i32_0 = arith.constant 0 : i32
    %c0_i32_1 = arith.constant 0 : i32
    return %c0_i32, %c0_i32_0 : i32, i32
  }
  func.func @transform_4(%arg0: i32) -> (i32, i32) {
    %c0_i32 = arith.constant 0 : i32
    %c0_i32_0 = arith.constant 0 : i32
    %c0_i32_1 = arith.constant 0 : i32
    return %c0_i32, %c0_i32_0 : i32, i32
  }
  func.func @transform_5(%arg0: i32) -> (i32, i32) {
    %c0_i32 = arith.constant 0 : i32
    %c0_i32_0 = arith.constant 0 : i32
    %c0_i32_1 = arith.constant 0 : i32
    return %c0_i32, %c0_i32_0 : i32, i32
  }
  func.func @transform_6(%arg0: i32) -> (i32, i32, i32) {
    %c0_i32 = arith.constant 0 : i32
    %c0_i32_0 = arith.constant 0 : i32
    %c0_i32_1 = arith.constant 0 : i32
    return %arg0, %c0_i32, %c0_i32_0 : i32, i32, i32
  }
  func.func @transform_7(%arg0: i32) -> (i32, i32) {
    %c0_i32 = arith.constant 0 : i32
    %c0_i32_0 = arith.constant 0 : i32
    %c0_i32_1 = arith.constant 0 : i32
    return %c0_i32, %c0_i32_0 : i32, i32
  }
  func.func @transform_8(%arg0: i32) -> (i32, i32) {
    %c0_i32 = arith.constant 0 : i32
    %c0_i32_0 = arith.constant 0 : i32
    %c0_i32_1 = arith.constant 0 : i32
    return %c0_i32, %c0_i32_0 : i32, i32
  }
  func.func @transform_9(%arg0: i32) -> (i32, i32) {
    %c0_i32 = arith.constant 0 : i32
    %c0_i32_0 = arith.constant 0 : i32
    %c0_i32_1 = arith.constant 0 : i32
    return %c0_i32, %c0_i32_0 : i32, i32
  }
  func.func @transform_10(%arg0: i32) -> (i32, i32) {
    %c0_i32 = arith.constant 0 : i32
    %c0_i32_0 = arith.constant 0 : i32
    %c0_i32_1 = arith.constant 0 : i32
    return %c0_i32, %c0_i32_0 : i32, i32
  }
}

module attributes {stable_mosaic.version = 11 : i64} {
  func.func @_slstm_seq_kernel(%arg0: i32, %arg1: memref<8x8x512xf32, #tpu.memory_space<vmem>>, %arg2: memref<8x128xf32, #tpu.memory_space<vmem>>, %arg3: memref<8x128xf32, #tpu.memory_space<vmem>>, %arg4: memref<8x128xf32, #tpu.memory_space<vmem>>, %arg5: memref<8x128xf32, #tpu.memory_space<vmem>>, %arg6: memref<128x512xf32, #tpu.memory_space<vmem>>, %arg7: memref<8x8x128xf32, #tpu.memory_space<vmem>>, %arg8: memref<8x128xf32, #tpu.memory_space<vmem>>, %arg9: memref<8x128xf32, #tpu.memory_space<vmem>>, %arg10: memref<8x128xf32, #tpu.memory_space<vmem>>, %arg11: memref<8x128xf32, #tpu.memory_space<vmem>>) attributes {dimension_semantics = [#tpu.dimension_semantics<arbitrary>], iteration_bounds = array<i64: 1>, scalar_prefetch = 0 : i64, scratch_operands = 0 : i64, tpu.core_type = #tpu.core_type<tc>, window_params = [{transform_indices = @transform_0, window_bounds = array<i64: 8, 8, 512>}, {pipeline_mode = #tpu.pipeline_mode<synchronous>, transform_indices = @transform_1, window_bounds = array<i64: 8, 128>}, {pipeline_mode = #tpu.pipeline_mode<synchronous>, transform_indices = @transform_2, window_bounds = array<i64: 8, 128>}, {pipeline_mode = #tpu.pipeline_mode<synchronous>, transform_indices = @transform_3, window_bounds = array<i64: 8, 128>}, {pipeline_mode = #tpu.pipeline_mode<synchronous>, transform_indices = @transform_4, window_bounds = array<i64: 8, 128>}, {pipeline_mode = #tpu.pipeline_mode<synchronous>, transform_indices = @transform_5, window_bounds = array<i64: 128, 512>}, {transform_indices = @transform_6, window_bounds = array<i64: 8, 8, 128>}, {pipeline_mode = #tpu.pipeline_mode<synchronous>, transform_indices = @transform_7, window_bounds = array<i64: 8, 128>}, {pipeline_mode = #tpu.pipeline_mode<synchronous>, transform_indices = @transform_8, window_bounds = array<i64: 8, 128>}, {pipeline_mode = #tpu.pipeline_mode<synchronous>, transform_indices = @transform_9, window_bounds = array<i64: 8, 128>}, {pipeline_mode = #tpu.pipeline_mode<synchronous>, transform_indices = @transform_10, window_bounds = array<i64: 8, 128>}]} {
    %c0_i32 = arith.constant 0 : i32
    %0 = arith.cmpi eq, %arg0, %c0_i32 : i32
    %1 = arith.extui %0 : i1 to i32
    %c0_i32_0 = arith.constant 0 : i32
    %2 = arith.cmpi ne, %1, %c0_i32_0 : i32
    scf.if %2 {
      %c0_96 = arith.constant 0 : index
      %c0_97 = arith.constant 0 : index
      %331 = vector.load %arg2[%c0_96, %c0_97] : memref<8x128xf32, #tpu.memory_space<vmem>>, vector<8x128xf32>
      %c0_98 = arith.constant 0 : index
      %c0_99 = arith.constant 0 : index
      %332 = vector.load %arg8[%c0_98, %c0_99] : memref<8x128xf32, #tpu.memory_space<vmem>>, vector<8x128xf32>
      tpu.vector_store %arg8[%c0_98, %c0_99], %331 {strides = array<i32>} : memref<8x128xf32, #tpu.memory_space<vmem>>, vector<8x128xf32>,
      %c0_100 = arith.constant 0 : index
      %c0_101 = arith.constant 0 : index
      %333 = vector.load %arg3[%c0_100, %c0_101] : memref<8x128xf32, #tpu.memory_space<vmem>>, vector<8x128xf32>
      %c0_102 = arith.constant 0 : index
      %c0_103 = arith.constant 0 : index
      %334 = vector.load %arg9[%c0_102, %c0_103] : memref<8x128xf32, #tpu.memory_space<vmem>>, vector<8x128xf32>
      tpu.vector_store %arg9[%c0_102, %c0_103], %333 {strides = array<i32>} : memref<8x128xf32, #tpu.memory_space<vmem>>, vector<8x128xf32>,
      %c0_104 = arith.constant 0 : index
      %c0_105 = arith.constant 0 : index
      %335 = vector.load %arg4[%c0_104, %c0_105] : memref<8x128xf32, #tpu.memory_space<vmem>>, vector<8x128xf32>
      %c0_106 = arith.constant 0 : index
      %c0_107 = arith.constant 0 : index
      %336 = vector.load %arg10[%c0_106, %c0_107] : memref<8x128xf32, #tpu.memory_space<vmem>>, vector<8x128xf32>
      tpu.vector_store %arg10[%c0_106, %c0_107], %335 {strides = array<i32>} : memref<8x128xf32, #tpu.memory_space<vmem>>, vector<8x128xf32>,
      %c0_108 = arith.constant 0 : index
      %c0_109 = arith.constant 0 : index
      %337 = vector.load %arg5[%c0_108, %c0_109] : memref<8x128xf32, #tpu.memory_space<vmem>>, vector<8x128xf32>
      %c0_110 = arith.constant 0 : index
      %c0_111 = arith.constant 0 : index
      %338 = vector.load %arg11[%c0_110, %c0_111] : memref<8x128xf32, #tpu.memory_space<vmem>>, vector<8x128xf32>
      tpu.vector_store %arg11[%c0_110, %c0_111], %337 {strides = array<i32>} : memref<8x128xf32, #tpu.memory_space<vmem>>, vector<8x128xf32>,
    } else {
    }
    %c0 = arith.constant 0 : index
    %c0_1 = arith.constant 0 : index
    %3 = vector.load %arg8[%c0, %c0_1] : memref<8x128xf32, #tpu.memory_space<vmem>>, vector<8x128xf32>
    %c0_2 = arith.constant 0 : index
    %c0_3 = arith.constant 0 : index
    %4 = vector.load %arg9[%c0_2, %c0_3] : memref<8x128xf32, #tpu.memory_space<vmem>>, vector<8x128xf32>
    %c0_4 = arith.constant 0 : index
    %c0_5 = arith.constant 0 : index
    %5 = vector.load %arg10[%c0_4, %c0_5] : memref<8x128xf32, #tpu.memory_space<vmem>>, vector<8x128xf32>
    %c0_6 = arith.constant 0 : index
    %c0_7 = arith.constant 0 : index
    %6 = vector.load %arg11[%c0_6, %c0_7] : memref<8x128xf32, #tpu.memory_space<vmem>>, vector<8x128xf32>
    %c0_i32_8 = arith.constant 0 : i32
    %7 = arith.index_cast %c0_i32_8 : i32 to index
    %c0_9 = arith.constant 0 : index
    %c0_10 = arith.constant 0 : index
    %8 = vector.load %arg1[%7, %c0_9, %c0_10] : memref<8x8x512xf32, #tpu.memory_space<vmem>>, vector<1x8x512xf32>
    %9 = vector.shape_cast %8 : vector<1x8x512xf32> to vector<8x512xf32>
    %c0_11 = arith.constant 0 : index
    %c0_12 = arith.constant 0 : index
    %10 = vector.load %arg6[%c0_11, %c0_12] : memref<128x512xf32, #tpu.memory_space<vmem>>, vector<128x512xf32>
    %cst = arith.constant dense<0.000000e+00> : vector<8x512xf32>
    %11 = tpu.matmul %3, %10, %cst {dimension_numbers = #tpu.dot_dimension_numbers<[1], [0], [0], [1], [0, 0, 1, 1], [], []>} : vector<8x128xf32>, vector<128x512xf32>, vector<8x512xf32> -> vector<8x512xf32>
    %12 = arith.addf %9, %11 : vector<8x512xf32>
    %13 = vector.extract_strided_slice %12 {offsets = [0, 0], sizes = [8, 128], strides = [1, 1]} : vector<8x512xf32> to vector<8x128xf32>
    %14 = vector.extract_strided_slice %12 {offsets = [0, 128], sizes = [8, 128], strides = [1, 1]} : vector<8x512xf32> to vector<8x128xf32>
    %15 = vector.extract_strided_slice %12 {offsets = [0, 256], sizes = [8, 128], strides = [1, 1]} : vector<8x512xf32> to vector<8x128xf32>
    %16 = vector.extract_strided_slice %12 {offsets = [0, 384], sizes = [8, 128], strides = [1, 1]} : vector<8x512xf32> to vector<8x128xf32>
    %17 = math.tanh %13 : vector<8x128xf32>
    %18 = arith.negf %16 : vector<8x128xf32>
    %19 = math.exp %18 : vector<8x128xf32>
    %cst_13 = arith.constant 1.000000e+00 : f32
    %20 = vector.broadcast %cst_13 : f32 to vector<8x128xf32>
    %21 = arith.addf %20, %19 : vector<8x128xf32>
    %22 = arith.divf %20, %21 : vector<8x128xf32>
    %cst_14 = arith.constant 0.000000e+00 : f32
    %23 = vector.broadcast %cst_14 : f32 to vector<8x128xf32>
    %24 = arith.minimumf %15, %23 : vector<8x128xf32>
    %25 = math.absf %15 : vector<8x128xf32>
    %cst_15 = arith.constant 0.000000e+00 : f32
    %26 = vector.broadcast %cst_15 : f32 to vector<8x128xf32>
    %27 = arith.subf %26, %25 : vector<8x128xf32>
    %28 = math.exp %27 : vector<8x128xf32>
    %29 = math.log1p %28 : vector<8x128xf32>
    %30 = arith.subf %24, %29 : vector<8x128xf32>
    %31 = math.exp %30 : vector<8x128xf32>
    %32 = arith.addf %30, %6 : vector<8x128xf32>
    %33 = arith.maximumf %32, %14 : vector<8x128xf32>
    %34 = arith.subf %14, %33 : vector<8x128xf32>
    %35 = math.exp %34 : vector<8x128xf32>
    %36 = arith.mulf %31, %4 : vector<8x128xf32>
    %37 = arith.mulf %35, %17 : vector<8x128xf32>
    %38 = arith.addf %36, %37 : vector<8x128xf32>
    %39 = arith.mulf %31, %5 : vector<8x128xf32>
    %40 = arith.addf %39, %35 : vector<8x128xf32>
    %41 = arith.divf %38, %40 : vector<8x128xf32>
    %42 = arith.mulf %22, %41 : vector<8x128xf32>
    %43 = arith.index_cast %c0_i32_8 : i32 to index
    %c0_16 = arith.constant 0 : index
    %c0_17 = arith.constant 0 : index
    %44 = vector.load %arg7[%43, %c0_16, %c0_17] : memref<8x8x128xf32, #tpu.memory_space<vmem>>, vector<1x8x128xf32>
    %45 = vector.shape_cast %44 : vector<1x8x128xf32> to vector<8x128xf32>
    %46 = vector.shape_cast %42 : vector<8x128xf32> to vector<1x8x128xf32>
    tpu.vector_store %arg7[%43, %c0_16, %c0_17], %46 {strides = array<i32>} : memref<8x8x128xf32, #tpu.memory_space<vmem>>, vector<1x8x128xf32>,
    %c1_i32 = arith.constant 1 : i32
    %47 = arith.index_cast %c1_i32 : i32 to index
    %c0_18 = arith.constant 0 : index
    %c0_19 = arith.constant 0 : index
    %48 = vector.load %arg1[%47, %c0_18, %c0_19] : memref<8x8x512xf32, #tpu.memory_space<vmem>>, vector<1x8x512xf32>
    %49 = vector.shape_cast %48 : vector<1x8x512xf32> to vector<8x512xf32>
    %c0_20 = arith.constant 0 : index
    %c0_21 = arith.constant 0 : index
    %50 = vector.load %arg6[%c0_20, %c0_21] : memref<128x512xf32, #tpu.memory_space<vmem>>, vector<128x512xf32>
    %cst_22 = arith.constant dense<0.000000e+00> : vector<8x512xf32>
    %51 = tpu.matmul %42, %50, %cst_22 {dimension_numbers = #tpu.dot_dimension_numbers<[1], [0], [0], [1], [0, 0, 1, 1], [], []>} : vector<8x128xf32>, vector<128x512xf32>, vector<8x512xf32> -> vector<8x512xf32>
    %52 = arith.addf %49, %51 : vector<8x512xf32>
    %53 = vector.extract_strided_slice %52 {offsets = [0, 0], sizes = [8, 128], strides = [1, 1]} : vector<8x512xf32> to vector<8x128xf32>
    %54 = vector.extract_strided_slice %52 {offsets = [0, 128], sizes = [8, 128], strides = [1, 1]} : vector<8x512xf32> to vector<8x128xf32>
    %55 = vector.extract_strided_slice %52 {offsets = [0, 256], sizes = [8, 128], strides = [1, 1]} : vector<8x512xf32> to vector<8x128xf32>
    %56 = vector.extract_strided_slice %52 {offsets = [0, 384], sizes = [8, 128], strides = [1, 1]} : vector<8x512xf32> to vector<8x128xf32>
    %57 = math.tanh %53 : vector<8x128xf32>
    %58 = arith.negf %56 : vector<8x128xf32>
    %59 = math.exp %58 : vector<8x128xf32>
    %cst_23 = arith.constant 1.000000e+00 : f32
    %60 = vector.broadcast %cst_23 : f32 to vector<8x128xf32>
    %61 = arith.addf %60, %59 : vector<8x128xf32>
    %62 = arith.divf %60, %61 : vector<8x128xf32>
    %cst_24 = arith.constant 0.000000e+00 : f32
    %63 = vector.broadcast %cst_24 : f32 to vector<8x128xf32>
    %64 = arith.minimumf %55, %63 : vector<8x128xf32>
    %65 = math.absf %55 : vector<8x128xf32>
    %cst_25 = arith.constant 0.000000e+00 : f32
    %66 = vector.broadcast %cst_25 : f32 to vector<8x128xf32>
    %67 = arith.subf %66, %65 : vector<8x128xf32>
    %68 = math.exp %67 : vector<8x128xf32>
    %69 = math.log1p %68 : vector<8x128xf32>
    %70 = arith.subf %64, %69 : vector<8x128xf32>
    %71 = math.exp %70 : vector<8x128xf32>
    %72 = arith.addf %70, %33 : vector<8x128xf32>
    %73 = arith.maximumf %72, %54 : vector<8x128xf32>
    %74 = arith.subf %54, %73 : vector<8x128xf32>
    %75 = math.exp %74 : vector<8x128xf32>
    %76 = arith.mulf %71, %38 : vector<8x128xf32>
    %77 = arith.mulf %75, %57 : vector<8x128xf32>
    %78 = arith.addf %76, %77 : vector<8x128xf32>
    %79 = arith.mulf %71, %40 : vector<8x128xf32>
    %80 = arith.addf %79, %75 : vector<8x128xf32>
    %81 = arith.divf %78, %80 : vector<8x128xf32>
    %82 = arith.mulf %62, %81 : vector<8x128xf32>
    %83 = arith.index_cast %c1_i32 : i32 to index
    %c0_26 = arith.constant 0 : index
    %c0_27 = arith.constant 0 : index
    %84 = vector.load %arg7[%83, %c0_26, %c0_27] : memref<8x8x128xf32, #tpu.memory_space<vmem>>, vector<1x8x128xf32>
    %85 = vector.shape_cast %84 : vector<1x8x128xf32> to vector<8x128xf32>
    %86 = vector.shape_cast %82 : vector<8x128xf32> to vector<1x8x128xf32>
    tpu.vector_store %arg7[%83, %c0_26, %c0_27], %86 {strides = array<i32>} : memref<8x8x128xf32, #tpu.memory_space<vmem>>, vector<1x8x128xf32>,
    %c2_i32 = arith.constant 2 : i32
    %87 = arith.index_cast %c2_i32 : i32 to index
    %c0_28 = arith.constant 0 : index
    %c0_29 = arith.constant 0 : index
    %88 = vector.load %arg1[%87, %c0_28, %c0_29] : memref<8x8x512xf32, #tpu.memory_space<vmem>>, vector<1x8x512xf32>
    %89 = vector.shape_cast %88 : vector<1x8x512xf32> to vector<8x512xf32>
    %c0_30 = arith.constant 0 : index
    %c0_31 = arith.constant 0 : index
    %90 = vector.load %arg6[%c0_30, %c0_31] : memref<128x512xf32, #tpu.memory_space<vmem>>, vector<128x512xf32>
    %cst_32 = arith.constant dense<0.000000e+00> : vector<8x512xf32>
    %91 = tpu.matmul %82, %90, %cst_32 {dimension_numbers = #tpu.dot_dimension_numbers<[1], [0], [0], [1], [0, 0, 1, 1], [], []>} : vector<8x128xf32>, vector<128x512xf32>, vector<8x512xf32> -> vector<8x512xf32>
    %92 = arith.addf %89, %91 : vector<8x512xf32>
    %93 = vector.extract_strided_slice %92 {offsets = [0, 0], sizes = [8, 128], strides = [1, 1]} : vector<8x512xf32> to vector<8x128xf32>
    %94 = vector.extract_strided_slice %92 {offsets = [0, 128], sizes = [8, 128], strides = [1, 1]} : vector<8x512xf32> to vector<8x128xf32>
    %95 = vector.extract_strided_slice %92 {offsets = [0, 256], sizes = [8, 128], strides = [1, 1]} : vector<8x512xf32> to vector<8x128xf32>
    %96 = vector.extract_strided_slice %92 {offsets = [0, 384], sizes = [8, 128], strides = [1, 1]} : vector<8x512xf32> to vector<8x128xf32>
    %97 = math.tanh %93 : vector<8x128xf32>
    %98 = arith.negf %96 : vector<8x128xf32>
    %99 = math.exp %98 : vector<8x128xf32>
    %cst_33 = arith.constant 1.000000e+00 : f32
    %100 = vector.broadcast %cst_33 : f32 to vector<8x128xf32>
    %101 = arith.addf %100, %99 : vector<8x128xf32>
    %102 = arith.divf %100, %101 : vector<8x128xf32>
    %cst_34 = arith.constant 0.000000e+00 : f32
    %103 = vector.broadcast %cst_34 : f32 to vector<8x128xf32>
    %104 = arith.minimumf %95, %103 : vector<8x128xf32>
    %105 = math.absf %95 : vector<8x128xf32>
    %cst_35 = arith.constant 0.000000e+00 : f32
    %106 = vector.broadcast %cst_35 : f32 to vector<8x128xf32>
    %107 = arith.subf %106, %105 : vector<8x128xf32>
    %108 = math.exp %107 : vector<8x128xf32>
    %109 = math.log1p %108 : vector<8x128xf32>
    %110 = arith.subf %104, %109 : vector<8x128xf32>
    %111 = math.exp %110 : vector<8x128xf32>
    %112 = arith.addf %110, %73 : vector<8x128xf32>
    %113 = arith.maximumf %112, %94 : vector<8x128xf32>
    %114 = arith.subf %94, %113 : vector<8x128xf32>
    %115 = math.exp %114 : vector<8x128xf32>
    %116 = arith.mulf %111, %78 : vector<8x128xf32>
    %117 = arith.mulf %115, %97 : vector<8x128xf32>
    %118 = arith.addf %116, %117 : vector<8x128xf32>
    %119 = arith.mulf %111, %80 : vector<8x128xf32>
    %120 = arith.addf %119, %115 : vector<8x128xf32>
    %121 = arith.divf %118, %120 : vector<8x128xf32>
    %122 = arith.mulf %102, %121 : vector<8x128xf32>
    %123 = arith.index_cast %c2_i32 : i32 to index
    %c0_36 = arith.constant 0 : index
    %c0_37 = arith.constant 0 : index
    %124 = vector.load %arg7[%123, %c0_36, %c0_37] : memref<8x8x128xf32, #tpu.memory_space<vmem>>, vector<1x8x128xf32>
    %125 = vector.shape_cast %124 : vector<1x8x128xf32> to vector<8x128xf32>
    %126 = vector.shape_cast %122 : vector<8x128xf32> to vector<1x8x128xf32>
    tpu.vector_store %arg7[%123, %c0_36, %c0_37], %126 {strides = array<i32>} : memref<8x8x128xf32, #tpu.memory_space<vmem>>, vector<1x8x128xf32>,
    %c3_i32 = arith.constant 3 : i32
    %127 = arith.index_cast %c3_i32 : i32 to index
    %c0_38 = arith.constant 0 : index
    %c0_39 = arith.constant 0 : index
    %128 = vector.load %arg1[%127, %c0_38, %c0_39] : memref<8x8x512xf32, #tpu.memory_space<vmem>>, vector<1x8x512xf32>
    %129 = vector.shape_cast %128 : vector<1x8x512xf32> to vector<8x512xf32>
    %c0_40 = arith.constant 0 : index
    %c0_41 = arith.constant 0 : index
    %130 = vector.load %arg6[%c0_40, %c0_41] : memref<128x512xf32, #tpu.memory_space<vmem>>, vector<128x512xf32>
    %cst_42 = arith.constant dense<0.000000e+00> : vector<8x512xf32>
    %131 = tpu.matmul %122, %130, %cst_42 {dimension_numbers = #tpu.dot_dimension_numbers<[1], [0], [0], [1], [0, 0, 1, 1], [], []>} : vector<8x128xf32>, vector<128x512xf32>, vector<8x512xf32> -> vector<8x512xf32>
    %132 = arith.addf %129, %131 : vector<8x512xf32>
    %133 = vector.extract_strided_slice %132 {offsets = [0, 0], sizes = [8, 128], strides = [1, 1]} : vector<8x512xf32> to vector<8x128xf32>
    %134 = vector.extract_strided_slice %132 {offsets = [0, 128], sizes = [8, 128], strides = [1, 1]} : vector<8x512xf32> to vector<8x128xf32>
    %135 = vector.extract_strided_slice %132 {offsets = [0, 256], sizes = [8, 128], strides = [1, 1]} : vector<8x512xf32> to vector<8x128xf32>
    %136 = vector.extract_strided_slice %132 {offsets = [0, 384], sizes = [8, 128], strides = [1, 1]} : vector<8x512xf32> to vector<8x128xf32>
    %137 = math.tanh %133 : vector<8x128xf32>
    %138 = arith.negf %136 : vector<8x128xf32>
    %139 = math.exp %138 : vector<8x128xf32>
    %cst_43 = arith.constant 1.000000e+00 : f32
    %140 = vector.broadcast %cst_43 : f32 to vector<8x128xf32>
    %141 = arith.addf %140, %139 : vector<8x128xf32>
    %142 = arith.divf %140, %141 : vector<8x128xf32>
    %cst_44 = arith.constant 0.000000e+00 : f32
    %143 = vector.broadcast %cst_44 : f32 to vector<8x128xf32>
    %144 = arith.minimumf %135, %143 : vector<8x128xf32>
    %145 = math.absf %135 : vector<8x128xf32>
    %cst_45 = arith.constant 0.000000e+00 : f32
    %146 = vector.broadcast %cst_45 : f32 to vector<8x128xf32>
    %147 = arith.subf %146, %145 : vector<8x128xf32>
    %148 = math.exp %147 : vector<8x128xf32>
    %149 = math.log1p %148 : vector<8x128xf32>
    %150 = arith.subf %144, %149 : vector<8x128xf32>
    %151 = math.exp %150 : vector<8x128xf32>
    %152 = arith.addf %150, %113 : vector<8x128xf32>
    %153 = arith.maximumf %152, %134 : vector<8x128xf32>
    %154 = arith.subf %134, %153 : vector<8x128xf32>
    %155 = math.exp %154 : vector<8x128xf32>
    %156 = arith.mulf %151, %118 : vector<8x128xf32>
    %157 = arith.mulf %155, %137 : vector<8x128xf32>
    %158 = arith.addf %156, %157 : vector<8x128xf32>
    %159 = arith.mulf %151, %120 : vector<8x128xf32>
    %160 = arith.addf %159, %155 : vector<8x128xf32>
    %161 = arith.divf %158, %160 : vector<8x128xf32>
    %162 = arith.mulf %142, %161 : vector<8x128xf32>
    %163 = arith.index_cast %c3_i32 : i32 to index
    %c0_46 = arith.constant 0 : index
    %c0_47 = arith.constant 0 : index
    %164 = vector.load %arg7[%163, %c0_46, %c0_47] : memref<8x8x128xf32, #tpu.memory_space<vmem>>, vector<1x8x128xf32>
    %165 = vector.shape_cast %164 : vector<1x8x128xf32> to vector<8x128xf32>
    %166 = vector.shape_cast %162 : vector<8x128xf32> to vector<1x8x128xf32>
    tpu.vector_store %arg7[%163, %c0_46, %c0_47], %166 {strides = array<i32>} : memref<8x8x128xf32, #tpu.memory_space<vmem>>, vector<1x8x128xf32>,
    %c4_i32 = arith.constant 4 : i32
    %167 = arith.index_cast %c4_i32 : i32 to index
    %c0_48 = arith.constant 0 : index
    %c0_49 = arith.constant 0 : index
    %168 = vector.load %arg1[%167, %c0_48, %c0_49] : memref<8x8x512xf32, #tpu.memory_space<vmem>>, vector<1x8x512xf32>
    %169 = vector.shape_cast %168 : vector<1x8x512xf32> to vector<8x512xf32>
    %c0_50 = arith.constant 0 : index
    %c0_51 = arith.constant 0 : index
    %170 = vector.load %arg6[%c0_50, %c0_51] : memref<128x512xf32, #tpu.memory_space<vmem>>, vector<128x512xf32>
    %cst_52 = arith.constant dense<0.000000e+00> : vector<8x512xf32>
    %171 = tpu.matmul %162, %170, %cst_52 {dimension_numbers = #tpu.dot_dimension_numbers<[1], [0], [0], [1], [0, 0, 1, 1], [], []>} : vector<8x128xf32>, vector<128x512xf32>, vector<8x512xf32> -> vector<8x512xf32>
    %172 = arith.addf %169, %171 : vector<8x512xf32>
    %173 = vector.extract_strided_slice %172 {offsets = [0, 0], sizes = [8, 128], strides = [1, 1]} : vector<8x512xf32> to vector<8x128xf32>
    %174 = vector.extract_strided_slice %172 {offsets = [0, 128], sizes = [8, 128], strides = [1, 1]} : vector<8x512xf32> to vector<8x128xf32>
    %175 = vector.extract_strided_slice %172 {offsets = [0, 256], sizes = [8, 128], strides = [1, 1]} : vector<8x512xf32> to vector<8x128xf32>
    %176 = vector.extract_strided_slice %172 {offsets = [0, 384], sizes = [8, 128], strides = [1, 1]} : vector<8x512xf32> to vector<8x128xf32>
    %177 = math.tanh %173 : vector<8x128xf32>
    %178 = arith.negf %176 : vector<8x128xf32>
    %179 = math.exp %178 : vector<8x128xf32>
    %cst_53 = arith.constant 1.000000e+00 : f32
    %180 = vector.broadcast %cst_53 : f32 to vector<8x128xf32>
    %181 = arith.addf %180, %179 : vector<8x128xf32>
    %182 = arith.divf %180, %181 : vector<8x128xf32>
    %cst_54 = arith.constant 0.000000e+00 : f32
    %183 = vector.broadcast %cst_54 : f32 to vector<8x128xf32>
    %184 = arith.minimumf %175, %183 : vector<8x128xf32>
    %185 = math.absf %175 : vector<8x128xf32>
    %cst_55 = arith.constant 0.000000e+00 : f32
    %186 = vector.broadcast %cst_55 : f32 to vector<8x128xf32>
    %187 = arith.subf %186, %185 : vector<8x128xf32>
    %188 = math.exp %187 : vector<8x128xf32>
    %189 = math.log1p %188 : vector<8x128xf32>
    %190 = arith.subf %184, %189 : vector<8x128xf32>
    %191 = math.exp %190 : vector<8x128xf32>
    %192 = arith.addf %190, %153 : vector<8x128xf32>
    %193 = arith.maximumf %192, %174 : vector<8x128xf32>
    %194 = arith.subf %174, %193 : vector<8x128xf32>
    %195 = math.exp %194 : vector<8x128xf32>
    %196 = arith.mulf %191, %158 : vector<8x128xf32>
    %197 = arith.mulf %195, %177 : vector<8x128xf32>
    %198 = arith.addf %196, %197 : vector<8x128xf32>
    %199 = arith.mulf %191, %160 : vector<8x128xf32>
    %200 = arith.addf %199, %195 : vector<8x128xf32>
    %201 = arith.divf %198, %200 : vector<8x128xf32>
    %202 = arith.mulf %182, %201 : vector<8x128xf32>
    %203 = arith.index_cast %c4_i32 : i32 to index
    %c0_56 = arith.constant 0 : index
    %c0_57 = arith.constant 0 : index
    %204 = vector.load %arg7[%203, %c0_56, %c0_57] : memref<8x8x128xf32, #tpu.memory_space<vmem>>, vector<1x8x128xf32>
    %205 = vector.shape_cast %204 : vector<1x8x128xf32> to vector<8x128xf32>
    %206 = vector.shape_cast %202 : vector<8x128xf32> to vector<1x8x128xf32>
    tpu.vector_store %arg7[%203, %c0_56, %c0_57], %206 {strides = array<i32>} : memref<8x8x128xf32, #tpu.memory_space<vmem>>, vector<1x8x128xf32>,
    %c5_i32 = arith.constant 5 : i32
    %207 = arith.index_cast %c5_i32 : i32 to index
    %c0_58 = arith.constant 0 : index
    %c0_59 = arith.constant 0 : index
    %208 = vector.load %arg1[%207, %c0_58, %c0_59] : memref<8x8x512xf32, #tpu.memory_space<vmem>>, vector<1x8x512xf32>
    %209 = vector.shape_cast %208 : vector<1x8x512xf32> to vector<8x512xf32>
    %c0_60 = arith.constant 0 : index
    %c0_61 = arith.constant 0 : index
    %210 = vector.load %arg6[%c0_60, %c0_61] : memref<128x512xf32, #tpu.memory_space<vmem>>, vector<128x512xf32>
    %cst_62 = arith.constant dense<0.000000e+00> : vector<8x512xf32>
    %211 = tpu.matmul %202, %210, %cst_62 {dimension_numbers = #tpu.dot_dimension_numbers<[1], [0], [0], [1], [0, 0, 1, 1], [], []>} : vector<8x128xf32>, vector<128x512xf32>, vector<8x512xf32> -> vector<8x512xf32>
    %212 = arith.addf %209, %211 : vector<8x512xf32>
    %213 = vector.extract_strided_slice %212 {offsets = [0, 0], sizes = [8, 128], strides = [1, 1]} : vector<8x512xf32> to vector<8x128xf32>
    %214 = vector.extract_strided_slice %212 {offsets = [0, 128], sizes = [8, 128], strides = [1, 1]} : vector<8x512xf32> to vector<8x128xf32>
    %215 = vector.extract_strided_slice %212 {offsets = [0, 256], sizes = [8, 128], strides = [1, 1]} : vector<8x512xf32> to vector<8x128xf32>
    %216 = vector.extract_strided_slice %212 {offsets = [0, 384], sizes = [8, 128], strides = [1, 1]} : vector<8x512xf32> to vector<8x128xf32>
    %217 = math.tanh %213 : vector<8x128xf32>
    %218 = arith.negf %216 : vector<8x128xf32>
    %219 = math.exp %218 : vector<8x128xf32>
    %cst_63 = arith.constant 1.000000e+00 : f32
    %220 = vector.broadcast %cst_63 : f32 to vector<8x128xf32>
    %221 = arith.addf %220, %219 : vector<8x128xf32>
    %222 = arith.divf %220, %221 : vector<8x128xf32>
    %cst_64 = arith.constant 0.000000e+00 : f32
    %223 = vector.broadcast %cst_64 : f32 to vector<8x128xf32>
    %224 = arith.minimumf %215, %223 : vector<8x128xf32>
    %225 = math.absf %215 : vector<8x128xf32>
    %cst_65 = arith.constant 0.000000e+00 : f32
    %226 = vector.broadcast %cst_65 : f32 to vector<8x128xf32>
    %227 = arith.subf %226, %225 : vector<8x128xf32>
    %228 = math.exp %227 : vector<8x128xf32>
    %229 = math.log1p %228 : vector<8x128xf32>
    %230 = arith.subf %224, %229 : vector<8x128xf32>
    %231 = math.exp %230 : vector<8x128xf32>
    %232 = arith.addf %230, %193 : vector<8x128xf32>
    %233 = arith.maximumf %232, %214 : vector<8x128xf32>
    %234 = arith.subf %214, %233 : vector<8x128xf32>
    %235 = math.exp %234 : vector<8x128xf32>
    %236 = arith.mulf %231, %198 : vector<8x128xf32>
    %237 = arith.mulf %235, %217 : vector<8x128xf32>
    %238 = arith.addf %236, %237 : vector<8x128xf32>
    %239 = arith.mulf %231, %200 : vector<8x128xf32>
    %240 = arith.addf %239, %235 : vector<8x128xf32>
    %241 = arith.divf %238, %240 : vector<8x128xf32>
    %242 = arith.mulf %222, %241 : vector<8x128xf32>
    %243 = arith.index_cast %c5_i32 : i32 to index
    %c0_66 = arith.constant 0 : index
    %c0_67 = arith.constant 0 : index
    %244 = vector.load %arg7[%243, %c0_66, %c0_67] : memref<8x8x128xf32, #tpu.memory_space<vmem>>, vector<1x8x128xf32>
    %245 = vector.shape_cast %244 : vector<1x8x128xf32> to vector<8x128xf32>
    %246 = vector.shape_cast %242 : vector<8x128xf32> to vector<1x8x128xf32>
    tpu.vector_store %arg7[%243, %c0_66, %c0_67], %246 {strides = array<i32>} : memref<8x8x128xf32, #tpu.memory_space<vmem>>, vector<1x8x128xf32>,
    %c6_i32 = arith.constant 6 : i32
    %247 = arith.index_cast %c6_i32 : i32 to index
    %c0_68 = arith.constant 0 : index
    %c0_69 = arith.constant 0 : index
    %248 = vector.load %arg1[%247, %c0_68, %c0_69] : memref<8x8x512xf32, #tpu.memory_space<vmem>>, vector<1x8x512xf32>
    %249 = vector.shape_cast %248 : vector<1x8x512xf32> to vector<8x512xf32>
    %c0_70 = arith.constant 0 : index
    %c0_71 = arith.constant 0 : index
    %250 = vector.load %arg6[%c0_70, %c0_71] : memref<128x512xf32, #tpu.memory_space<vmem>>, vector<128x512xf32>
    %cst_72 = arith.constant dense<0.000000e+00> : vector<8x512xf32>
    %251 = tpu.matmul %242, %250, %cst_72 {dimension_numbers = #tpu.dot_dimension_numbers<[1], [0], [0], [1], [0, 0, 1, 1], [], []>} : vector<8x128xf32>, vector<128x512xf32>, vector<8x512xf32> -> vector<8x512xf32>
    %252 = arith.addf %249, %251 : vector<8x512xf32>
    %253 = vector.extract_strided_slice %252 {offsets = [0, 0], sizes = [8, 128], strides = [1, 1]} : vector<8x512xf32> to vector<8x128xf32>
    %254 = vector.extract_strided_slice %252 {offsets = [0, 128], sizes = [8, 128], strides = [1, 1]} : vector<8x512xf32> to vector<8x128xf32>
    %255 = vector.extract_strided_slice %252 {offsets = [0, 256], sizes = [8, 128], strides = [1, 1]} : vector<8x512xf32> to vector<8x128xf32>
    %256 = vector.extract_strided_slice %252 {offsets = [0, 384], sizes = [8, 128], strides = [1, 1]} : vector<8x512xf32> to vector<8x128xf32>
    %257 = math.tanh %253 : vector<8x128xf32>
    %258 = arith.negf %256 : vector<8x128xf32>
    %259 = math.exp %258 : vector<8x128xf32>
    %cst_73 = arith.constant 1.000000e+00 : f32
    %260 = vector.broadcast %cst_73 : f32 to vector<8x128xf32>
    %261 = arith.addf %260, %259 : vector<8x128xf32>
    %262 = arith.divf %260, %261 : vector<8x128xf32>
    %cst_74 = arith.constant 0.000000e+00 : f32
    %263 = vector.broadcast %cst_74 : f32 to vector<8x128xf32>
    %264 = arith.minimumf %255, %263 : vector<8x128xf32>
    %265 = math.absf %255 : vector<8x128xf32>
    %cst_75 = arith.constant 0.000000e+00 : f32
    %266 = vector.broadcast %cst_75 : f32 to vector<8x128xf32>
    %267 = arith.subf %266, %265 : vector<8x128xf32>
    %268 = math.exp %267 : vector<8x128xf32>
    %269 = math.log1p %268 : vector<8x128xf32>
    %270 = arith.subf %264, %269 : vector<8x128xf32>
    %271 = math.exp %270 : vector<8x128xf32>
    %272 = arith.addf %270, %233 : vector<8x128xf32>
    %273 = arith.maximumf %272, %254 : vector<8x128xf32>
    %274 = arith.subf %254, %273 : vector<8x128xf32>
    %275 = math.exp %274 : vector<8x128xf32>
    %276 = arith.mulf %271, %238 : vector<8x128xf32>
    %277 = arith.mulf %275, %257 : vector<8x128xf32>
    %278 = arith.addf %276, %277 : vector<8x128xf32>
    %279 = arith.mulf %271, %240 : vector<8x128xf32>
    %280 = arith.addf %279, %275 : vector<8x128xf32>
    %281 = arith.divf %278, %280 : vector<8x128xf32>
    %282 = arith.mulf %262, %281 : vector<8x128xf32>
    %283 = arith.index_cast %c6_i32 : i32 to index
    %c0_76 = arith.constant 0 : index
    %c0_77 = arith.constant 0 : index
    %284 = vector.load %arg7[%283, %c0_76, %c0_77] : memref<8x8x128xf32, #tpu.memory_space<vmem>>, vector<1x8x128xf32>
    %285 = vector.shape_cast %284 : vector<1x8x128xf32> to vector<8x128xf32>
    %286 = vector.shape_cast %282 : vector<8x128xf32> to vector<1x8x128xf32>
    tpu.vector_store %arg7[%283, %c0_76, %c0_77], %286 {strides = array<i32>} : memref<8x8x128xf32, #tpu.memory_space<vmem>>, vector<1x8x128xf32>,
    %c7_i32 = arith.constant 7 : i32
    %287 = arith.index_cast %c7_i32 : i32 to index
    %c0_78 = arith.constant 0 : index
    %c0_79 = arith.constant 0 : index
    %288 = vector.load %arg1[%287, %c0_78, %c0_79] : memref<8x8x512xf32, #tpu.memory_space<vmem>>, vector<1x8x512xf32>
    %289 = vector.shape_cast %288 : vector<1x8x512xf32> to vector<8x512xf32>
    %c0_80 = arith.constant 0 : index
    %c0_81 = arith.constant 0 : index
    %290 = vector.load %arg6[%c0_80, %c0_81] : memref<128x512xf32, #tpu.memory_space<vmem>>, vector<128x512xf32>
    %cst_82 = arith.constant dense<0.000000e+00> : vector<8x512xf32>
    %291 = tpu.matmul %282, %290, %cst_82 {dimension_numbers = #tpu.dot_dimension_numbers<[1], [0], [0], [1], [0, 0, 1, 1], [], []>} : vector<8x128xf32>, vector<128x512xf32>, vector<8x512xf32> -> vector<8x512xf32>
    %292 = arith.addf %289, %291 : vector<8x512xf32>
    %293 = vector.extract_strided_slice %292 {offsets = [0, 0], sizes = [8, 128], strides = [1, 1]} : vector<8x512xf32> to vector<8x128xf32>
    %294 = vector.extract_strided_slice %292 {offsets = [0, 128], sizes = [8, 128], strides = [1, 1]} : vector<8x512xf32> to vector<8x128xf32>
    %295 = vector.extract_strided_slice %292 {offsets = [0, 256], sizes = [8, 128], strides = [1, 1]} : vector<8x512xf32> to vector<8x128xf32>
    %296 = vector.extract_strided_slice %292 {offsets = [0, 384], sizes = [8, 128], strides = [1, 1]} : vector<8x512xf32> to vector<8x128xf32>
    %297 = math.tanh %293 : vector<8x128xf32>
    %298 = arith.negf %296 : vector<8x128xf32>
    %299 = math.exp %298 : vector<8x128xf32>
    %cst_83 = arith.constant 1.000000e+00 : f32
    %300 = vector.broadcast %cst_83 : f32 to vector<8x128xf32>
    %301 = arith.addf %300, %299 : vector<8x128xf32>
    %302 = arith.divf %300, %301 : vector<8x128xf32>
    %cst_84 = arith.constant 0.000000e+00 : f32
    %303 = vector.broadcast %cst_84 : f32 to vector<8x128xf32>
    %304 = arith.minimumf %295, %303 : vector<8x128xf32>
    %305 = math.absf %295 : vector<8x128xf32>
    %cst_85 = arith.constant 0.000000e+00 : f32
    %306 = vector.broadcast %cst_85 : f32 to vector<8x128xf32>
    %307 = arith.subf %306, %305 : vector<8x128xf32>
    %308 = math.exp %307 : vector<8x128xf32>
    %309 = math.log1p %308 : vector<8x128xf32>
    %310 = arith.subf %304, %309 : vector<8x128xf32>
    %311 = math.exp %310 : vector<8x128xf32>
    %312 = arith.addf %310, %273 : vector<8x128xf32>
    %313 = arith.maximumf %312, %294 : vector<8x128xf32>
    %314 = arith.subf %294, %313 : vector<8x128xf32>
    %315 = math.exp %314 : vector<8x128xf32>
    %316 = arith.mulf %311, %278 : vector<8x128xf32>
    %317 = arith.mulf %315, %297 : vector<8x128xf32>
    %318 = arith.addf %316, %317 : vector<8x128xf32>
    %319 = arith.mulf %311, %280 : vector<8x128xf32>
    %320 = arith.addf %319, %315 : vector<8x128xf32>
    %321 = arith.divf %318, %320 : vector<8x128xf32>
    %322 = arith.mulf %302, %321 : vector<8x128xf32>
    %323 = arith.index_cast %c7_i32 : i32 to index
    %c0_86 = arith.constant 0 : index
    %c0_87 = arith.constant 0 : index
    %324 = vector.load %arg7[%323, %c0_86, %c0_87] : memref<8x8x128xf32, #tpu.memory_space<vmem>>, vector<1x8x128xf32>
    %325 = vector.shape_cast %324 : vector<1x8x128xf32> to vector<8x128xf32>
    %326 = vector.shape_cast %322 : vector<8x128xf32> to vector<1x8x128xf32>
    tpu.vector_store %arg7[%323, %c0_86, %c0_87], %326 {strides = array<i32>} : memref<8x8x128xf32, #tpu.memory_space<vmem>>, vector<1x8x128xf32>,
    %c8_i32 = arith.constant 8 : i32
    %c0_88 = arith.constant 0 : index
    %c0_89 = arith.constant 0 : index
    %327 = vector.load %arg8[%c0_88, %c0_89] : memref<8x128xf32, #tpu.memory_space<vmem>>, vector<8x128xf32>
    tpu.vector_store %arg8[%c0_88, %c0_89], %322 {strides = array<i32>} : memref<8x128xf32, #tpu.memory_space<vmem>>, vector<8x128xf32>,
    %c0_90 = arith.constant 0 : index
    %c0_91 = arith.constant 0 : index
    %328 = vector.load %arg9[%c0_90, %c0_91] : memref<8x128xf32, #tpu.memory_space<vmem>>, vector<8x128xf32>
    tpu.vector_store %arg9[%c0_90, %c0_91], %318 {strides = array<i32>} : memref<8x128xf32, #tpu.memory_space<vmem>>, vector<8x128xf32>,
    %c0_92 = arith.constant 0 : index
    %c0_93 = arith.constant 0 : index
    %329 = vector.load %arg10[%c0_92, %c0_93] : memref<8x128xf32, #tpu.memory_space<vmem>>, vector<8x128xf32>
    tpu.vector_store %arg10[%c0_92, %c0_93], %320 {strides = array<i32>} : memref<8x128xf32, #tpu.memory_space<vmem>>, vector<8x128xf32>,
    %c0_94 = arith.constant 0 : index
    %c0_95 = arith.constant 0 : index
    %330 = vector.load %arg11[%c0_94, %c0_95] : memref<8x128xf32, #tpu.memory_space<vmem>>, vector<8x128xf32>
    tpu.vector_store %arg11[%c0_94, %c0_95], %313 {strides = array<i32>} : memref<8x128xf32, #tpu.memory_space<vmem>>, vector<8x128xf32>,
    return
  }
  func.func @transform_0(%arg0: i32) -> (i32, i32, i32) {
    %c0_i32 = arith.constant 0 : i32
    %c0_i32_0 = arith.constant 0 : i32
    %c0_i32_1 = arith.constant 0 : i32
    return %arg0, %c0_i32, %c0_i32_0 : i32, i32, i32
  }
  func.func @transform_1(%arg0: i32) -> (i32, i32) {
    %c0_i32 = arith.constant 0 : i32
    %c0_i32_0 = arith.constant 0 : i32
    %c0_i32_1 = arith.constant 0 : i32
    return %c0_i32, %c0_i32_0 : i32, i32
  }
  func.func @transform_2(%arg0: i32) -> (i32, i32) {
    %c0_i32 = arith.constant 0 : i32
    %c0_i32_0 = arith.constant 0 : i32
    %c0_i32_1 = arith.constant 0 : i32
    return %c0_i32, %c0_i32_0 : i32, i32
  }
  func.func @transform_3(%arg0: i32) -> (i32, i32) {
    %c0_i32 = arith.constant 0 : i32
    %c0_i32_0 = arith.constant 0 : i32
    %c0_i32_1 = arith.constant 0 : i32
    return %c0_i32, %c0_i32_0 : i32, i32
  }
  func.func @transform_4(%arg0: i32) -> (i32, i32) {
    %c0_i32 = arith.constant 0 : i32
    %c0_i32_0 = arith.constant 0 : i32
    %c0_i32_1 = arith.constant 0 : i32
    return %c0_i32, %c0_i32_0 : i32, i32
  }
  func.func @transform_5(%arg0: i32) -> (i32, i32) {
    %c0_i32 = arith.constant 0 : i32
    %c0_i32_0 = arith.constant 0 : i32
    %c0_i32_1 = arith.constant 0 : i32
    return %c0_i32, %c0_i32_0 : i32, i32
  }
  func.func @transform_6(%arg0: i32) -> (i32, i32, i32) {
    %c0_i32 = arith.constant 0 : i32
    %c0_i32_0 = arith.constant 0 : i32
    %c0_i32_1 = arith.constant 0 : i32
    return %arg0, %c0_i32, %c0_i32_0 : i32, i32, i32
  }
  func.func @transform_7(%arg0: i32) -> (i32, i32) {
    %c0_i32 = arith.constant 0 : i32
    %c0_i32_0 = arith.constant 0 : i32
    %c0_i32_1 = arith.constant 0 : i32
    return %c0_i32, %c0_i32_0 : i32, i32
  }
  func.func @transform_8(%arg0: i32) -> (i32, i32) {
    %c0_i32 = arith.constant 0 : i32
    %c0_i32_0 = arith.constant 0 : i32
    %c0_i32_1 = arith.constant 0 : i32
    return %c0_i32, %c0_i32_0 : i32, i32
  }
  func.func @transform_9(%arg0: i32) -> (i32, i32) {
    %c0_i32 = arith.constant 0 : i32
    %c0_i32_0 = arith.constant 0 : i32
    %c0_i32_1 = arith.constant 0 : i32
    return %c0_i32, %c0_i32_0 : i32, i32
  }
  func.func @transform_10(%arg0: i32) -> (i32, i32) {
    %c0_i32 = arith.constant 0 : i32
    %c0_i32_0 = arith.constant 0 : i32
    %c0_i32_1 = arith.constant 0 : i32
    return %c0_i32, %c0_i32_0 : i32, i32
  }
}

</mosaic_0001>

<bundles_post_ra>
// kernel: tpu_custom_call.1
= control target key start
LH: loop header
LB: loop body
LE: loop exit
PB: predicated region body
PF: predicated region fallthrough
CT: control target
= control target key end

     0   :  { %16 = vsyncpa [#allocation3], 0  ;;  %s3581_s0 = inlined_call_operand.hbm [shape: f32[8,8,512], index: 0, kind: input, shape index: {}]   ;;  %s3582_s1 = inlined_call_operand.hbm [shape: f32[8,128], index: 1, kind: input, shape index: {}]   ;;  %s3583_s2 = inlined_call_operand.hbm [shape: f32[8,128], index: 2, kind: input, shape index: {}]   ;;  %s3584_s3 = inlined_call_operand.hbm [shape: f32[8,128], index: 3, kind: input, shape index: {}]   ;;  %s3585_s4 = inlined_call_operand.hbm [shape: f32[8,128], index: 4, kind: input, shape index: {}]   ;;  %s3586_s5 = inlined_call_operand.hbm [shape: f32[128,512], index: 5, kind: input, shape index: {}]   ;;  %s3587_s6 = inlined_call_operand.hbm [shape: f32[8,8,128], index: 6, kind: output, shape index: {0}]   ;;  %s3588_s7 = inlined_call_operand.hbm [shape: f32[8,128], index: 7, kind: output, shape index: {1}]   ;;  %s3589_s8 = inlined_call_operand.hbm [shape: f32[8,128], index: 8, kind: output, shape index: {2}]   ;;  %s3590_s9 = inlined_call_operand.hbm [shape: f32[8,128], index: 9, kind: output, shape index: {3}]   ;;  %s3591_s10 = inlined_call_operand.hbm [shape: f32[8,128], index: 10, kind: output, shape index: {4}]  }
   0x1   :  { %17 = vsyncpa [#allocation6], 0 }
   0x2   :  { %18 = vsyncpa [#allocation9], 0 }
   0x3   :  { %19 = vsyncpa [#allocation12], 0 }
   0x4   :  { %20 = vsyncpa [#allocation4], 0 }
   0x5   :  { %21 = vsyncpa [#allocation15], 0  ;;  %s41_s15 = sshll.u32 %s3582_s1, 4  ;;  %s42_s15 = int_to_ptr.hbm [resolvable:$true] %s41_s15 }
   0x6   :  { %22 = vsyncpa [#allocation18], 0  ;;  %s2392_s16 = smov [#allocation5]   ;;  %s63_s20 = sshll.u32 %s3584_s3, 4  ;;  %s64_s20 = int_to_ptr.hbm [resolvable:$true] %s63_s20 }
   0x7   :  { %s43_s17 = sshll.u32 %s2392_s16, 4  ;;  %s2393_s21 = smov [#allocation8]   ;;  %s44_s17 = int_to_ptr.vmem [resolvable:$true] %s43_s17 }
   0x8   :  { %46 = dma.hbm_to_vmem [thread:$0]  %s42_s15, 128, %s44_s17, [#allocation6]  }
   0x9   :  { %s65_s22 = sshll.u32 %s2393_s21, 4  ;;  %s27_s25 = sshll.u32 %s3581_s0, 4  ;;  %s66_s22 = int_to_ptr.vmem [resolvable:$true] %s65_s22  ;;  %s28_s25 = int_to_ptr.hbm [resolvable:$true] %s27_s25 }
   0xa   :  { %68 = dma.hbm_to_vmem [thread:$0]  %s64_s20, 128, %s66_s22, [#allocation9]  }
   0xb   :  { %s2394_s1 = smov [#allocation2]   ;;  %s52_s29 = sshll.u32 %s3583_s2, 4  ;;  %s53_s29 = int_to_ptr.hbm [resolvable:$true] %s52_s29 }
   0xc   :  { %s29_s26 = sshll.u32 %s2394_s1, 4  ;;  %s2395_s30 = smov 512   ;;  %s30_s26 = int_to_ptr.vmem [resolvable:$true] %s29_s26 }
   0xd   :  { %s2396_s3 = smov 32   ;;  %s2397_s11 = smov [#allocation7]  }
   0xe   :  { %35 = dma.hbm_to_vmem [thread:$0]  %s28_s25, 4096, %s30_s26, [#allocation3], %s2395_s30, %s2395_s30, %s2396_s3  }
   0xf   :  { %s54_s12 = sshll.u32 %s2397_s11, 4  ;;  %s74_s0 = sshll.u32 %s3585_s4, 4  ;;  %s55_s12 = int_to_ptr.vmem [resolvable:$true] %s54_s12  ;;  %s75_s0 = int_to_ptr.hbm [resolvable:$true] %s74_s0 }
  0x10   :  { %57 = dma.hbm_to_vmem [thread:$0]  %s53_s29, 128, %s55_s12, [#allocation6]  }
  0x11   :  { %s84_s17 = sshll.u32 %s3586_s5, 4  ;;  %s2398_s18 = smov [#allocation10]   ;;  %s85_s17 = int_to_ptr.hbm [resolvable:$true] %s84_s17 }
  0x12   :  { %s76_s19 = sshll.u32 %s2398_s18, 4  ;;  %s2399_s2 = smov [#allocation11]   ;;  %s77_s19 = int_to_ptr.vmem [resolvable:$true] %s76_s19 }
  0x13   :  { %79 = dma.hbm_to_vmem [thread:$0]  %s75_s0, 128, %s77_s19, [#allocation9]  }
  0x14   :  { %s86_s20 = sshll.u32 %s2399_s2, 4  ;;  %s87_s20 = int_to_ptr.vmem [resolvable:$true] %s86_s20 }
  0x15   :  { %92 = dma.hbm_to_vmem [thread:$0]  %s85_s17, 8192, %s87_s20, [#allocation12], %s2395_s30, %s2395_s30, %s2396_s3  }
  0x16   :  { %2378 = dma.done.wait [#allocation3], 4096  }
  0x17   :  { %2379 = vsyncadd [#allocation3], 4294963200 }
  0x18   :  { %2380 = dma.done.wait [#allocation6], 256  }
  0x19   :  { %2381 = vsyncadd [#allocation6], 4294967040 }
  0x1a   :  { %2382 = dma.done.wait [#allocation9], 256  }
  0x1b   :  { %2383 = vsyncadd [#allocation9], 4294967040 }
  0x1c   :  { %2384 = dma.done.wait [#allocation12], 8192  }
  0x1d   :  { %2385 = vsyncadd [#allocation12], 4294959104  ;;  %v2480_v0 = vld [vmem:[#allocation11 + $0x1f0] sm:$0xff]  ;;  %v2490_v4 = vld [vmem:[#allocation11 + $0x1f8] sm:$0xff]  ;;  %s2400_s4 = smov [#allocation17]   ;;  %s1921_s23 = sshll.u32 %s3590_s9, 4  ;;  %s1922_s23 = int_to_ptr.hbm [resolvable:$true] %s1921_s23 }
  0x1e   :  { %3631 = vst [vmem:[#allocation27_spill] sm:$0xff] %v2480_v0  ;;  %v2482_v1 = vld [vmem:[#allocation11 + $0x1d0] sm:$0xff]  ;;  %241 = vmatpush.msra.mxu2 %v2480_v0  ;;  %v2492_v5 = vld [vmem:[#allocation11 + $0x1d8] sm:$0xff]  ;;  %261 = vmatpush.msra.mxu3 %v2490_v4  ;;  %v2506_v10 = vld [vmem:[#allocation11 + $0x1e8] sm:$0xff]  ;;  %s1919_s5 = sshll.u32 %s2400_s4, 4  ;;  %s2401_s24 = smov [#allocation19]   ;;  %s1920_s5 = int_to_ptr.vmem [resolvable:$true] %s1919_s5 }
  0x1f   :  { %v2485_v2 = vld [vmem:[#allocation11 + $0x1b0] sm:$0xff]  ;;  %v2498_v7 = vld [vmem:[#allocation11 + $0x1b8] sm:$0xff]  ;;  %v2510_v11 = vld [vmem:[#allocation11 + $0x1c8] sm:$0xff]  ;;  %221 = vmatpush.msra.mxu1 %v2506_v10  ;;  %s1930_s25 = sshll.u32 %s2401_s24, 4  ;;  %s1932_s27 = sshll.u32 %s3591_s10, 4  ;;  %s1931_s25 = int_to_ptr.vmem [resolvable:$true] %s1930_s25  ;;  %s1933_s27 = int_to_ptr.hbm [resolvable:$true] %s1932_s27 }
  0x20   :  { %242 = vmatpush.msra.mxu2 %v2482_v1  ;;  %v2488_v3 = vld [vmem:[#allocation11 + $0x190] sm:$0xff]  ;;  %262 = vmatpush.msra.mxu3 %v2492_v5  ;;  %v2504_v9 = vld [vmem:[#allocation11 + $0x198] sm:$0xff]  ;;  %v2517_v14 = vld [vmem:[#allocation11 + $0x1e0] sm:$0xff]  ;;  %s2402_s9 = smov [#allocation13]   ;;  %s1885_s30 = sshll.u32 %s3587_s6, 4  ;;  %s1886_s30 = int_to_ptr.hbm [resolvable:$true] %s1885_s30 }
  0x21   :  { %v2496_v6 = vld [vmem:[#allocation11 + $0x170] sm:$0xff]  ;;  %v2514_v13 = vld [vmem:[#allocation11 + $0x178] sm:$0xff]  ;;  %v2521_v15 = vld [vmem:[#allocation11 + $0x1a8] sm:$0xff]  ;;  %222 = vmatpush.msra.mxu1 %v2510_v11  ;;  %201 = vmatpush.msra.mxu0 %v2517_v14  ;;  %s3567_s10 = sshll.u32 %s2402_s9, 4  ;;  %s2403_s3 = smov [#allocation14]   ;;  %s1884_s10 = int_to_ptr.vmem [resolvable:$true] %s3567_s10 }
  0x22   :  { %243 = vmatpush.msra.mxu2 %v2485_v2  ;;  %v2502_v8 = vld [vmem:[#allocation11 + $0x150] sm:$0xff]  ;;  %263 = vmatpush.msra.mxu3 %v2498_v7  ;;  %v2523_v16 = vld [vmem:[#allocation11 + $0x1c0] sm:$0xff]  ;;  %v2527_v18 = vld [vmem:[#allocation11 + $0x158] sm:$0xff]  ;;  %s1897_s11 = sshll.u32 %s2403_s3, 4  ;;  %s1899_s14 = sshll.u32 %s3588_s7, 4  ;;  %s1898_s11 = int_to_ptr.vmem [resolvable:$true] %s1897_s11  ;;  %s1900_s14 = int_to_ptr.hbm [resolvable:$true] %s1899_s14 }
  0x23   :  { %v2512_v12 = vld [vmem:[#allocation11 + $0x130] sm:$0xff]  ;;  %v2533_v19 = vld [vmem:[#allocation11 + $0x188] sm:$0xff]  ;;  %v2535_v20 = vld [vmem:[#allocation11 + $0x1a0] sm:$0xff]  ;;  %223 = vmatpush.msra.mxu1 %v2521_v15  ;;  %202 = vmatpush.msra.mxu0 %v2523_v16  ;;  %s2404_s0 = smov [#allocation16]   ;;  %s1910_s17 = sshll.u32 %s3589_s8, 4  ;;  %s1911_s17 = int_to_ptr.hbm [resolvable:$true] %s1910_s17 }
  0x24   :  { %244 = vmatpush.msra.mxu2 %v2488_v3  ;;  %264 = vmatpush.msra.mxu3 %v2504_v9  ;;  %v2525_v17 = vld [vmem:[#allocation11 + $0x110] sm:$0xff]  ;;  %v2539_v22 = vld [vmem:[#allocation11 + $0x138] sm:$0xff]  ;;  %v2545_v23 = vld [vmem:[#allocation11 + $0x168] sm:$0xff]  ;;  %s1908_s6 = sshll.u32 %s2404_s0, 4  ;;  %s2405_s18 = smov 128   ;;  %s1909_s6 = int_to_ptr.vmem [resolvable:$true] %s1908_s6 }
  0x25   :  { %v2537_v21 = vld [vmem:[#allocation11 + $0xf0] sm:$0xff]  ;;  %v2547_v24 = vld [vmem:[#allocation11 + $0x180] sm:$0xff]  ;;  %v2551_v26 = vld [vmem:[#allocation11 + $0x118] sm:$0xff]  ;;  %224 = vmatpush.msra.mxu1 %v2533_v19  ;;  %203 = vmatpush.msra.mxu0 %v2535_v20  ;;  %s2406_s7 = smov 8  }
  0x26   :  { %245 = vmatpush.msra.mxu2 %v2496_v6  ;;  %265 = vmatpush.msra.mxu3 %v2514_v13  ;;  %v2549_v25 = vld [vmem:[#allocation11 + $0xd0] sm:$0xff]  ;;  %v2557_v27 = vld [vmem:[#allocation11 + $0x148] sm:$0xff]  ;;  %v2559_v28 = vld [vmem:[#allocation11 + $0x160] sm:$0xff] }
  0x27   :  { %v2561_v29 = vld [vmem:[#allocation11 + $0xb0] sm:$0xff]  ;;  %v2563_v30 = vld [vmem:[#allocation11 + $0xf8] sm:$0xff]  ;;  %225 = vmatpush.msra.mxu1 %v2545_v23  ;;  %204 = vmatpush.msra.mxu0 %v2547_v24  ;;  %v2569_v31 = vld [vmem:[#allocation11 + $0x128] sm:$0xff] }
  0x28   :  { %246 = vmatpush.msra.mxu2 %v2502_v8  ;;  %266 = vmatpush.msra.mxu3 %v2527_v18  ;;  %v2571_v32 = vld [vmem:[#allocation11 + $0x140] sm:$0xff]  ;;  %v2573_v33 = vld [vmem:[#allocation11 + $0x90] sm:$0xff]  ;;  %v2575_v34 = vld [vmem:[#allocation11 + $0xd8] sm:$0xff] }
  0x29   :  { %226 = vmatpush.msra.mxu1 %v2557_v27  ;;  %205 = vmatpush.msra.mxu0 %v2559_v28  ;;  %v2581_v35 = vld [vmem:[#allocation11 + $0x108] sm:$0xff]  ;;  %v2583_v36 = vld [vmem:[#allocation11 + $0x120] sm:$0xff]  ;;  %v2585_v37 = vld [vmem:[#allocation11 + $0x70] sm:$0xff] }
  0x2a   :  { %247 = vmatpush.msra.mxu2 %v2512_v12  ;;  %267 = vmatpush.msra.mxu3 %v2539_v22  ;;  %v2587_v38 = vld [vmem:[#allocation11 + $0xb8] sm:$0xff]  ;;  %v2593_v39 = vld [vmem:[#allocation11 + $0xe8] sm:$0xff]  ;;  %v2595_v40 = vld [vmem:[#allocation11 + $0x100] sm:$0xff] }
  0x2b   :  { %227 = vmatpush.msra.mxu1 %v2569_v31  ;;  %206 = vmatpush.msra.mxu0 %v2571_v32  ;;  %v2597_v41 = vld [vmem:[#allocation11 + $0x50] sm:$0xff]  ;;  %v2599_v42 = vld [vmem:[#allocation11 + $0x98] sm:$0xff]  ;;  %v2605_v43 = vld [vmem:[#allocation11 + $0xc8] sm:$0xff] }
  0x2c   :  { %248 = vmatpush.msra.mxu2 %v2525_v17  ;;  %268 = vmatpush.msra.mxu3 %v2551_v26  ;;  %v2607_v44 = vld [vmem:[#allocation11 + $0xe0] sm:$0xff]  ;;  %v2609_v45 = vld [vmem:[#allocation11 + $0x30] sm:$0xff]  ;;  %v2611_v46 = vld [vmem:[#allocation11 + $0x78] sm:$0xff] }
  0x2d   :  { %228 = vmatpush.msra.mxu1 %v2581_v35  ;;  %207 = vmatpush.msra.mxu0 %v2583_v36  ;;  %v2617_v47 = vld [vmem:[#allocation11 + $0xa8] sm:$0xff]  ;;  %v2619_v48 = vld [vmem:[#allocation11 + $0xc0] sm:$0xff]  ;;  %v2621_v49 = vld [vmem:[#allocation11 + $0x10] sm:$0xff] }
  0x2e   :  { %249 = vmatpush.msra.mxu2 %v2537_v21  ;;  %269 = vmatpush.msra.mxu3 %v2563_v30  ;;  %v2623_v50 = vld [vmem:[#allocation11 + $0x58] sm:$0xff]  ;;  %v121_v51 = vld [vmem:[#allocation5] sm:$0xff]  ;;  %v2629_v52 = vld [vmem:[#allocation11 + $0x88] sm:$0xff] }
  0x2f   :  { %229 = vmatpush.msra.mxu1 %v2593_v39  ;;  %208 = vmatpush.msra.mxu0 %v2595_v40  ;;  %v2631_v53 = vld [vmem:[#allocation11 + $0x38] sm:$0xff]  ;;  %v2635_v54 = vld [vmem:[#allocation11 + $0xa0] sm:$0xff]  ;;  %v2639_v55 = vld [vmem:[#allocation11 + $0x68] sm:$0xff] }
  0x30   :  { %250 = vmatpush.msra.mxu2 %v2549_v25  ;;  %270 = vmatpush.msra.mxu3 %v2575_v34  ;;  %v2641_v56 = vld [vmem:[#allocation11 + $0x18] sm:$0xff]  ;;  %v2644_v57 = vld [vmem:[#allocation11 + $0x80] sm:$0xff]  ;;  %v2648_v58 = vld [vmem:[#allocation11 + $0x48] sm:$0xff] }
  0x31   :  { %230 = vmatpush.msra.mxu1 %v2605_v43  ;;  %209 = vmatpush.msra.mxu0 %v2607_v44  ;;  %v2651_v59 = vld [vmem:[#allocation11 + $0x60] sm:$0xff]  ;;  %v2656_v60 = vld [vmem:[#allocation11 + $0x28] sm:$0xff] }
  0x32   :  { %251 = vmatpush.msra.mxu2 %v2561_v29  ;;  %271 = vmatpush.msra.mxu3 %v2587_v38  ;;  %v2659_v61 = vld [vmem:[#allocation11 + $0x40] sm:$0xff]  ;;  %v2662_v62 = vld [vmem:[#allocation11 + $0x8] sm:$0xff] }
  0x33   :  { %231 = vmatpush.msra.mxu1 %v2617_v47  ;;  %210 = vmatpush.msra.mxu0 %v2619_v48  ;;  %v2666_v63 = vld [vmem:[#allocation11 + $0x20] sm:$0xff] }
  0x34   :  { %252 = vmatpush.msra.mxu2 %v2573_v33  ;;  %272 = vmatpush.msra.mxu3 %v2599_v42 }
  0x35   :  { %232 = vmatpush.msra.mxu1 %v2629_v52  ;;  %211 = vmatpush.msra.mxu0 %v2635_v54 }
  0x36   :  { %253 = vmatpush.msra.mxu2 %v2585_v37  ;;  %273 = vmatpush.msra.mxu3 %v2611_v46 }
  0x37   :  { %233 = vmatpush.msra.mxu1 %v2639_v55  ;;  %212 = vmatpush.msra.mxu0 %v2644_v57 }
  0x38   :  { %254 = vmatpush.msra.mxu2 %v2597_v41  ;;  %274 = vmatpush.msra.mxu3 %v2623_v50 }
  0x39   :  { %234 = vmatpush.msra.mxu1 %v2648_v58  ;;  %213 = vmatpush.msra.mxu0 %v2651_v59 }
  0x3a   :  { %255 = vmatpush.msra.mxu2 %v2609_v45  ;;  %275 = vmatpush.msra.mxu3 %v2631_v53 }
  0x3b   :  { %235 = vmatpush.msra.mxu1 %v2656_v60  ;;  %214 = vmatpush.msra.mxu0 %v2659_v61 }
  0x3c   :  { %256 = vmatpush.msra.mxu2 %v2621_v49  ;;  %276 = vmatpush.msra.mxu3 %v2641_v56 }
  0x3d   :  { %257 = vmatmul.f32.vlgmr.msra.gmra.mxu2 %v121_v51  ;;  %277 = vmatmul.f32.vlgmr.msra.gmra.mxu3 %v121_v51 }
  0x3e   :  { %458 = vmatpush.msrb.mxu2 %v2480_v0  ;;  %478 = vmatpush.msrb.mxu3 %v2490_v4  ;;  %v2672_v0 = vld [vmem:[#allocation11] sm:$0xff] }
  0x3f   :  { %236 = vmatpush.msra.mxu1 %v2662_v62  ;;  %215 = vmatpush.msra.mxu0 %v2666_v63 }
  0x40   :  { %459 = vmatpush.msrb.mxu2 %v2482_v1  ;;  %479 = vmatpush.msrb.mxu3 %v2492_v5 }
  0x41   :  { %237 = vmatmul.f32.vlgmr.msra.gmra.mxu1 %v121_v51  ;;  %216 = vmatpush.msra.mxu0 %v2672_v0 }
  0x42   :  { %460 = vmatpush.msrb.mxu2 %v2485_v2  ;;  %438 = vmatpush.msrb.mxu1 %v2506_v10 }
  0x43   :  { %480 = vmatpush.msrb.mxu3 %v2498_v7  ;;  %217 = vmatmul.f32.vlgmr.msra.gmra.mxu0 %v121_v51  ;;  %v3632_v51 = vld [vmem:[#allocation27_spill] sm:$0xff] }
  0x44   :  { %461 = vmatpush.msrb.mxu2 %v2488_v3  ;;  %439 = vmatpush.msrb.mxu1 %v2510_v11 }
  0x45   :  { %418 = vmatpush.msrb.mxu0 %v2517_v14  ;;  %481 = vmatpush.msrb.mxu3 %v2504_v9 }
  0x46   :  { %440 = vmatpush.msrb.mxu1 %v2521_v15  ;;  %462 = vmatpush.msrb.mxu2 %v2496_v6 }
  0x47   :  { %419 = vmatpush.msrb.mxu0 %v2523_v16  ;;  %482 = vmatpush.msrb.mxu3 %v2514_v13 }
  0x48   :  { %441 = vmatpush.msrb.mxu1 %v2533_v19  ;;  %463 = vmatpush.msrb.mxu2 %v2502_v8 }
  0x49   :  { %420 = vmatpush.msrb.mxu0 %v2535_v20  ;;  %483 = vmatpush.msrb.mxu3 %v2527_v18 }
  0x4a   :  { %442 = vmatpush.msrb.mxu1 %v2545_v23  ;;  %464 = vmatpush.msrb.mxu2 %v2512_v12 }
  0x4b   :  { %421 = vmatpush.msrb.mxu0 %v2547_v24  ;;  %484 = vmatpush.msrb.mxu3 %v2539_v22 }
  0x4c   :  { %443 = vmatpush.msrb.mxu1 %v2557_v27  ;;  %465 = vmatpush.msrb.mxu2 %v2525_v17 }
  0x4d   :  { %422 = vmatpush.msrb.mxu0 %v2559_v28  ;;  %485 = vmatpush.msrb.mxu3 %v2551_v26 }
  0x4e   :  { %444 = vmatpush.msrb.mxu1 %v2569_v31  ;;  %466 = vmatpush.msrb.mxu2 %v2537_v21 }
  0x4f   :  { %423 = vmatpush.msrb.mxu0 %v2571_v32  ;;  %486 = vmatpush.msrb.mxu3 %v2563_v30 }
  0x50   :  { %445 = vmatpush.msrb.mxu1 %v2581_v35  ;;  %467 = vmatpush.msrb.mxu2 %v2549_v25 }
  0x51   :  { %424 = vmatpush.msrb.mxu0 %v2583_v36  ;;  %487 = vmatpush.msrb.mxu3 %v2575_v34 }
  0x52   :  { %446 = vmatpush.msrb.mxu1 %v2593_v39  ;;  %468 = vmatpush.msrb.mxu2 %v2561_v29 }
  0x53   :  { %425 = vmatpush.msrb.mxu0 %v2595_v40  ;;  %488 = vmatpush.msrb.mxu3 %v2587_v38 }
  0x54   :  { %447 = vmatpush.msrb.mxu1 %v2605_v43  ;;  %469 = vmatpush.msrb.mxu2 %v2573_v33 }
  0x55   :  { %426 = vmatpush.msrb.mxu0 %v2607_v44  ;;  %489 = vmatpush.msrb.mxu3 %v2599_v42 }
  0x56   :  { %448 = vmatpush.msrb.mxu1 %v2617_v47  ;;  %470 = vmatpush.msrb.mxu2 %v2585_v37 }
  0x57   :  { %427 = vmatpush.msrb.mxu0 %v2619_v48  ;;  %490 = vmatpush.msrb.mxu3 %v2611_v46 }
  0x58   :  { %449 = vmatpush.msrb.mxu1 %v2629_v52  ;;  %471 = vmatpush.msrb.mxu2 %v2597_v41 }
  0x59   :  { %428 = vmatpush.msrb.mxu0 %v2635_v54  ;;  %491 = vmatpush.msrb.mxu3 %v2623_v50 }
  0x5a   :  { %450 = vmatpush.msrb.mxu1 %v2639_v55  ;;  %472 = vmatpush.msrb.mxu2 %v2609_v45 }
  0x5b   :  { %429 = vmatpush.msrb.mxu0 %v2644_v57  ;;  %492 = vmatpush.msrb.mxu3 %v2631_v53 }
  0x5c   :  { %451 = vmatpush.msrb.mxu1 %v2648_v58  ;;  %473 = vmatpush.msrb.mxu2 %v2621_v49 }
  0x5d   :  { %430 = vmatpush.msrb.mxu0 %v2651_v59  ;;  %493 = vmatpush.msrb.mxu3 %v2641_v56 }
  0x5e   :  { %452 = vmatpush.msrb.mxu1 %v2656_v60  ;;  %676 = vmatpush.msra.mxu2 %v3632_v51 }
  0x5f   :  { %431 = vmatpush.msrb.mxu0 %v2659_v61  ;;  %696 = vmatpush.msra.mxu3 %v2490_v4 }
  0x60   :  { %453 = vmatpush.msrb.mxu1 %v2662_v62  ;;  %677 = vmatpush.msra.mxu2 %v2482_v1  ;;  %v135_v1 = vld [vmem:[#allocation2 + $0x10] sm:$0xff] }
  0x61   :  { %432 = vmatpush.msrb.mxu0 %v2666_v63  ;;  %697 = vmatpush.msra.mxu3 %v2492_v5 }
  0x62   :  { %656 = vmatpush.msra.mxu1 %v2506_v10  ;;  %678 = vmatpush.msra.mxu2 %v2485_v2 }
  0x63   :  { %433 = vmatpush.msrb.mxu0 %v2672_v0  ;;  %698 = vmatpush.msra.mxu3 %v2498_v7  ;;  %v136_v7 = vld [vmem:[#allocation2 + $0x18] sm:$0xff] }
  0x64   :  { %657 = vmatpush.msra.mxu1 %v2510_v11  ;;  %679 = vmatpush.msra.mxu2 %v2488_v3 }
  0x65   :  { %636 = vmatpush.msra.mxu0 %v2517_v14  ;;  %699 = vmatpush.msra.mxu3 %v2504_v9 }
  0x66   :  { %658 = vmatpush.msra.mxu1 %v2521_v15  ;;  %680 = vmatpush.msra.mxu2 %v2496_v6 }
  0x67   :  { %637 = vmatpush.msra.mxu0 %v2523_v16  ;;  %700 = vmatpush.msra.mxu3 %v2514_v13 }
  0x68   :  { %659 = vmatpush.msra.mxu1 %v2533_v19  ;;  %681 = vmatpush.msra.mxu2 %v2502_v8 }
  0x69   :  { %638 = vmatpush.msra.mxu0 %v2535_v20  ;;  %701 = vmatpush.msra.mxu3 %v2527_v18  ;;  %v134_v18 = vld [vmem:[#allocation2 + $0x8] sm:$0xff] }
  0x6a   :  { %660 = vmatpush.msra.mxu1 %v2545_v23  ;;  %682 = vmatpush.msra.mxu2 %v2512_v12 }
  0x6b   :  { %639 = vmatpush.msra.mxu0 %v2547_v24  ;;  %702 = vmatpush.msra.mxu3 %v2539_v22  ;;  %v127_v22 = vld [vmem:[#allocation10] sm:$0xff] }
  0x6c   :  { %661 = vmatpush.msra.mxu1 %v2557_v27  ;;  %683 = vmatpush.msra.mxu2 %v2525_v17 }
  0x6d   :  { %640 = vmatpush.msra.mxu0 %v2559_v28  ;;  %703 = vmatpush.msra.mxu3 %v2551_v26 }
  0x6e   :  { %662 = vmatpush.msra.mxu1 %v2569_v31  ;;  %684 = vmatpush.msra.mxu2 %v2537_v21 }
  0x6f   :  { %641 = vmatpush.msra.mxu0 %v2571_v32  ;;  %704 = vmatpush.msra.mxu3 %v2563_v30 }
  0x70   :  { %663 = vmatpush.msra.mxu1 %v2581_v35  ;;  %685 = vmatpush.msra.mxu2 %v2549_v25  ;;  %v133_v35 = vld [vmem:[#allocation2] sm:$0xff] }
  0x71   :  { %642 = vmatpush.msra.mxu0 %v2583_v36  ;;  %705 = vmatpush.msra.mxu3 %v2575_v34 }
  0x72   :  { %664 = vmatpush.msra.mxu1 %v2593_v39  ;;  %686 = vmatpush.msra.mxu2 %v2561_v29 }
  0x73   :  { %643 = vmatpush.msra.mxu0 %v2595_v40  ;;  %706 = vmatpush.msra.mxu3 %v2587_v38 }
  0x74   :  { %665 = vmatpush.msra.mxu1 %v2605_v43  ;;  %687 = vmatpush.msra.mxu2 %v2573_v33  ;;  %v125_v33 = vld [vmem:[#allocation8] sm:$0xff] }
  0x75   :  { %644 = vmatpush.msra.mxu0 %v2607_v44  ;;  %707 = vmatpush.msra.mxu3 %v2599_v42 }
  0x76   :  { %666 = vmatpush.msra.mxu1 %v2617_v47  ;;  %688 = vmatpush.msra.mxu2 %v2585_v37 }
  0x77   :  { %645 = vmatpush.msra.mxu0 %v2619_v48  ;;  %708 = vmatpush.msra.mxu3 %v2611_v46 }
  0x78   :  { %667 = vmatpush.msra.mxu1 %v2629_v52  ;;  %689 = vmatpush.msra.mxu2 %v2597_v41 }
  0x79   :  { %646 = vmatpush.msra.mxu0 %v2635_v54  ;;  %709 = vmatpush.msra.mxu3 %v2623_v50 }
  0x7a   :  { %668 = vmatpush.msra.mxu1 %v2639_v55  ;;  %690 = vmatpush.msra.mxu2 %v2609_v45 }
  0x7b   :  { %647 = vmatpush.msra.mxu0 %v2644_v57  ;;  %710 = vmatpush.msra.mxu3 %v2631_v53 }
  0x7c   :  { %669 = vmatpush.msra.mxu1 %v2648_v58  ;;  %691 = vmatpush.msra.mxu2 %v2621_v49  ;;  %v123_v49 = vld [vmem:[#allocation7] sm:$0xff] }
  0x7d   :  { %648 = vmatpush.msra.mxu0 %v2651_v59  ;;  %711 = vmatpush.msra.mxu3 %v2641_v56 }
  0x7e   :  { %670 = vmatpush.msra.mxu1 %v2656_v60 }
  0x7f   :  { %649 = vmatpush.msra.mxu0 %v2659_v61 }
  0x80   :  { %671 = vmatpush.msra.mxu1 %v2662_v62 }
  0x81   :  { %650 = vmatpush.msra.mxu0 %v2666_v63 }
  0x83   :  { %651 = vmatpush.msra.mxu0 %v2672_v0 }
  0xbe   :  { %v238_v19 = vpop.f32.mrf.mxu1 }
  0xbf   :  { %v282_v24 = vadd.f32 %v238_v19, %v134_v18 }
  0xc0   :  { %v258_v2 = vpop.f32.mrf.mxu2  ;;  %v278_v8 = vpop.f32.mrf.mxu3 }
  0xc1   :  { %v283_v3 = vadd.f32 %v258_v2, %v135_v1  ;;  %v284_v10 = vadd.f32 %v278_v8, %v136_v7  ;;  %v218_v36 = vpop.f32.mrf.mxu0 }
  0xc2   :  { %v281_v41 = vadd.f32 %v218_v36, %v133_v35 }
  0xc3   :  { %v306_v4 = vand.u32 2147483647, %v283_v3  ;;  %v1963_v13 = vmul.f32 -1.442695, %v284_v10  ;;  %v305_v20 = vmin.f32 %v283_v3, 0.0  ;;  %v353_v10 = vld [vmem:[#allocation2 + $0x38] sm:$0xff] }
  0xc5   :  { %v307_v5 = vsub.f32 0.0, %v306_v4  ;;  %v352_v4 = vld [vmem:[#allocation2 + $0x30] sm:$0xff] }
  0xc7   :  { %v308_v6 = vmul.f32 1.442695, %v307_v5 }
  0xc9   :  { %1986 = vpow2.f32 %v308_v6 }
  0xcf   :  { %v1987_v9 = vpop.eup %1986 }
  0xd0   :  { %v310_v11 = vadd.f32 1.0, %v1987_v9  ;;  %v313_v12 = vmul.f32 -0.5, %v1987_v9  ;;  %v316_v15 = vand.u32 2147483647, %v1987_v9 }
  0xd2   :  { %1988 = vlog2.f32 %v310_v11  ;;  %v314_v14 = vadd.f32 1.0, %v313_v12  ;;  %vm317_vm0 = vcmp.lt.f32.partialorder %v316_v15, 0.0004427343 }
  0xd3   :  { %1990 = vpow2.f32 %v1963_v13 }
  0xd4   :  { %v315_v17 = vmul.f32 %v1987_v9, %v314_v14 }
  0xd8   :  { %v1989_v16 = vpop.eup %1988 }
  0xd9   :  { %v312_v0 = vmul.f32 0.6931472, %v1989_v16  ;;  %v1991_v25 = vpop.eup %1990 }
  0xda   :  { %v289_v28 = vadd.f32 1.0, %v1991_v25 }
  0xdb   :  { %v318_v21 = vsel %vm317_vm0, %v315_v17, %v312_v0 }
  0xdc   :  { %v319_v23 = vsub.f32 %v305_v20, %v318_v21  ;;  %vm295_vm1 = vweird.f32 %v289_v28  ;;  %v301_v48 = vand.u32 2147483648, %v289_v28  ;;  %v299_v53 = vand.u32 2147483647, %v289_v28 }
  0xde   :  { %v320_v26 = vmul.f32 1.442695, %v319_v23  ;;  %v322_v27 = vadd.f32 %v319_v23, %v127_v22  ;;  %v302_v59 = vor.u32 1.1754944e-38, %v301_v48  ;;  %vm300_vm7 = vcmp.eq.f32.partialorder %v299_v53, 8.507059e+37  ;;  %v351_v22 = vld [vmem:[#allocation2 + $0x28] sm:$0xff] }
  0xe0   :  { %v2800_v29 = vmax.f32 %v322_v27, %v282_v24  ;;  %1992 = vpow2.f32 %v320_v26 }
  0xe1   :  { %1994 = vrcp.f32 %v289_v28 }
  0xe2   :  { %v324_v30 = vsub.f32 %v282_v24, %v2800_v29 }
  0xe4   :  { %v325_v31 = vmul.f32 1.442695, %v324_v30 }
  0xe6   :  { %1996 = vpow2.f32 %v325_v31  ;;  %v1993_v32 = vpop.eup %1992 }
  0xe7   :  { %v1995_v34 = vpop.eup %1994  ;;  %v330_v37 = vmul.f32 %v1993_v32, %v125_v33  ;;  %v327_v57 = vmul.f32 %v1993_v32, %v123_v49 }
  0xe8   :  { %v291_v39 = vmul.f32 %v1995_v34, %v289_v28  ;;  %vm296_vm2 = vweird.f32 %v1995_v34 }
  0xe9   :  { %vm297_vm4 = vmor %vm295_vm1, %vm296_vm2 }
  0xea   :  { %v292_v42 = vsub.f32 1.0, %v291_v39  ;;  %v350_v39 = vld [vmem:[#allocation2 + $0x20] sm:$0xff] }
  0xec   :  { %v1997_v38 = vpop.eup %1996  ;;  %v293_v44 = vmul.f32 %v1995_v34, %v292_v42 }
  0xed   :  { %v2803_v40 = vadd.f32 %v1997_v38, %v330_v37 }
  0xee   :  { %v294_v52 = vadd.f32 %v1995_v34, %v293_v44 }
  0xef   :  { %1998 = vrcp.f32 %v2803_v40  ;;  %v343_v50 = vand.u32 2147483648, %v2803_v40  ;;  %v341_v56 = vand.u32 2147483647, %v2803_v40  ;;  %vm337_vm5 = vweird.f32 %v2803_v40 }
  0xf0   :  { %2000 = vtanh.f32 %v281_v41  ;;  %v298_v63 = vsel %vm297_vm4, %v1995_v34, %v294_v52 }
  0xf1   :  { %v344_v60 = vor.u32 1.1754944e-38, %v343_v50  ;;  %vm342_vm8 = vcmp.eq.f32.partialorder %v341_v56, 8.507059e+37  ;;  %v303_v2 = vsel %vm300_vm7, %v302_v59, %v298_v63 }
  0xf5   :  { %v1999_v43 = vpop.eup %1998 }
  0xf6   :  { %v333_v45 = vmul.f32 %v1999_v43, %v2803_v40  ;;  %v2001_v46 = vpop.eup %2000  ;;  %vm338_vm3 = vweird.f32 %v1999_v43 }
  0xf7   :  { %v328_v54 = vmul.f32 %v2001_v46, %v1997_v38  ;;  %vm339_vm6 = vmor %vm337_vm5, %vm338_vm3 }
  0xf8   :  { %v334_v47 = vsub.f32 1.0, %v333_v45 }
  0xf9   :  { %v2810_v61 = vadd.f32 %v328_v54, %v327_v57 }
  0xfa   :  { %v335_v55 = vmul.f32 %v1999_v43, %v334_v47 }
  0xfc   :  { %v336_v58 = vadd.f32 %v1999_v43, %v335_v55 }
  0xfe   :  { %v340_v62 = vsel %vm339_vm6, %v1999_v43, %v336_v58 }
  0xff   :  { %v345_v51 = vsel %vm342_vm8, %v344_v60, %v340_v62 }
 0x100   :  { %v346_v1 = vmul.f32 %v345_v51, %v2810_v61 }
 0x102   :  { %v347_v3 = vmul.f32 %v346_v1, %v303_v2 }
 0x104   :  { %348 = vst [vmem:[#allocation13] sm:$0xff] %v347_v3  ;;  %434 = vmatmul.f32.vlgmr.msrb.gmra.mxu0 %v347_v3  ;;  %454 = vmatmul.f32.vlgmr.msrb.gmra.mxu1 %v347_v3 }
 0x105   :  { %474 = vmatmul.f32.vlgmr.msrb.gmra.mxu2 %v347_v3  ;;  %494 = vmatmul.f32.vlgmr.msrb.gmra.mxu3 %v347_v3 }
 0x181   :  { %v455_v23 = vpop.f32.mrf.mxu1  ;;  %v435_v41 = vpop.f32.mrf.mxu0 }
 0x182   :  { %v499_v27 = vadd.f32 %v455_v23, %v351_v22  ;;  %v2870_v22 = vld [vmem:[#allocation11 + $0x188] sm:$0xff]  ;;  %v2872_v23 = vld [vmem:[#allocation11 + $0x190] sm:$0xff] }
 0x188   :  { %v475_v5 = vpop.f32.mrf.mxu2  ;;  %v495_v11 = vpop.f32.mrf.mxu3 }
 0x189   :  { %v500_v6 = vadd.f32 %v475_v5, %v352_v4  ;;  %v501_v13 = vadd.f32 %v495_v11, %v353_v10  ;;  %v2836_v10 = vld [vmem:[#allocation11 + $0x1f0] sm:$0xff] }
 0x18a   :  { %894 = vmatpush.msrb.mxu2 %v2836_v10 }
 0x18b   :  { %v523_v7 = vand.u32 2147483647, %v500_v6  ;;  %v1964_v16 = vmul.f32 -1.442695, %v501_v13  ;;  %v522_v21 = vmin.f32 %v500_v6, 0.0  ;;  %v2844_v13 = vld [vmem:[#allocation11 + $0x1c0] sm:$0xff] }
 0x18d   :  { %v524_v8 = vsub.f32 0.0, %v523_v7 }
 0x18f   :  { %v525_v9 = vmul.f32 1.442695, %v524_v8  ;;  %v2832_v8 = vld [vmem:[#allocation11 + $0x1e0] sm:$0xff] }
 0x190   :  { %854 = vmatpush.msrb.mxu0 %v2832_v8 }
 0x191   :  { %2002 = vpow2.f32 %v525_v9  ;;  %v2834_v9 = vld [vmem:[#allocation11 + $0x1e8] sm:$0xff] }
 0x192   :  { %874 = vmatpush.msrb.mxu1 %v2834_v9  ;;  %855 = vmatpush.msrb.mxu0 %v2844_v13 }
 0x197   :  { %v2003_v12 = vpop.eup %2002 }
 0x198   :  { %v527_v14 = vadd.f32 1.0, %v2003_v12  ;;  %v530_v15 = vmul.f32 -0.5, %v2003_v12  ;;  %v533_v17 = vand.u32 2147483647, %v2003_v12 }
 0x19a   :  { %2004 = vlog2.f32 %v527_v14  ;;  %v531_v0 = vadd.f32 1.0, %v530_v15  ;;  %vm534_vm9 = vcmp.lt.f32.partialorder %v533_v17, 0.0004427343  ;;  %v2846_v14 = vld [vmem:[#allocation11 + $0x1c8] sm:$0xff]  ;;  %v2848_v15 = vld [vmem:[#allocation11 + $0x1d0] sm:$0xff]  ;;  %v2856_v17 = vld [vmem:[#allocation11 + $0x1a0] sm:$0xff] }
 0x19b   :  { %2006 = vpow2.f32 %v1964_v16  ;;  %875 = vmatpush.msrb.mxu1 %v2846_v14  ;;  %895 = vmatpush.msrb.mxu2 %v2848_v15 }
 0x19c   :  { %v532_v20 = vmul.f32 %v2003_v12, %v531_v0  ;;  %v2840_v12 = vld [vmem:[#allocation11 + $0x1f8] sm:$0xff]  ;;  %856 = vmatpush.msrb.mxu0 %v2856_v17 }
 0x19d   :  { %914 = vmatpush.msrb.mxu3 %v2840_v12  ;;  %v2852_v0 = vld [vmem:[#allocation11 + $0x1d8] sm:$0xff] }
 0x19e   :  { %3634 = vst [vmem:[#allocation28_spill] sm:$0xff] %v2852_v0 }
 0x19f   :  { %915 = vmatpush.msrb.mxu3 %v2852_v0 }
 0x1a0   :  { %v2005_v18 = vpop.eup %2004 }
 0x1a1   :  { %v529_v19 = vmul.f32 0.6931472, %v2005_v18  ;;  %v2007_v26 = vpop.eup %2006  ;;  %v2858_v18 = vld [vmem:[#allocation11 + $0x1a8] sm:$0xff] }
 0x1a2   :  { %v506_v32 = vadd.f32 1.0, %v2007_v26  ;;  %3635 = vst [vmem:[#allocation29_spill] sm:$0xff] %v2858_v18  ;;  %876 = vmatpush.msrb.mxu1 %v2858_v18 }
 0x1a3   :  { %v535_v24 = vsel %vm534_vm9, %v532_v20, %v529_v19  ;;  %v2860_v19 = vld [vmem:[#allocation11 + $0x1b0] sm:$0xff]  ;;  %v2864_v20 = vld [vmem:[#allocation11 + $0x1b8] sm:$0xff] }
 0x1a4   :  { %v536_v25 = vsub.f32 %v522_v21, %v535_v24  ;;  %vm512_vm12 = vweird.f32 %v506_v32  ;;  %v518_v55 = vand.u32 2147483648, %v506_v32  ;;  %v516_v57 = vand.u32 2147483647, %v506_v32  ;;  %3636 = vst [vmem:[#allocation30_spill] sm:$0xff] %v2860_v19  ;;  %896 = vmatpush.msrb.mxu2 %v2860_v19  ;;  %916 = vmatpush.msrb.mxu3 %v2864_v20  ;;  %v2868_v21 = vld [vmem:[#allocation11 + $0x180] sm:$0xff]  ;;  %v571_v24 = vld [vmem:[#allocation2 + $0x58] sm:$0xff] }
 0x1a5   :  { %857 = vmatpush.msrb.mxu0 %v2868_v21  ;;  %877 = vmatpush.msrb.mxu1 %v2870_v22 }
 0x1a6   :  { %v537_v28 = vmul.f32 1.442695, %v536_v25  ;;  %v539_v30 = vadd.f32 %v536_v25, %v2800_v29  ;;  %v498_v29 = vadd.f32 %v435_v41, %v350_v39  ;;  %v519_v51 = vor.u32 1.1754944e-38, %v518_v55  ;;  %v2876_v25 = vld [vmem:[#allocation11 + $0x198] sm:$0xff]  ;;  %897 = vmatpush.msrb.mxu2 %v2872_v23  ;;  %v2902_v39 = vld [vmem:[#allocation11 + $0x120] sm:$0xff]  ;;  %v2904_v41 = vld [vmem:[#allocation11 + $0x128] sm:$0xff] }
 0x1a7   :  { %vm517_vm1 = vcmp.eq.f32.partialorder %v516_v57, 8.507059e+37  ;;  %917 = vmatpush.msrb.mxu3 %v2876_v25  ;;  %v2936_v55 = vld [vmem:[#allocation11 + $0xc0] sm:$0xff] }
 0x1a8   :  { %v2814_v31 = vmax.f32 %v539_v30, %v499_v27  ;;  %2008 = vpow2.f32 %v537_v28  ;;  %v2882_v28 = vld [vmem:[#allocation11 + $0x168] sm:$0xff]  ;;  %v2884_v30 = vld [vmem:[#allocation11 + $0x170] sm:$0xff]  ;;  %3640 = vst [vmem:[#allocation34_spill] sm:$0xff] %v2936_v55 }
 0x1a9   :  { %2010 = vrcp.f32 %v506_v32  ;;  %878 = vmatpush.msrb.mxu1 %v2882_v28  ;;  %898 = vmatpush.msrb.mxu2 %v2884_v30 }
 0x1aa   :  { %v541_v33 = vsub.f32 %v499_v27, %v2814_v31  ;;  %v2880_v27 = vld [vmem:[#allocation11 + $0x160] sm:$0xff] }
 0x1ab   :  { %858 = vmatpush.msrb.mxu0 %v2880_v27 }
 0x1ac   :  { %v542_v34 = vmul.f32 1.442695, %v541_v33  ;;  %v2892_v33 = vld [vmem:[#allocation11 + $0x140] sm:$0xff] }
 0x1ad   :  { %859 = vmatpush.msrb.mxu0 %v2892_v33 }
 0x1ae   :  { %2012 = vpow2.f32 %v542_v34  ;;  %v2009_v35 = vpop.eup %2008  ;;  %v2894_v34 = vld [vmem:[#allocation11 + $0x148] sm:$0xff] }
 0x1af   :  { %v2011_v36 = vpop.eup %2010  ;;  %v547_v37 = vmul.f32 %v2009_v35, %v2803_v40  ;;  %v544_v56 = vmul.f32 %v2009_v35, %v2810_v61  ;;  %v570_v61 = vld [vmem:[#allocation2 + $0x50] sm:$0xff]  ;;  %879 = vmatpush.msrb.mxu1 %v2894_v34  ;;  %860 = vmatpush.msrb.mxu0 %v2902_v39 }
 0x1b0   :  { %v508_v43 = vmul.f32 %v2011_v36, %v506_v32  ;;  %vm513_vm10 = vweird.f32 %v2011_v36  ;;  %v2888_v32 = vld [vmem:[#allocation11 + $0x178] sm:$0xff]  ;;  %v2896_v35 = vld [vmem:[#allocation11 + $0x150] sm:$0xff] }
 0x1b1   :  { %vm514_vm13 = vmor %vm512_vm12, %vm513_vm10  ;;  %918 = vmatpush.msrb.mxu3 %v2888_v32  ;;  %899 = vmatpush.msrb.mxu2 %v2896_v35 }
 0x1b2   :  { %v509_v44 = vsub.f32 1.0, %v508_v43  ;;  %880 = vmatpush.msrb.mxu1 %v2904_v41 }
 0x1b4   :  { %v2013_v38 = vpop.eup %2012  ;;  %v510_v46 = vmul.f32 %v2011_v36, %v509_v44 }
 0x1b5   :  { %v2818_v42 = vadd.f32 %v2013_v38, %v547_v37 }
 0x1b6   :  { %v511_v50 = vadd.f32 %v2011_v36, %v510_v46  ;;  %v2914_v46 = vld [vmem:[#allocation11 + $0x100] sm:$0xff] }
 0x1b7   :  { %2014 = vrcp.f32 %v2818_v42  ;;  %v560_v40 = vand.u32 2147483648, %v2818_v42  ;;  %v558_v54 = vand.u32 2147483647, %v2818_v42  ;;  %vm554_vm14 = vweird.f32 %v2818_v42  ;;  %861 = vmatpush.msrb.mxu0 %v2914_v46 }
 0x1b8   :  { %2016 = vtanh.f32 %v498_v29  ;;  %v515_v60 = vsel %vm514_vm13, %v2011_v36, %v511_v50  ;;  %v2908_v29 = vld [vmem:[#allocation11 + $0x130] sm:$0xff]  ;;  %v2924_v50 = vld [vmem:[#allocation11 + $0xe0] sm:$0xff] }
 0x1b9   :  { %v561_v59 = vor.u32 1.1754944e-38, %v560_v40  ;;  %vm559_vm0 = vcmp.eq.f32.partialorder %v558_v54, 8.507059e+37  ;;  %v520_v3 = vsel %vm517_vm1, %v519_v51, %v515_v60  ;;  %900 = vmatpush.msrb.mxu2 %v2908_v29  ;;  %3637 = vst [vmem:[#allocation31_spill] sm:$0xff] %v2924_v50  ;;  %v2932_v54 = vld [vmem:[#allocation11 + $0xf8] sm:$0xff]  ;;  %862 = vmatpush.msrb.mxu0 %v2924_v50  ;;  %v2950_v51 = vld [vmem:[#allocation11 + $0xa8] sm:$0xff] }
 0x1ba   :  { %3639 = vst [vmem:[#allocation33_spill] sm:$0xff] %v2932_v54 }
 0x1bb   :  { %3644 = vst [vmem:[#allocation38_spill] sm:$0xff] %v2950_v51  ;;  %863 = vmatpush.msrb.mxu0 %v2936_v55 }
 0x1bd   :  { %v2015_v45 = vpop.eup %2014 }
 0x1be   :  { %v550_v47 = vmul.f32 %v2015_v45, %v2818_v42  ;;  %v2017_v49 = vpop.eup %2016  ;;  %vm555_vm11 = vweird.f32 %v2015_v45 }
 0x1bf   :  { %v545_v52 = vmul.f32 %v2017_v49, %v2013_v38  ;;  %vm556_vm15 = vmor %vm554_vm14, %vm555_vm11  ;;  %v2900_v38 = vld [vmem:[#allocation11 + $0x158] sm:$0xff] }
 0x1c0   :  { %v551_v48 = vsub.f32 1.0, %v550_v47  ;;  %919 = vmatpush.msrb.mxu3 %v2900_v38  ;;  %v2916_v47 = vld [vmem:[#allocation11 + $0x108] sm:$0xff]  ;;  %v2922_v49 = vld [vmem:[#allocation11 + $0x118] sm:$0xff] }
 0x1c1   :  { %v2826_v62 = vadd.f32 %v545_v52, %v544_v56  ;;  %881 = vmatpush.msrb.mxu1 %v2916_v47  ;;  %v2928_v52 = vld [vmem:[#allocation11 + $0xe8] sm:$0xff] }
 0x1c2   :  { %v552_v53 = vmul.f32 %v2015_v45, %v551_v48  ;;  %v2920_v48 = vld [vmem:[#allocation11 + $0x110] sm:$0xff]  ;;  %3638 = vst [vmem:[#allocation32_spill] sm:$0xff] %v2928_v52  ;;  %v2938_v56 = vld [vmem:[#allocation11 + $0xc8] sm:$0xff] }
 0x1c3   :  { %3633 = vst [vmem:[#allocation27_spill] sm:$0xff] %v2826_v62  ;;  %901 = vmatpush.msrb.mxu2 %v2920_v48  ;;  %882 = vmatpush.msrb.mxu1 %v2928_v52 }
 0x1c4   :  { %v553_v58 = vadd.f32 %v2015_v45, %v552_v53  ;;  %v2930_v53 = vld [vmem:[#allocation11 + $0xf0] sm:$0xff] }
 0x1c5   :  { %902 = vmatpush.msrb.mxu2 %v2930_v53  ;;  %883 = vmatpush.msrb.mxu1 %v2938_v56 }
 0x1c6   :  { %v557_v63 = vsel %vm556_vm15, %v2015_v45, %v553_v58  ;;  %v2912_v45 = vld [vmem:[#allocation11 + $0x138] sm:$0xff]  ;;  %v2942_v58 = vld [vmem:[#allocation11 + $0xd0] sm:$0xff] }
 0x1c7   :  { %v562_v1 = vsel %vm559_vm0, %v561_v59, %v557_v63  ;;  %920 = vmatpush.msrb.mxu3 %v2912_v45  ;;  %3641 = vst [vmem:[#allocation35_spill] sm:$0xff] %v2942_v58  ;;  %v2944_v59 = vld [vmem:[#allocation11 + $0xd8] sm:$0xff]  ;;  %v2948_v63 = vld [vmem:[#allocation11 + $0xa0] sm:$0xff]  ;;  %903 = vmatpush.msrb.mxu2 %v2942_v58 }
 0x1c8   :  { %v563_v2 = vmul.f32 %v562_v1, %v2826_v62  ;;  %3642 = vst [vmem:[#allocation36_spill] sm:$0xff] %v2944_v59  ;;  %v2954_v1 = vld [vmem:[#allocation11 + $0xb0] sm:$0xff]  ;;  %864 = vmatpush.msrb.mxu0 %v2948_v63  ;;  %884 = vmatpush.msrb.mxu1 %v2950_v51 }
 0x1c9   :  { %921 = vmatpush.msrb.mxu3 %v2922_v49  ;;  %3643 = vst [vmem:[#allocation37_spill] sm:$0xff] %v2948_v63  ;;  %904 = vmatpush.msrb.mxu2 %v2954_v1 }
 0x1ca   :  { %v564_v4 = vmul.f32 %v563_v2, %v520_v3  ;;  %3645 = vst [vmem:[#allocation39_spill] sm:$0xff] %v2954_v1  ;;  %v2956_v2 = vld [vmem:[#allocation11 + $0xb8] sm:$0xff] }
 0x1cb   :  { %922 = vmatpush.msrb.mxu3 %v2932_v54  ;;  %3646 = vst [vmem:[#allocation40_spill] sm:$0xff] %v2956_v2 }
 0x1cc   :  { %566 = vst [vmem:[#allocation13 + $0x8] sm:$0xff] %v564_v4  ;;  %652 = vmatmul.f32.vlgmr.msra.gmra.mxu0 %v564_v4  ;;  %672 = vmatmul.f32.vlgmr.msra.gmra.mxu1 %v564_v4 }
 0x1cd   :  { %692 = vmatmul.f32.vlgmr.msra.gmra.mxu2 %v564_v4  ;;  %712 = vmatmul.f32.vlgmr.msra.gmra.mxu3 %v564_v4  ;;  %v2960_v4 = vld [vmem:[#allocation11 + $0x80] sm:$0xff] }
 0x1ce   :  { %923 = vmatpush.msrb.mxu3 %v2944_v59  ;;  %3647 = vst [vmem:[#allocation41_spill] sm:$0xff] %v2960_v4  ;;  %865 = vmatpush.msrb.mxu0 %v2960_v4 }
 0x1d0   :  { %924 = vmatpush.msrb.mxu3 %v2956_v2 }
 0x250   :  { %v693_v5 = vpop.f32.mrf.mxu2  ;;  %v713_v26 = vpop.f32.mrf.mxu3 }
 0x251   :  { %v2829_v6 = vadd.f32 %v693_v5, %v570_v61  ;;  %v719_v37 = vadd.f32 %v713_v26, %v571_v24  ;;  %v2962_v61 = vld [vmem:[#allocation11 + $0x88] sm:$0xff]  ;;  %v2973_v26 = vld [vmem:[#allocation11 + $0x60] sm:$0xff] }
 0x252   :  { %3648 = vst [vmem:[#allocation42_spill] sm:$0xff] %v2962_v61  ;;  %885 = vmatpush.msrb.mxu1 %v2962_v61  ;;  %866 = vmatpush.msrb.mxu0 %v2973_v26 }
 0x253   :  { %v741_v7 = vand.u32 2147483647, %v2829_v6  ;;  %v1965_v40 = vmul.f32 -1.442695, %v719_v37  ;;  %v740_v24 = vmin.f32 %v2829_v6, 0.0  ;;  %3650 = vst [vmem:[#allocation44_spill] sm:$0xff] %v2973_v26 }
 0x254   :  { %v2975_v37 = vld [vmem:[#allocation11 + $0x68] sm:$0xff]  ;;  %v3006_v26 = vld [vmem:[#allocation11 + $0x38] sm:$0xff] }
 0x255   :  { %v742_v11 = vsub.f32 0.0, %v741_v7  ;;  %3651 = vst [vmem:[#allocation45_spill] sm:$0xff] %v2975_v37  ;;  %886 = vmatpush.msrb.mxu1 %v2975_v37  ;;  %v3004_v37 = vld [vmem:[#allocation11 + $0x30] sm:$0xff] }
 0x257   :  { %v743_v16 = vmul.f32 1.442695, %v742_v11  ;;  %v2966_v11 = vld [vmem:[#allocation11 + $0x90] sm:$0xff] }
 0x258   :  { %905 = vmatpush.msrb.mxu2 %v2966_v11 }
 0x259   :  { %2018 = vpow2.f32 %v743_v16  ;;  %v2968_v16 = vld [vmem:[#allocation11 + $0x98] sm:$0xff] }
 0x25a   :  { %3649 = vst [vmem:[#allocation43_spill] sm:$0xff] %v2968_v16  ;;  %925 = vmatpush.msrb.mxu3 %v2968_v16  ;;  %v3000_v16 = vld [vmem:[#allocation11 + $0x28] sm:$0xff] }
 0x25f   :  { %v2019_v36 = vpop.eup %2018 }
 0x260   :  { %v745_v43 = vadd.f32 1.0, %v2019_v36  ;;  %v748_v44 = vmul.f32 -0.5, %v2019_v36  ;;  %v751_v60 = vand.u32 2147483647, %v2019_v36 }
 0x262   :  { %2020 = vlog2.f32 %v745_v43  ;;  %v749_v57 = vadd.f32 1.0, %v748_v44  ;;  %vm752_vm2 = vcmp.lt.f32.partialorder %v751_v60, 0.0004427343  ;;  %v673_v43 = vpop.f32.mrf.mxu1  ;;  %v2985_v60 = vld [vmem:[#allocation11 + $0x40] sm:$0xff] }
 0x263   :  { %2022 = vpow2.f32 %v1965_v40  ;;  %v2979_v40 = vld [vmem:[#allocation11 + $0x70] sm:$0xff]  ;;  %3652 = vst [vmem:[#allocation46_spill] sm:$0xff] %v2985_v60  ;;  %867 = vmatpush.msrb.mxu0 %v2985_v60  ;;  %v3022_v60 = vld [vmem:[#allocation11 + $0x18] sm:$0xff] }
 0x264   :  { %v750_v7 = vmul.f32 %v2019_v36, %v749_v57  ;;  %v569_v36 = vld [vmem:[#allocation2 + $0x48] sm:$0xff]  ;;  %v2981_v57 = vld [vmem:[#allocation11 + $0x78] sm:$0xff]  ;;  %906 = vmatpush.msrb.mxu2 %v2979_v40 }
 0x265   :  { %v717_v61 = vadd.f32 %v673_v43, %v569_v36  ;;  %926 = vmatpush.msrb.mxu3 %v2981_v57 }
 0x268   :  { %v2021_v3 = vpop.eup %2020 }
 0x269   :  { %v747_v5 = vmul.f32 0.6931472, %v2021_v3  ;;  %v2987_v3 = vld [vmem:[#allocation11 + $0x48] sm:$0xff]  ;;  %v2023_v62 = vpop.eup %2022 }
 0x26a   :  { %3653 = vst [vmem:[#allocation47_spill] sm:$0xff] %v2987_v3  ;;  %887 = vmatpush.msrb.mxu1 %v2987_v3  ;;  %v3010_v43 = vadd.f32 1.0, %v2023_v62  ;;  %v3020_v3 = vld [vmem:[#allocation11 + $0x10] sm:$0xff] }
 0x26b   :  { %v753_v44 = vsel %vm752_vm2, %v750_v7, %v747_v5  ;;  %v2991_v5 = vld [vmem:[#allocation11 + $0x50] sm:$0xff]  ;;  %v2993_v7 = vld [vmem:[#allocation11 + $0x58] sm:$0xff] }
 0x26c   :  { %v754_v6 = vsub.f32 %v740_v24, %v753_v44  ;;  %v2998_v44 = vld [vmem:[#allocation11 + $0x20] sm:$0xff]  ;;  %907 = vmatpush.msrb.mxu2 %v2991_v5  ;;  %927 = vmatpush.msrb.mxu3 %v2993_v7  ;;  %vm730_vm5 = vweird.f32 %v3010_v43 }
 0x26d   :  { %868 = vmatpush.msrb.mxu0 %v2998_v44  ;;  %888 = vmatpush.msrb.mxu1 %v3000_v16 }
 0x26e   :  { %v755_v4 = vmul.f32 1.442695, %v754_v6  ;;  %v757_v24 = vadd.f32 %v754_v6, %v2814_v31  ;;  %v3014_v31 = vld [vmem:[#allocation11] sm:$0xff]  ;;  %v3016_v6 = vld [vmem:[#allocation11 + $0x8] sm:$0xff]  ;;  %908 = vmatpush.msrb.mxu2 %v3004_v37  ;;  %928 = vmatpush.msrb.mxu3 %v3006_v26 }
 0x26f   :  { %869 = vmatpush.msrb.mxu0 %v3014_v31  ;;  %889 = vmatpush.msrb.mxu1 %v3016_v6 }
 0x270   :  { %v3008_v36 = vmax.f32 %v757_v24, %v717_v61  ;;  %2024 = vpow2.f32 %v755_v4  ;;  %909 = vmatpush.msrb.mxu2 %v3020_v3  ;;  %929 = vmatpush.msrb.mxu3 %v3022_v60 }
 0x271   :  { %2026 = vrcp.f32 %v3010_v43  ;;  %1072 = vmatpush.msra.mxu0 %v2832_v8  ;;  %1092 = vmatpush.msra.mxu1 %v2834_v9 }
 0x272   :  { %3654 = vst [vmem:[#allocation48_spill] sm:$0xff] %v3008_v36  ;;  %v759_v62 = vsub.f32 %v717_v61, %v3008_v36  ;;  %1112 = vmatpush.msra.mxu2 %v2836_v10  ;;  %1132 = vmatpush.msra.mxu3 %v2840_v12  ;;  %v568_v36 = vld [vmem:[#allocation2 + $0x40] sm:$0xff] }
 0x273   :  { %1073 = vmatpush.msra.mxu0 %v2844_v13  ;;  %1093 = vmatpush.msra.mxu1 %v2846_v14 }
 0x274   :  { %v760_v24 = vmul.f32 1.442695, %v759_v62  ;;  %1113 = vmatpush.msra.mxu2 %v2848_v15  ;;  %1133 = vmatpush.msra.mxu3 %v2852_v0  ;;  %v653_v0 = vpop.f32.mrf.mxu0 }
 0x275   :  { %1074 = vmatpush.msra.mxu0 %v2856_v17  ;;  %1094 = vmatpush.msra.mxu1 %v2858_v18 }
 0x276   :  { %2028 = vpow2.f32 %v760_v24  ;;  %v3038_v4 = vpop.eup %2024  ;;  %1114 = vmatpush.msra.mxu2 %v2860_v19  ;;  %1134 = vmatpush.msra.mxu3 %v2864_v20 }
 0x277   :  { %v3044_v61 = vpop.eup %2026  ;;  %v765_v62 = vmul.f32 %v3038_v4, %v2818_v42  ;;  %1075 = vmatpush.msra.mxu0 %v2868_v21  ;;  %1095 = vmatpush.msra.mxu1 %v2870_v22  ;;  %v716_v42 = vadd.f32 %v653_v0, %v568_v36 }
 0x278   :  { %1115 = vmatpush.msra.mxu2 %v2872_v23  ;;  %1135 = vmatpush.msra.mxu3 %v2876_v25  ;;  %v726_v19 = vmul.f32 %v3044_v61, %v3010_v43  ;;  %vm731_vm3 = vweird.f32 %v3044_v61 }
 0x279   :  { %1076 = vmatpush.msra.mxu0 %v2880_v27  ;;  %1096 = vmatpush.msra.mxu1 %v2882_v28  ;;  %vm3101_vm6 = vmor %vm730_vm5, %vm731_vm3 }
 0x27a   :  { %1116 = vmatpush.msra.mxu2 %v2884_v30  ;;  %1136 = vmatpush.msra.mxu3 %v2888_v32 }
 0x27b   :  { %1077 = vmatpush.msra.mxu0 %v2892_v33  ;;  %1097 = vmatpush.msra.mxu1 %v2894_v34 }
 0x27c   :  { %v2029_v24 = vpop.eup %2028  ;;  %1117 = vmatpush.msra.mxu2 %v2896_v35  ;;  %1137 = vmatpush.msra.mxu3 %v2900_v38 }
 0x27d   :  { %v3054_v18 = vadd.f32 %v2029_v24, %v765_v62  ;;  %v727_v62 = vsub.f32 1.0, %v726_v19  ;;  %1078 = vmatpush.msra.mxu0 %v2902_v39  ;;  %1098 = vmatpush.msra.mxu1 %v2904_v41 }
 0x27e   :  { %1118 = vmatpush.msra.mxu2 %v2908_v29  ;;  %1138 = vmatpush.msra.mxu3 %v2912_v45 }
 0x27f   :  { %3655 = vst [vmem:[#allocation49_spill] sm:$0xff] %v3054_v18  ;;  %2030 = vrcp.f32 %v3054_v18  ;;  %1079 = vmatpush.msra.mxu0 %v2914_v46  ;;  %1099 = vmatpush.msra.mxu1 %v2916_v47  ;;  %v728_v19 = vmul.f32 %v3044_v61, %v727_v62  ;;  %vm772_vm7 = vweird.f32 %v3054_v18 }
 0x280   :  { %2032 = vtanh.f32 %v716_v42  ;;  %1119 = vmatpush.msra.mxu2 %v2920_v48  ;;  %1139 = vmatpush.msra.mxu3 %v2922_v49 }
 0x281   :  { %1080 = vmatpush.msra.mxu0 %v2924_v50  ;;  %1100 = vmatpush.msra.mxu1 %v2928_v52  ;;  %v729_v52 = vadd.f32 %v3044_v61, %v728_v19  ;;  %v778_v50 = vand.u32 2147483648, %v3054_v18  ;;  %v3656_v19 = vld [vmem:[#allocation41_spill] sm:$0xff] }
 0x282   :  { %1120 = vmatpush.msra.mxu2 %v2930_v53  ;;  %1140 = vmatpush.msra.mxu3 %v2932_v54 }
 0x283   :  { %1081 = vmatpush.msra.mxu0 %v2936_v55  ;;  %1101 = vmatpush.msra.mxu1 %v2938_v56 }
 0x284   :  { %1121 = vmatpush.msra.mxu2 %v2942_v58  ;;  %1141 = vmatpush.msra.mxu3 %v2944_v59  ;;  %v736_v59 = vand.u32 2147483648, %v3010_v43  ;;  %v3657_v58 = vld [vmem:[#allocation42_spill] sm:$0xff] }
 0x285   :  { %v2031_v0 = vpop.eup %2030  ;;  %1082 = vmatpush.msra.mxu0 %v2948_v63  ;;  %1102 = vmatpush.msra.mxu1 %v2950_v51  ;;  %v3658_v63 = vld [vmem:[#allocation27_spill] sm:$0xff] }
 0x286   :  { %v768_v36 = vmul.f32 %v2031_v0, %v3054_v18  ;;  %v2033_v62 = vpop.eup %2032  ;;  %vm773_vm4 = vweird.f32 %v2031_v0  ;;  %1122 = vmatpush.msra.mxu2 %v2954_v1  ;;  %1142 = vmatpush.msra.mxu3 %v2956_v2  ;;  %v762_v51 = vmul.f32 %v3038_v4, %v3658_v63  ;;  %v3661_v2 = vld [vmem:[#allocation43_spill] sm:$0xff]  ;;  %v3663_v63 = vld [vmem:[#allocation45_spill] sm:$0xff]  ;;  %v733_v4 = vsel %vm3101_vm6, %v3044_v61, %v729_v52 }
 0x287   :  { %v763_v54 = vmul.f32 %v2033_v62, %v2029_v24  ;;  %1083 = vmatpush.msra.mxu0 %v3656_v19  ;;  %1103 = vmatpush.msra.mxu1 %v3657_v58  ;;  %vm774_vm8 = vmor %vm772_vm7, %vm773_vm4  ;;  %v779_v58 = vor.u32 1.1754944e-38, %v778_v50  ;;  %v3662_v19 = vld [vmem:[#allocation44_spill] sm:$0xff]  ;;  %v3665_v50 = vld [vmem:[#allocation47_spill] sm:$0xff] }
 0x288   :  { %v769_v42 = vsub.f32 1.0, %v768_v36  ;;  %v776_v36 = vand.u32 2147483647, %v3054_v18  ;;  %1123 = vmatpush.msra.mxu2 %v2966_v11  ;;  %1143 = vmatpush.msra.mxu3 %v3661_v2  ;;  %v3664_v2 = vld [vmem:[#allocation46_spill] sm:$0xff] }
 0x289   :  { %1084 = vmatpush.msra.mxu0 %v3662_v19  ;;  %1104 = vmatpush.msra.mxu1 %v3663_v63  ;;  %v3115_v1 = vadd.f32 %v763_v54, %v762_v51 }
 0x28a   :  { %v770_v55 = vmul.f32 %v2031_v0, %v769_v42  ;;  %v734_v42 = vand.u32 2147483647, %v3010_v43  ;;  %vm777_vm9 = vcmp.eq.f32.partialorder %v776_v36, 8.507059e+37  ;;  %1124 = vmatpush.msra.mxu2 %v2979_v40  ;;  %1144 = vmatpush.msra.mxu3 %v2981_v57  ;;  %v737_v43 = vor.u32 1.1754944e-38, %v736_v59  ;;  %v3668_v59 = vld [vmem:[#allocation30_spill] sm:$0xff]  ;;  %v3684_v36 = vld [vmem:[#allocation49_spill] sm:$0xff] }
 0x28b   :  { %1085 = vmatpush.msra.mxu0 %v3664_v2  ;;  %1105 = vmatpush.msra.mxu1 %v3665_v50 }
 0x28c   :  { %v771_v62 = vadd.f32 %v2031_v0, %v770_v55  ;;  %vm735_vm10 = vcmp.eq.f32.partialorder %v734_v42, 8.507059e+37  ;;  %1125 = vmatpush.msra.mxu2 %v2991_v5  ;;  %1145 = vmatpush.msra.mxu3 %v2993_v7  ;;  %v786_v42 = vld [vmem:[#allocation2 + $0x60] sm:$0xff] }
 0x28d   :  { %v738_v52 = vsel %vm735_vm10, %v737_v43, %v733_v4  ;;  %1086 = vmatpush.msra.mxu0 %v2998_v44  ;;  %1106 = vmatpush.msra.mxu1 %v3000_v16 }
 0x28e   :  { %v775_v55 = vsel %vm774_vm8, %v2031_v0, %v771_v62  ;;  %1126 = vmatpush.msra.mxu2 %v3004_v37  ;;  %1146 = vmatpush.msra.mxu3 %v3006_v26 }
 0x28f   :  { %v780_v18 = vsel %vm777_vm9, %v779_v58, %v775_v55  ;;  %1087 = vmatpush.msra.mxu0 %v3014_v31  ;;  %1107 = vmatpush.msra.mxu1 %v3016_v6  ;;  %v3667_v58 = vld [vmem:[#allocation29_spill] sm:$0xff] }
 0x290   :  { %v781_v63 = vmul.f32 %v780_v18, %v3115_v1  ;;  %1127 = vmatpush.msra.mxu2 %v3020_v3  ;;  %1147 = vmatpush.msra.mxu3 %v3022_v60  ;;  %v3666_v18 = vld [vmem:[#allocation28_spill] sm:$0xff] }
 0x292   :  { %v782_v54 = vmul.f32 %v781_v63, %v738_v52 }
 0x294   :  { %784 = vst [vmem:[#allocation13 + $0x10] sm:$0xff] %v782_v54  ;;  %870 = vmatmul.f32.vlgmr.msrb.gmra.mxu0 %v782_v54  ;;  %890 = vmatmul.f32.vlgmr.msrb.gmra.mxu1 %v782_v54 }
 0x295   :  { %910 = vmatmul.f32.vlgmr.msrb.gmra.mxu2 %v782_v54  ;;  %930 = vmatmul.f32.vlgmr.msrb.gmra.mxu3 %v782_v54 }
 0x296   :  { %1290 = vmatpush.msrb.mxu0 %v2832_v8  ;;  %1310 = vmatpush.msrb.mxu1 %v2834_v9  ;;  %v3669_v8 = vld [vmem:[#allocation31_spill] sm:$0xff]  ;;  %v3670_v9 = vld [vmem:[#allocation32_spill] sm:$0xff] }
 0x297   :  { %1330 = vmatpush.msrb.mxu2 %v2836_v10  ;;  %1350 = vmatpush.msrb.mxu3 %v2840_v12  ;;  %v3671_v10 = vld [vmem:[#allocation33_spill] sm:$0xff]  ;;  %v3672_v12 = vld [vmem:[#allocation34_spill] sm:$0xff] }
 0x298   :  { %1291 = vmatpush.msrb.mxu0 %v2844_v13  ;;  %1311 = vmatpush.msrb.mxu1 %v2846_v14  ;;  %v3673_v13 = vld [vmem:[#allocation35_spill] sm:$0xff]  ;;  %v3674_v14 = vld [vmem:[#allocation36_spill] sm:$0xff] }
 0x299   :  { %1331 = vmatpush.msrb.mxu2 %v2848_v15  ;;  %1351 = vmatpush.msrb.mxu3 %v3666_v18  ;;  %v3675_v15 = vld [vmem:[#allocation37_spill] sm:$0xff] }
 0x29a   :  { %1292 = vmatpush.msrb.mxu0 %v2856_v17  ;;  %1312 = vmatpush.msrb.mxu1 %v3667_v58  ;;  %v3676_v17 = vld [vmem:[#allocation38_spill] sm:$0xff] }
 0x29b   :  { %1332 = vmatpush.msrb.mxu2 %v3668_v59  ;;  %1352 = vmatpush.msrb.mxu3 %v2864_v20  ;;  %v3677_v20 = vld [vmem:[#allocation39_spill] sm:$0xff] }
 0x29c   :  { %1293 = vmatpush.msrb.mxu0 %v2868_v21  ;;  %1313 = vmatpush.msrb.mxu1 %v2870_v22  ;;  %v3678_v21 = vld [vmem:[#allocation40_spill] sm:$0xff]  ;;  %v3679_v22 = vld [vmem:[#allocation41_spill] sm:$0xff] }
 0x29d   :  { %1333 = vmatpush.msrb.mxu2 %v2872_v23  ;;  %1353 = vmatpush.msrb.mxu3 %v2876_v25  ;;  %v3680_v23 = vld [vmem:[#allocation42_spill] sm:$0xff]  ;;  %v3681_v25 = vld [vmem:[#allocation43_spill] sm:$0xff] }
 0x29e   :  { %1294 = vmatpush.msrb.mxu0 %v2880_v27  ;;  %1314 = vmatpush.msrb.mxu1 %v2882_v28  ;;  %v3682_v27 = vld [vmem:[#allocation45_spill] sm:$0xff] }
 0x29f   :  { %1334 = vmatpush.msrb.mxu2 %v2884_v30  ;;  %1354 = vmatpush.msrb.mxu3 %v2888_v32  ;;  %v788_v28 = vld [vmem:[#allocation2 + $0x70] sm:$0xff] }
 0x2a0   :  { %1295 = vmatpush.msrb.mxu0 %v2892_v33  ;;  %1315 = vmatpush.msrb.mxu1 %v2894_v34 }
 0x2a1   :  { %1335 = vmatpush.msrb.mxu2 %v2896_v35  ;;  %1355 = vmatpush.msrb.mxu3 %v2900_v38  ;;  %v789_v38 = vld [vmem:[#allocation2 + $0x78] sm:$0xff] }
 0x2a2   :  { %1296 = vmatpush.msrb.mxu0 %v2902_v39  ;;  %1316 = vmatpush.msrb.mxu1 %v2904_v41 }
 0x2a3   :  { %1336 = vmatpush.msrb.mxu2 %v2908_v29  ;;  %1356 = vmatpush.msrb.mxu3 %v2912_v45 }
 0x2a4   :  { %1297 = vmatpush.msrb.mxu0 %v2914_v46  ;;  %1317 = vmatpush.msrb.mxu1 %v2916_v47 }
 0x2a5   :  { %1337 = vmatpush.msrb.mxu2 %v2920_v48  ;;  %1357 = vmatpush.msrb.mxu3 %v2922_v49 }
 0x2a6   :  { %1298 = vmatpush.msrb.mxu0 %v3669_v8  ;;  %1318 = vmatpush.msrb.mxu1 %v3670_v9 }
 0x2a7   :  { %1338 = vmatpush.msrb.mxu2 %v2930_v53  ;;  %1358 = vmatpush.msrb.mxu3 %v3671_v10 }
 0x2a8   :  { %1299 = vmatpush.msrb.mxu0 %v3672_v12  ;;  %1319 = vmatpush.msrb.mxu1 %v2938_v56 }
 0x2a9   :  { %1339 = vmatpush.msrb.mxu2 %v3673_v13  ;;  %1359 = vmatpush.msrb.mxu3 %v3674_v14 }
 0x2aa   :  { %1300 = vmatpush.msrb.mxu0 %v3675_v15  ;;  %1320 = vmatpush.msrb.mxu1 %v3676_v17 }
 0x2ab   :  { %1340 = vmatpush.msrb.mxu2 %v3677_v20  ;;  %1360 = vmatpush.msrb.mxu3 %v3678_v21 }
 0x2ac   :  { %1301 = vmatpush.msrb.mxu0 %v3679_v22  ;;  %1321 = vmatpush.msrb.mxu1 %v3680_v23 }
 0x2ad   :  { %1341 = vmatpush.msrb.mxu2 %v2966_v11  ;;  %1361 = vmatpush.msrb.mxu3 %v3681_v25  ;;  %v787_v11 = vld [vmem:[#allocation2 + $0x68] sm:$0xff] }
 0x2ae   :  { %1302 = vmatpush.msrb.mxu0 %v3662_v19  ;;  %1322 = vmatpush.msrb.mxu1 %v3682_v27 }
 0x2af   :  { %1342 = vmatpush.msrb.mxu2 %v2979_v40  ;;  %1362 = vmatpush.msrb.mxu3 %v2981_v57 }
 0x2b0   :  { %1303 = vmatpush.msrb.mxu0 %v3664_v2  ;;  %1323 = vmatpush.msrb.mxu1 %v3665_v50 }
 0x2b1   :  { %1343 = vmatpush.msrb.mxu2 %v2991_v5  ;;  %1363 = vmatpush.msrb.mxu3 %v2993_v7 }
 0x2b2   :  { %1304 = vmatpush.msrb.mxu0 %v2998_v44  ;;  %1324 = vmatpush.msrb.mxu1 %v3000_v16 }
 0x2b3   :  { %1344 = vmatpush.msrb.mxu2 %v3004_v37  ;;  %1364 = vmatpush.msrb.mxu3 %v3006_v26 }
 0x2b4   :  { %1305 = vmatpush.msrb.mxu0 %v3014_v31  ;;  %1325 = vmatpush.msrb.mxu1 %v3016_v6 }
 0x2b5   :  { %1345 = vmatpush.msrb.mxu2 %v3020_v3  ;;  %1365 = vmatpush.msrb.mxu3 %v3022_v60  ;;  %v3683_v3 = vld [vmem:[#allocation48_spill] sm:$0xff] }
 0x311   :  { %v891_v16 = vpop.f32.mrf.mxu1  ;;  %v871_v62 = vpop.f32.mrf.mxu0 }
 0x312   :  { %v935_v57 = vadd.f32 %v891_v16, %v787_v11  ;;  %v934_v55 = vadd.f32 %v871_v62, %v786_v42  ;;  %v1004_v62 = vld [vmem:[#allocation2 + $0x80] sm:$0xff] }
 0x318   :  { %v911_v30 = vpop.f32.mrf.mxu2  ;;  %v931_v39 = vpop.f32.mrf.mxu3 }
 0x319   :  { %v936_v32 = vadd.f32 %v911_v30, %v788_v28  ;;  %v937_v29 = vadd.f32 %v931_v39, %v789_v38 }
 0x31b   :  { %v959_v33 = vand.u32 2147483647, %v936_v32  ;;  %v1966_v47 = vmul.f32 -1.442695, %v937_v29  ;;  %v958_v2 = vmin.f32 %v936_v32, 0.0 }
 0x31d   :  { %v960_v34 = vsub.f32 0.0, %v959_v33 }
 0x31f   :  { %v961_v35 = vmul.f32 1.442695, %v960_v34 }
 0x321   :  { %2034 = vpow2.f32 %v961_v35 }
 0x327   :  { %v2035_v41 = vpop.eup %2034 }
 0x328   :  { %v963_v45 = vadd.f32 1.0, %v2035_v41  ;;  %v966_v46 = vmul.f32 -0.5, %v2035_v41  ;;  %v969_v49 = vand.u32 2147483647, %v2035_v41 }
 0x32a   :  { %2036 = vlog2.f32 %v963_v45  ;;  %v967_v48 = vadd.f32 1.0, %v966_v46  ;;  %vm970_vm11 = vcmp.lt.f32.partialorder %v969_v49, 0.0004427343 }
 0x32b   :  { %2038 = vpow2.f32 %v1966_v47 }
 0x32c   :  { %v968_v51 = vmul.f32 %v2035_v41, %v967_v48  ;;  %v1007_v41 = vld [vmem:[#allocation2 + $0x98] sm:$0xff] }
 0x330   :  { %v2037_v53 = vpop.eup %2036 }
 0x331   :  { %v965_v56 = vmul.f32 0.6931472, %v2037_v53  ;;  %v2039_v40 = vpop.eup %2038 }
 0x332   :  { %v942_v44 = vadd.f32 1.0, %v2039_v40 }
 0x333   :  { %v971_v26 = vsel %vm970_vm11, %v968_v51, %v965_v56 }
 0x334   :  { %v972_v37 = vsub.f32 %v958_v2, %v971_v26  ;;  %vm948_vm14 = vweird.f32 %v942_v44  ;;  %v954_v13 = vand.u32 2147483648, %v942_v44  ;;  %v952_v15 = vand.u32 2147483647, %v942_v44  ;;  %v1005_v26 = vld [vmem:[#allocation2 + $0x88] sm:$0xff] }
 0x336   :  { %v973_v60 = vmul.f32 1.442695, %v972_v37  ;;  %v975_v5 = vadd.f32 %v972_v37, %v3683_v3  ;;  %v955_v25 = vor.u32 1.1754944e-38, %v954_v13  ;;  %vm953_vm3 = vcmp.eq.f32.partialorder %v952_v15, 8.507059e+37 }
 0x338   :  { %v3197_v7 = vmax.f32 %v975_v5, %v935_v57  ;;  %2040 = vpow2.f32 %v973_v60 }
 0x339   :  { %2042 = vrcp.f32 %v942_v44 }
 0x33a   :  { %v977_v31 = vsub.f32 %v935_v57, %v3197_v7 }
 0x33c   :  { %v978_v6 = vmul.f32 1.442695, %v977_v31 }
 0x33e   :  { %2044 = vpow2.f32 %v978_v6  ;;  %v2041_v61 = vpop.eup %2040 }
 0x33f   :  { %v2043_v0 = vpop.eup %2042  ;;  %v983_v19 = vmul.f32 %v2041_v61, %v3684_v36  ;;  %v980_v14 = vmul.f32 %v2041_v61, %v3115_v1  ;;  %v1006_v1 = vld [vmem:[#allocation2 + $0x90] sm:$0xff] }
 0x340   :  { %v944_v4 = vmul.f32 %v2043_v0, %v942_v44  ;;  %vm949_vm12 = vweird.f32 %v2043_v0 }
 0x341   :  { %vm950_vm15 = vmor %vm948_vm14, %vm949_vm12 }
 0x342   :  { %v945_v43 = vsub.f32 1.0, %v944_v4 }
 0x344   :  { %v2045_v24 = vpop.eup %2044  ;;  %v946_v52 = vmul.f32 %v2043_v0, %v945_v43 }
 0x345   :  { %v3201_v63 = vadd.f32 %v2045_v24, %v983_v19 }
 0x346   :  { %v947_v59 = vadd.f32 %v2043_v0, %v946_v52 }
 0x347   :  { %2046 = vrcp.f32 %v3201_v63  ;;  %v996_v8 = vand.u32 2147483648, %v3201_v63  ;;  %v994_v12 = vand.u32 2147483647, %v3201_v63  ;;  %vm990_vm0 = vweird.f32 %v3201_v63 }
 0x348   :  { %2048 = vtanh.f32 %v934_v55  ;;  %v951_v21 = vsel %vm950_vm15, %v2043_v0, %v947_v59 }
 0x349   :  { %v997_v20 = vor.u32 1.1754944e-38, %v996_v8  ;;  %vm995_vm2 = vcmp.eq.f32.partialorder %v994_v12, 8.507059e+37  ;;  %v956_v30 = vsel %vm953_vm3, %v955_v25, %v951_v21 }
 0x34d   :  { %v2047_v50 = vpop.eup %2046 }
 0x34e   :  { %v986_v54 = vmul.f32 %v2047_v50, %v3201_v63  ;;  %v2049_v58 = vpop.eup %2048  ;;  %vm991_vm13 = vweird.f32 %v2047_v50 }
 0x34f   :  { %v981_v9 = vmul.f32 %v2049_v58, %v2045_v24  ;;  %vm992_vm1 = vmor %vm990_vm0, %vm991_vm13 }
 0x350   :  { %v987_v18 = vsub.f32 1.0, %v986_v54 }
 0x351   :  { %v3209_v22 = vadd.f32 %v981_v9, %v980_v14 }
 0x352   :  { %v988_v10 = vmul.f32 %v2047_v50, %v987_v18 }
 0x354   :  { %v989_v17 = vadd.f32 %v2047_v50, %v988_v10 }
 0x356   :  { %v993_v23 = vsel %vm992_vm1, %v2047_v50, %v989_v17 }
 0x357   :  { %v998_v27 = vsel %vm995_vm2, %v997_v20, %v993_v23 }
 0x358   :  { %v999_v28 = vmul.f32 %v998_v27, %v3209_v22 }
 0x35a   :  { %v1000_v32 = vmul.f32 %v999_v28, %v956_v30 }
 0x35c   :  { %1002 = vst [vmem:[#allocation13 + $0x18] sm:$0xff] %v1000_v32  ;;  %1088 = vmatmul.f32.vlgmr.msra.gmra.mxu0 %v1000_v32  ;;  %1108 = vmatmul.f32.vlgmr.msra.gmra.mxu1 %v1000_v32 }
 0x35d   :  { %1128 = vmatmul.f32.vlgmr.msra.gmra.mxu2 %v1000_v32  ;;  %1148 = vmatmul.f32.vlgmr.msra.gmra.mxu3 %v1000_v32 }
 0x3d9   :  { %v1109_v37 = vpop.f32.mrf.mxu1  ;;  %v1089_v4 = vpop.f32.mrf.mxu0 }
 0x3da   :  { %v1153_v3 = vadd.f32 %v1109_v37, %v1005_v26  ;;  %v3269_v26 = vld [vmem:[#allocation11 + $0x188] sm:$0xff]  ;;  %v3271_v37 = vld [vmem:[#allocation11 + $0x190] sm:$0xff] }
 0x3e0   :  { %v1129_v33 = vpop.f32.mrf.mxu2  ;;  %v1149_v29 = vpop.f32.mrf.mxu3 }
 0x3e1   :  { %v1154_v34 = vadd.f32 %v1129_v33, %v1006_v1  ;;  %v1155_v46 = vadd.f32 %v1149_v29, %v1007_v41  ;;  %v3235_v41 = vld [vmem:[#allocation11 + $0x1f0] sm:$0xff] }
 0x3e2   :  { %1548 = vmatpush.msra.mxu2 %v3235_v41 }
 0x3e3   :  { %v1177_v35 = vand.u32 2147483647, %v1154_v34  ;;  %v1967_v49 = vmul.f32 -1.442695, %v1155_v46  ;;  %v1176_v16 = vmin.f32 %v1154_v34, 0.0  ;;  %v3243_v46 = vld [vmem:[#allocation11 + $0x1c0] sm:$0xff] }
 0x3e5   :  { %v1178_v38 = vsub.f32 0.0, %v1177_v35 }
 0x3e7   :  { %v1179_v39 = vmul.f32 1.442695, %v1178_v38  ;;  %v3231_v38 = vld [vmem:[#allocation11 + $0x1e0] sm:$0xff] }
 0x3e8   :  { %1508 = vmatpush.msra.mxu0 %v3231_v38 }
 0x3e9   :  { %2050 = vpow2.f32 %v1179_v39  ;;  %v3233_v39 = vld [vmem:[#allocation11 + $0x1e8] sm:$0xff] }
 0x3ea   :  { %1528 = vmatpush.msra.mxu1 %v3233_v39  ;;  %1509 = vmatpush.msra.mxu0 %v3243_v46 }
 0x3ef   :  { %v2051_v45 = vpop.eup %2050 }
 0x3f0   :  { %v1181_v47 = vadd.f32 1.0, %v2051_v45  ;;  %v1184_v48 = vmul.f32 -0.5, %v2051_v45  ;;  %v1187_v56 = vand.u32 2147483647, %v2051_v45 }
 0x3f2   :  { %2052 = vlog2.f32 %v1181_v47  ;;  %v1185_v53 = vadd.f32 1.0, %v1184_v48  ;;  %vm1188_vm4 = vcmp.lt.f32.partialorder %v1187_v56, 0.0004427343  ;;  %v3245_v47 = vld [vmem:[#allocation11 + $0x1c8] sm:$0xff]  ;;  %v3247_v48 = vld [vmem:[#allocation11 + $0x1d0] sm:$0xff]  ;;  %v3255_v56 = vld [vmem:[#allocation11 + $0x1a0] sm:$0xff] }
 0x3f3   :  { %2054 = vpow2.f32 %v1967_v49  ;;  %1529 = vmatpush.msra.mxu1 %v3245_v47  ;;  %1549 = vmatpush.msra.mxu2 %v3247_v48 }
 0x3f4   :  { %v1186_v11 = vmul.f32 %v2051_v45, %v1185_v53  ;;  %v3239_v45 = vld [vmem:[#allocation11 + $0x1f8] sm:$0xff]  ;;  %1510 = vmatpush.msra.mxu0 %v3255_v56 }
 0x3f5   :  { %1568 = vmatpush.msra.mxu3 %v3239_v45  ;;  %v3251_v53 = vld [vmem:[#allocation11 + $0x1d8] sm:$0xff] }
 0x3f7   :  { %1569 = vmatpush.msra.mxu3 %v3251_v53 }
 0x3f8   :  { %v2053_v51 = vpop.eup %2052 }
 0x3f9   :  { %v1183_v2 = vmul.f32 0.6931472, %v2053_v51  ;;  %v2055_v60 = vpop.eup %2054  ;;  %v3257_v51 = vld [vmem:[#allocation11 + $0x1a8] sm:$0xff] }
 0x3fa   :  { %v1160_v6 = vadd.f32 1.0, %v2055_v60  ;;  %1530 = vmatpush.msra.mxu1 %v3257_v51 }
 0x3fb   :  { %v1189_v40 = vsel %vm1188_vm4, %v1186_v11, %v1183_v2  ;;  %v3259_v2 = vld [vmem:[#allocation11 + $0x1b0] sm:$0xff]  ;;  %v3263_v11 = vld [vmem:[#allocation11 + $0x1b8] sm:$0xff] }
 0x3fc   :  { %v1190_v57 = vsub.f32 %v1176_v16, %v1189_v40  ;;  %vm1166_vm7 = vweird.f32 %v1160_v6  ;;  %v1172_v13 = vand.u32 2147483648, %v1160_v6  ;;  %v1170_v15 = vand.u32 2147483647, %v1160_v6  ;;  %1550 = vmatpush.msra.mxu2 %v3259_v2  ;;  %1570 = vmatpush.msra.mxu3 %v3263_v11  ;;  %v3267_v16 = vld [vmem:[#allocation11 + $0x180] sm:$0xff]  ;;  %v1225_v40 = vld [vmem:[#allocation2 + $0xb8] sm:$0xff] }
 0x3fd   :  { %1511 = vmatpush.msra.mxu0 %v3267_v16  ;;  %1531 = vmatpush.msra.mxu1 %v3269_v26 }
 0x3fe   :  { %v1191_v5 = vmul.f32 1.442695, %v1190_v57  ;;  %v1193_v44 = vadd.f32 %v1190_v57, %v3197_v7  ;;  %v1152_v7 = vadd.f32 %v1089_v4, %v1004_v62  ;;  %v1173_v27 = vor.u32 1.1754944e-38, %v1172_v13  ;;  %v3275_v57 = vld [vmem:[#allocation11 + $0x198] sm:$0xff]  ;;  %1551 = vmatpush.msra.mxu2 %v3271_v37  ;;  %v3301_v62 = vld [vmem:[#allocation11 + $0x120] sm:$0xff]  ;;  %v3303_v4 = vld [vmem:[#allocation11 + $0x128] sm:$0xff] }
 0x3ff   :  { %vm1171_vm12 = vcmp.eq.f32.partialorder %v1170_v15, 8.507059e+37  ;;  %1571 = vmatpush.msra.mxu3 %v3275_v57  ;;  %v3335_v13 = vld [vmem:[#allocation11 + $0xc0] sm:$0xff] }
 0x400   :  { %v3213_v31 = vmax.f32 %v1193_v44, %v1153_v3  ;;  %2056 = vpow2.f32 %v1191_v5  ;;  %v3281_v5 = vld [vmem:[#allocation11 + $0x168] sm:$0xff]  ;;  %v3283_v44 = vld [vmem:[#allocation11 + $0x170] sm:$0xff] }
 0x401   :  { %2058 = vrcp.f32 %v1160_v6  ;;  %1532 = vmatpush.msra.mxu1 %v3281_v5  ;;  %1552 = vmatpush.msra.mxu2 %v3283_v44 }
 0x402   :  { %v1195_v61 = vsub.f32 %v1153_v3, %v3213_v31  ;;  %v3279_v3 = vld [vmem:[#allocation11 + $0x160] sm:$0xff] }
 0x403   :  { %1512 = vmatpush.msra.mxu0 %v3279_v3 }
 0x404   :  { %v1196_v0 = vmul.f32 1.442695, %v1195_v61  ;;  %v3291_v61 = vld [vmem:[#allocation11 + $0x140] sm:$0xff] }
 0x405   :  { %1513 = vmatpush.msra.mxu0 %v3291_v61 }
 0x406   :  { %2060 = vpow2.f32 %v1196_v0  ;;  %v2057_v36 = vpop.eup %2056  ;;  %v3293_v0 = vld [vmem:[#allocation11 + $0x148] sm:$0xff] }
 0x407   :  { %v2059_v19 = vpop.eup %2058  ;;  %v1201_v24 = vmul.f32 %v2057_v36, %v3201_v63  ;;  %v1198_v14 = vmul.f32 %v2057_v36, %v3209_v22  ;;  %v1224_v22 = vld [vmem:[#allocation2 + $0xb0] sm:$0xff]  ;;  %1533 = vmatpush.msra.mxu1 %v3293_v0  ;;  %1514 = vmatpush.msra.mxu0 %v3301_v62 }
 0x408   :  { %v1162_v43 = vmul.f32 %v2059_v19, %v1160_v6  ;;  %vm1167_vm5 = vweird.f32 %v2059_v19  ;;  %v3287_v6 = vld [vmem:[#allocation11 + $0x178] sm:$0xff]  ;;  %v3295_v36 = vld [vmem:[#allocation11 + $0x150] sm:$0xff] }
 0x409   :  { %vm1168_vm8 = vmor %vm1166_vm7, %vm1167_vm5  ;;  %1572 = vmatpush.msra.mxu3 %v3287_v6  ;;  %1553 = vmatpush.msra.mxu2 %v3295_v36 }
 0x40a   :  { %v1163_v50 = vsub.f32 1.0, %v1162_v43  ;;  %1534 = vmatpush.msra.mxu1 %v3303_v4 }
 0x40c   :  { %v2061_v42 = vpop.eup %2060  ;;  %v1164_v54 = vmul.f32 %v2059_v19, %v1163_v50 }
 0x40d   :  { %v3217_v55 = vadd.f32 %v2061_v42, %v1201_v24 }
 0x40e   :  { %v1165_v8 = vadd.f32 %v2059_v19, %v1164_v54  ;;  %v3313_v54 = vld [vmem:[#allocation11 + $0x100] sm:$0xff] }
 0x40f   :  { %2062 = vrcp.f32 %v3217_v55  ;;  %v1214_v63 = vand.u32 2147483648, %v3217_v55  ;;  %v1212_v12 = vand.u32 2147483647, %v3217_v55  ;;  %vm1208_vm9 = vweird.f32 %v3217_v55  ;;  %1515 = vmatpush.msra.mxu0 %v3313_v54 }
 0x410   :  { %2064 = vtanh.f32 %v1152_v7  ;;  %v1169_v21 = vsel %vm1168_vm8, %v2059_v19, %v1165_v8  ;;  %v3307_v7 = vld [vmem:[#allocation11 + $0x130] sm:$0xff]  ;;  %v3323_v8 = vld [vmem:[#allocation11 + $0xe0] sm:$0xff] }
 0x411   :  { %v1215_v20 = vor.u32 1.1754944e-38, %v1214_v63  ;;  %vm1213_vm11 = vcmp.eq.f32.partialorder %v1212_v12, 8.507059e+37  ;;  %v1174_v32 = vsel %vm1171_vm12, %v1173_v27, %v1169_v21  ;;  %1554 = vmatpush.msra.mxu2 %v3307_v7  ;;  %v3331_v12 = vld [vmem:[#allocation11 + $0xf8] sm:$0xff]  ;;  %1516 = vmatpush.msra.mxu0 %v3323_v8  ;;  %v3349_v27 = vld [vmem:[#allocation11 + $0xa8] sm:$0xff] }
 0x413   :  { %1517 = vmatpush.msra.mxu0 %v3335_v13 }
 0x415   :  { %v2063_v52 = vpop.eup %2062 }
 0x416   :  { %v1204_v18 = vmul.f32 %v2063_v52, %v3217_v55  ;;  %v2065_v59 = vpop.eup %2064  ;;  %vm1209_vm6 = vweird.f32 %v2063_v52 }
 0x417   :  { %v1199_v9 = vmul.f32 %v2065_v59, %v2061_v42  ;;  %vm1210_vm10 = vmor %vm1208_vm9, %vm1209_vm6  ;;  %v3299_v42 = vld [vmem:[#allocation11 + $0x158] sm:$0xff] }
 0x418   :  { %v1205_v58 = vsub.f32 1.0, %v1204_v18  ;;  %1573 = vmatpush.msra.mxu3 %v3299_v42  ;;  %v3315_v18 = vld [vmem:[#allocation11 + $0x108] sm:$0xff]  ;;  %v3321_v59 = vld [vmem:[#allocation11 + $0x118] sm:$0xff] }
 0x419   :  { %v3225_v23 = vadd.f32 %v1199_v9, %v1198_v14  ;;  %1535 = vmatpush.msra.mxu1 %v3315_v18  ;;  %v3327_v9 = vld [vmem:[#allocation11 + $0xe8] sm:$0xff] }
 0x41a   :  { %v1206_v10 = vmul.f32 %v2063_v52, %v1205_v58  ;;  %v3319_v58 = vld [vmem:[#allocation11 + $0x110] sm:$0xff]  ;;  %v3337_v14 = vld [vmem:[#allocation11 + $0xc8] sm:$0xff] }
 0x41b   :  { %3685 = vst [vmem:[#allocation27_spill] sm:$0xff] %v3225_v23  ;;  %1555 = vmatpush.msra.mxu2 %v3319_v58  ;;  %1536 = vmatpush.msra.mxu1 %v3327_v9 }
 0x41c   :  { %v1207_v17 = vadd.f32 %v2063_v52, %v1206_v10  ;;  %v3329_v10 = vld [vmem:[#allocation11 + $0xf0] sm:$0xff] }
 0x41d   :  { %1556 = vmatpush.msra.mxu2 %v3329_v10  ;;  %1537 = vmatpush.msra.mxu1 %v3337_v14 }
 0x41e   :  { %v1211_v25 = vsel %vm1210_vm10, %v2063_v52, %v1207_v17  ;;  %v3311_v52 = vld [vmem:[#allocation11 + $0x138] sm:$0xff]  ;;  %v3341_v17 = vld [vmem:[#allocation11 + $0xd0] sm:$0xff] }
 0x41f   :  { %v1216_v28 = vsel %vm1213_vm11, %v1215_v20, %v1211_v25  ;;  %1574 = vmatpush.msra.mxu3 %v3311_v52  ;;  %v3343_v20 = vld [vmem:[#allocation11 + $0xd8] sm:$0xff]  ;;  %v3347_v25 = vld [vmem:[#allocation11 + $0xa0] sm:$0xff]  ;;  %1557 = vmatpush.msra.mxu2 %v3341_v17 }
 0x420   :  { %v1217_v30 = vmul.f32 %v1216_v28, %v3225_v23  ;;  %v3353_v28 = vld [vmem:[#allocation11 + $0xb0] sm:$0xff]  ;;  %1518 = vmatpush.msra.mxu0 %v3347_v25  ;;  %1538 = vmatpush.msra.mxu1 %v3349_v27 }
 0x421   :  { %1575 = vmatpush.msra.mxu3 %v3321_v59  ;;  %1558 = vmatpush.msra.mxu2 %v3353_v28 }
 0x422   :  { %v1218_v1 = vmul.f32 %v1217_v30, %v1174_v32  ;;  %v3355_v30 = vld [vmem:[#allocation11 + $0xb8] sm:$0xff] }
 0x423   :  { %1576 = vmatpush.msra.mxu3 %v3331_v12 }
 0x424   :  { %1220 = vst [vmem:[#allocation13 + $0x20] sm:$0xff] %v1218_v1  ;;  %1306 = vmatmul.f32.vlgmr.msrb.gmra.mxu0 %v1218_v1  ;;  %1326 = vmatmul.f32.vlgmr.msrb.gmra.mxu1 %v1218_v1 }
 0x425   :  { %1346 = vmatmul.f32.vlgmr.msrb.gmra.mxu2 %v1218_v1  ;;  %1366 = vmatmul.f32.vlgmr.msrb.gmra.mxu3 %v1218_v1  ;;  %v3359_v1 = vld [vmem:[#allocation11 + $0x80] sm:$0xff] }
 0x426   :  { %1577 = vmatpush.msra.mxu3 %v3343_v20  ;;  %3686 = vst [vmem:[#allocation44_spill] sm:$0xff] %v3359_v1  ;;  %1519 = vmatpush.msra.mxu0 %v3359_v1 }
 0x428   :  { %1578 = vmatpush.msra.mxu3 %v3355_v30 }
 0x4a8   :  { %v1347_v33 = vpop.f32.mrf.mxu2  ;;  %v1367_v60 = vpop.f32.mrf.mxu3 }
 0x4a9   :  { %v3228_v34 = vadd.f32 %v1347_v33, %v1224_v22  ;;  %v1373_v24 = vadd.f32 %v1367_v60, %v1225_v40  ;;  %v3361_v22 = vld [vmem:[#allocation11 + $0x88] sm:$0xff]  ;;  %v3372_v60 = vld [vmem:[#allocation11 + $0x60] sm:$0xff] }
 0x4aa   :  { %3687 = vst [vmem:[#allocation46_spill] sm:$0xff] %v3361_v22  ;;  %1539 = vmatpush.msra.mxu1 %v3361_v22  ;;  %1520 = vmatpush.msra.mxu0 %v3372_v60 }
 0x4ab   :  { %v1395_v35 = vand.u32 2147483647, %v3228_v34  ;;  %v1968_v63 = vmul.f32 -1.442695, %v1373_v24  ;;  %v1394_v40 = vmin.f32 %v3228_v34, 0.0  ;;  %3689 = vst [vmem:[#allocation28_spill] sm:$0xff] %v3372_v60 }
 0x4ac   :  { %v3374_v24 = vld [vmem:[#allocation11 + $0x68] sm:$0xff]  ;;  %v3405_v60 = vld [vmem:[#allocation11 + $0x38] sm:$0xff] }
 0x4ad   :  { %v1396_v29 = vsub.f32 0.0, %v1395_v35  ;;  %3690 = vst [vmem:[#allocation29_spill] sm:$0xff] %v3374_v24  ;;  %1540 = vmatpush.msra.mxu1 %v3374_v24  ;;  %v3403_v24 = vld [vmem:[#allocation11 + $0x30] sm:$0xff] }
 0x4af   :  { %v1397_v49 = vmul.f32 1.442695, %v1396_v29  ;;  %v3365_v29 = vld [vmem:[#allocation11 + $0x90] sm:$0xff] }
 0x4b0   :  { %1559 = vmatpush.msra.mxu2 %v3365_v29 }
 0x4b1   :  { %2066 = vpow2.f32 %v1397_v49  ;;  %v3367_v49 = vld [vmem:[#allocation11 + $0x98] sm:$0xff] }
 0x4b2   :  { %3688 = vst [vmem:[#allocation47_spill] sm:$0xff] %v3367_v49  ;;  %1579 = vmatpush.msra.mxu3 %v3367_v49  ;;  %v3399_v49 = vld [vmem:[#allocation11 + $0x28] sm:$0xff] }
 0x4b7   :  { %v2067_v19 = vpop.eup %2066 }
 0x4b8   :  { %v1399_v43 = vadd.f32 1.0, %v2067_v19  ;;  %v1402_v50 = vmul.f32 -0.5, %v2067_v19  ;;  %v1405_v21 = vand.u32 2147483647, %v2067_v19 }
 0x4ba   :  { %2068 = vlog2.f32 %v1399_v43  ;;  %v1403_v15 = vadd.f32 1.0, %v1402_v50  ;;  %vm1406_vm13 = vcmp.lt.f32.partialorder %v1405_v21, 0.0004427343  ;;  %v1327_v43 = vpop.f32.mrf.mxu1  ;;  %v3384_v21 = vld [vmem:[#allocation11 + $0x40] sm:$0xff] }
 0x4bb   :  { %2070 = vpow2.f32 %v1968_v63  ;;  %v3378_v63 = vld [vmem:[#allocation11 + $0x70] sm:$0xff]  ;;  %3691 = vst [vmem:[#allocation30_spill] sm:$0xff] %v3384_v21  ;;  %1521 = vmatpush.msra.mxu0 %v3384_v21  ;;  %v3421_v21 = vld [vmem:[#allocation11 + $0x18] sm:$0xff] }
 0x4bc   :  { %v1404_v35 = vmul.f32 %v2067_v19, %v1403_v15  ;;  %v1223_v19 = vld [vmem:[#allocation2 + $0xa8] sm:$0xff]  ;;  %v3380_v15 = vld [vmem:[#allocation11 + $0x78] sm:$0xff]  ;;  %1560 = vmatpush.msra.mxu2 %v3378_v63 }
 0x4bd   :  { %v1371_v22 = vadd.f32 %v1327_v43, %v1223_v19  ;;  %1580 = vmatpush.msra.mxu3 %v3380_v15 }
 0x4c0   :  { %v2069_v32 = vpop.eup %2068 }
 0x4c1   :  { %v1401_v33 = vmul.f32 0.6931472, %v2069_v32  ;;  %v3386_v32 = vld [vmem:[#allocation11 + $0x48] sm:$0xff]  ;;  %v2071_v23 = vpop.eup %2070 }
 0x4c2   :  { %3692 = vst [vmem:[#allocation31_spill] sm:$0xff] %v3386_v32  ;;  %1541 = vmatpush.msra.mxu1 %v3386_v32  ;;  %v3409_v43 = vadd.f32 1.0, %v2071_v23  ;;  %v3419_v32 = vld [vmem:[#allocation11 + $0x10] sm:$0xff] }
 0x4c3   :  { %v1407_v50 = vsel %vm1406_vm13, %v1404_v35, %v1401_v33  ;;  %v3390_v33 = vld [vmem:[#allocation11 + $0x50] sm:$0xff]  ;;  %v3392_v35 = vld [vmem:[#allocation11 + $0x58] sm:$0xff] }
 0x4c4   :  { %v1408_v34 = vsub.f32 %v1394_v40, %v1407_v50  ;;  %v3397_v50 = vld [vmem:[#allocation11 + $0x20] sm:$0xff]  ;;  %1561 = vmatpush.msra.mxu2 %v3390_v33  ;;  %1581 = vmatpush.msra.mxu3 %v3392_v35  ;;  %vm1384_vm0 = vweird.f32 %v3409_v43 }
 0x4c5   :  { %1522 = vmatpush.msra.mxu0 %v3397_v50  ;;  %1542 = vmatpush.msra.mxu1 %v3399_v49 }
 0x4c6   :  { %v1409_v1 = vmul.f32 1.442695, %v1408_v34  ;;  %v1411_v40 = vadd.f32 %v1408_v34, %v3213_v31  ;;  %v3413_v31 = vld [vmem:[#allocation11] sm:$0xff]  ;;  %v3415_v34 = vld [vmem:[#allocation11 + $0x8] sm:$0xff]  ;;  %1562 = vmatpush.msra.mxu2 %v3403_v24  ;;  %1582 = vmatpush.msra.mxu3 %v3405_v60 }
 0x4c7   :  { %1523 = vmatpush.msra.mxu0 %v3413_v31  ;;  %1543 = vmatpush.msra.mxu1 %v3415_v34 }
 0x4c8   :  { %v3407_v19 = vmax.f32 %v1411_v40, %v1371_v22  ;;  %2072 = vpow2.f32 %v1409_v1  ;;  %1563 = vmatpush.msra.mxu2 %v3419_v32  ;;  %1583 = vmatpush.msra.mxu3 %v3421_v21 }
 0x4c9   :  { %2074 = vrcp.f32 %v3409_v43  ;;  %1726 = vmatpush.msrb.mxu0 %v3231_v38  ;;  %1746 = vmatpush.msrb.mxu1 %v3233_v39 }
 0x4ca   :  { %v1413_v23 = vsub.f32 %v1371_v22, %v3407_v19  ;;  %1766 = vmatpush.msrb.mxu2 %v3235_v41  ;;  %1786 = vmatpush.msrb.mxu3 %v3239_v45  ;;  %v1222_v45 = vld [vmem:[#allocation2 + $0xa0] sm:$0xff] }
 0x4cb   :  { %1727 = vmatpush.msrb.mxu0 %v3243_v46  ;;  %1747 = vmatpush.msrb.mxu1 %v3245_v47  ;;  %v1307_v46 = vpop.f32.mrf.mxu0 }
 0x4cc   :  { %v1414_v40 = vmul.f32 1.442695, %v1413_v23  ;;  %1767 = vmatpush.msrb.mxu2 %v3247_v48  ;;  %1787 = vmatpush.msrb.mxu3 %v3251_v53  ;;  %v1441_v23 = vld [vmem:[#allocation2 + $0xc8] sm:$0xff] }
 0x4cd   :  { %1728 = vmatpush.msrb.mxu0 %v3255_v56  ;;  %1748 = vmatpush.msrb.mxu1 %v3257_v51 }
 0x4ce   :  { %2076 = vpow2.f32 %v1414_v40  ;;  %v3437_v1 = vpop.eup %2072  ;;  %1768 = vmatpush.msrb.mxu2 %v3259_v2  ;;  %1788 = vmatpush.msrb.mxu3 %v3263_v11 }
 0x4cf   :  { %v3443_v38 = vpop.eup %2074  ;;  %v1419_v39 = vmul.f32 %v3437_v1, %v3217_v55  ;;  %1729 = vmatpush.msrb.mxu0 %v3267_v16  ;;  %1749 = vmatpush.msrb.mxu1 %v3269_v26  ;;  %v1370_v55 = vadd.f32 %v1307_v46, %v1222_v45 }
 0x4d0   :  { %1769 = vmatpush.msrb.mxu2 %v3271_v37  ;;  %1789 = vmatpush.msrb.mxu3 %v3275_v57  ;;  %v1380_v48 = vmul.f32 %v3443_v38, %v3409_v43  ;;  %vm1385_vm14 = vweird.f32 %v3443_v38 }
 0x4d1   :  { %1730 = vmatpush.msrb.mxu0 %v3279_v3  ;;  %1750 = vmatpush.msrb.mxu1 %v3281_v5  ;;  %vm3500_vm1 = vmor %vm1384_vm0, %vm1385_vm14 }
 0x4d2   :  { %1770 = vmatpush.msrb.mxu2 %v3283_v44  ;;  %1790 = vmatpush.msrb.mxu3 %v3287_v6  ;;  %v1381_v53 = vsub.f32 1.0, %v1380_v48  ;;  %v1390_v44 = vand.u32 2147483648, %v3409_v43  ;;  %v3693_v6 = vld [vmem:[#allocation44_spill] sm:$0xff] }
 0x4d3   :  { %1731 = vmatpush.msrb.mxu0 %v3291_v61  ;;  %1751 = vmatpush.msrb.mxu1 %v3293_v0  ;;  %v3694_v61 = vld [vmem:[#allocation46_spill] sm:$0xff]  ;;  %v3695_v0 = vld [vmem:[#allocation27_spill] sm:$0xff] }
 0x4d4   :  { %v2077_v41 = vpop.eup %2076  ;;  %1771 = vmatpush.msrb.mxu2 %v3295_v36  ;;  %1791 = vmatpush.msrb.mxu3 %v3299_v42  ;;  %v1382_v51 = vmul.f32 %v3443_v38, %v1381_v53  ;;  %v1416_v36 = vmul.f32 %v3437_v1, %v3695_v0 }
 0x4d5   :  { %v3453_v47 = vadd.f32 %v2077_v41, %v1419_v39  ;;  %1732 = vmatpush.msrb.mxu0 %v3301_v62  ;;  %1752 = vmatpush.msrb.mxu1 %v3303_v4  ;;  %v1388_v62 = vand.u32 2147483647, %v3409_v43 }
 0x4d6   :  { %1772 = vmatpush.msrb.mxu2 %v3307_v7  ;;  %1792 = vmatpush.msrb.mxu3 %v3311_v52  ;;  %v1383_v26 = vadd.f32 %v3443_v38, %v1382_v51  ;;  %v3698_v7 = vld [vmem:[#allocation47_spill] sm:$0xff] }
 0x4d7   :  { %2078 = vrcp.f32 %v3453_v47  ;;  %1733 = vmatpush.msrb.mxu0 %v3313_v54  ;;  %1753 = vmatpush.msrb.mxu1 %v3315_v18  ;;  %v1432_v37 = vand.u32 2147483648, %v3453_v47  ;;  %v1430_v5 = vand.u32 2147483647, %v3453_v47  ;;  %vm1426_vm2 = vweird.f32 %v3453_v47  ;;  %v3699_v54 = vld [vmem:[#allocation28_spill] sm:$0xff]  ;;  %v3700_v18 = vld [vmem:[#allocation29_spill] sm:$0xff] }
 0x4d8   :  { %2080 = vtanh.f32 %v1370_v55  ;;  %1773 = vmatpush.msrb.mxu2 %v3319_v58  ;;  %1793 = vmatpush.msrb.mxu3 %v3321_v59  ;;  %v1387_v58 = vsel %vm3500_vm1, %v3443_v38, %v1383_v26  ;;  %vm1389_vm5 = vcmp.eq.f32.partialorder %v1388_v62, 8.507059e+37  ;;  %v1440_v26 = vld [vmem:[#allocation2 + $0xc0] sm:$0xff] }
 0x4d9   :  { %1734 = vmatpush.msrb.mxu0 %v3323_v8  ;;  %1754 = vmatpush.msrb.mxu1 %v3327_v9  ;;  %v1433_v52 = vor.u32 1.1754944e-38, %v1432_v37  ;;  %vm1431_vm4 = vcmp.eq.f32.partialorder %v1430_v5, 8.507059e+37  ;;  %v1391_v9 = vor.u32 1.1754944e-38, %v1390_v44 }
 0x4da   :  { %1774 = vmatpush.msrb.mxu2 %v3329_v10  ;;  %1794 = vmatpush.msrb.mxu3 %v3331_v12  ;;  %v3701_v12 = vld [vmem:[#allocation30_spill] sm:$0xff] }
 0x4db   :  { %1735 = vmatpush.msrb.mxu0 %v3335_v13  ;;  %1755 = vmatpush.msrb.mxu1 %v3337_v14  ;;  %v3702_v13 = vld [vmem:[#allocation31_spill] sm:$0xff] }
 0x4dc   :  { %1775 = vmatpush.msrb.mxu2 %v3341_v17  ;;  %1795 = vmatpush.msrb.mxu3 %v3343_v20  ;;  %v1392_v17 = vsel %vm1389_vm5, %v1391_v9, %v1387_v58 }
 0x4dd   :  { %v2079_v56 = vpop.eup %2078  ;;  %1736 = vmatpush.msrb.mxu0 %v3347_v25  ;;  %1756 = vmatpush.msrb.mxu1 %v3349_v27  ;;  %v1442_v25 = vld [vmem:[#allocation2 + $0xd0] sm:$0xff] }
 0x4de   :  { %v1422_v2 = vmul.f32 %v2079_v56, %v3453_v47  ;;  %v2081_v16 = vpop.eup %2080  ;;  %vm1427_vm15 = vweird.f32 %v2079_v56  ;;  %1776 = vmatpush.msrb.mxu2 %v3353_v28  ;;  %1796 = vmatpush.msrb.mxu3 %v3355_v30 }
 0x4df   :  { %v1417_v57 = vmul.f32 %v2081_v16, %v2077_v41  ;;  %1737 = vmatpush.msrb.mxu0 %v3693_v6  ;;  %1757 = vmatpush.msrb.mxu1 %v3694_v61  ;;  %vm1428_vm3 = vmor %vm1426_vm2, %vm1427_vm15 }
 0x4e0   :  { %v1423_v11 = vsub.f32 1.0, %v1422_v2  ;;  %1777 = vmatpush.msrb.mxu2 %v3365_v29  ;;  %1797 = vmatpush.msrb.mxu3 %v3698_v7 }
 0x4e1   :  { %1738 = vmatpush.msrb.mxu0 %v3699_v54  ;;  %1758 = vmatpush.msrb.mxu1 %v3700_v18  ;;  %v3514_v59 = vadd.f32 %v1417_v57, %v1416_v36 }
 0x4e2   :  { %v1424_v3 = vmul.f32 %v2079_v56, %v1423_v11  ;;  %1778 = vmatpush.msrb.mxu2 %v3378_v63  ;;  %1798 = vmatpush.msrb.mxu3 %v3380_v15 }
 0x4e3   :  { %1739 = vmatpush.msrb.mxu0 %v3701_v12  ;;  %1759 = vmatpush.msrb.mxu1 %v3702_v13 }
 0x4e4   :  { %v1425_v4 = vadd.f32 %v2079_v56, %v1424_v3  ;;  %1779 = vmatpush.msrb.mxu2 %v3390_v33  ;;  %1799 = vmatpush.msrb.mxu3 %v3392_v35 }
 0x4e5   :  { %1740 = vmatpush.msrb.mxu0 %v3397_v50  ;;  %1760 = vmatpush.msrb.mxu1 %v3399_v49  ;;  %v1443_v49 = vld [vmem:[#allocation2 + $0xd8] sm:$0xff] }
 0x4e6   :  { %v1429_v8 = vsel %vm1428_vm3, %v2079_v56, %v1425_v4  ;;  %1780 = vmatpush.msrb.mxu2 %v3403_v24  ;;  %1800 = vmatpush.msrb.mxu3 %v3405_v60 }
 0x4e7   :  { %v1434_v10 = vsel %vm1431_vm4, %v1433_v52, %v1429_v8  ;;  %1741 = vmatpush.msrb.mxu0 %v3413_v31  ;;  %1761 = vmatpush.msrb.mxu1 %v3415_v34 }
 0x4e8   :  { %v1435_v14 = vmul.f32 %v1434_v10, %v3514_v59  ;;  %1781 = vmatpush.msrb.mxu2 %v3419_v32  ;;  %1801 = vmatpush.msrb.mxu3 %v3421_v21 }
 0x4ea   :  { %v1436_v20 = vmul.f32 %v1435_v14, %v1392_v17 }
 0x4ec   :  { %1438 = vst [vmem:[#allocation13 + $0x28] sm:$0xff] %v1436_v20  ;;  %1524 = vmatmul.f32.vlgmr.msra.gmra.mxu0 %v1436_v20  ;;  %1544 = vmatmul.f32.vlgmr.msra.gmra.mxu1 %v1436_v20 }
 0x4ed   :  { %1564 = vmatmul.f32.vlgmr.msra.gmra.mxu2 %v1436_v20  ;;  %1584 = vmatmul.f32.vlgmr.msra.gmra.mxu3 %v1436_v20 }
 0x569   :  { %v1545_v40 = vpop.f32.mrf.mxu1  ;;  %v1525_v37 = vpop.f32.mrf.mxu0 }
 0x56a   :  { %v1589_v41 = vadd.f32 %v1545_v40, %v1441_v23  ;;  %v1659_v23 = vld [vmem:[#allocation2 + $0xe8] sm:$0xff] }
 0x570   :  { %v1565_v27 = vpop.f32.mrf.mxu2  ;;  %v1585_v60 = vpop.f32.mrf.mxu3 }
 0x571   :  { %v1590_v28 = vadd.f32 %v1565_v27, %v1442_v25  ;;  %v1591_v63 = vadd.f32 %v1585_v60, %v1443_v49  ;;  %v1661_v49 = vld [vmem:[#allocation2 + $0xf8] sm:$0xff] }
 0x573   :  { %v1613_v30 = vand.u32 2147483647, %v1590_v28  ;;  %v1969_v35 = vmul.f32 -1.442695, %v1591_v63  ;;  %v1612_v34 = vmin.f32 %v1590_v28, 0.0 }
 0x575   :  { %v1614_v22 = vsub.f32 0.0, %v1613_v30 }
 0x577   :  { %v1615_v29 = vmul.f32 1.442695, %v1614_v22 }
 0x579   :  { %2082 = vpow2.f32 %v1615_v29 }
 0x57f   :  { %v2083_v24 = vpop.eup %2082 }
 0x580   :  { %v1617_v15 = vadd.f32 1.0, %v2083_v24  ;;  %v1620_v33 = vmul.f32 -0.5, %v2083_v24  ;;  %v1623_v43 = vand.u32 2147483647, %v2083_v24 }
 0x582   :  { %2084 = vlog2.f32 %v1617_v15  ;;  %v1621_v50 = vadd.f32 1.0, %v1620_v33  ;;  %vm1624_vm6 = vcmp.lt.f32.partialorder %v1623_v43, 0.0004427343 }
 0x583   :  { %2086 = vpow2.f32 %v1969_v35 }
 0x584   :  { %v1622_v31 = vmul.f32 %v2083_v24, %v1621_v50 }
 0x588   :  { %v2085_v32 = vpop.eup %2084 }
 0x589   :  { %v1619_v21 = vmul.f32 0.6931472, %v2085_v32  ;;  %v2087_v39 = vpop.eup %2086 }
 0x58a   :  { %v1596_v55 = vadd.f32 1.0, %v2087_v39  ;;  %v1658_v39 = vld [vmem:[#allocation2 + $0xe0] sm:$0xff] }
 0x58b   :  { %v1625_v1 = vsel %vm1624_vm6, %v1622_v31, %v1619_v21 }
 0x58c   :  { %v1626_v38 = vsub.f32 %v1612_v34, %v1625_v1  ;;  %vm1602_vm9 = vweird.f32 %v1596_v55  ;;  %v1608_v52 = vand.u32 2147483648, %v1596_v55  ;;  %v1606_v18 = vand.u32 2147483647, %v1596_v55 }
 0x58e   :  { %v1627_v45 = vmul.f32 1.442695, %v1626_v38  ;;  %v1629_v46 = vadd.f32 %v1626_v38, %v3407_v19  ;;  %v1588_v19 = vadd.f32 %v1525_v37, %v1440_v26  ;;  %v1609_v13 = vor.u32 1.1754944e-38, %v1608_v52 }
 0x58f   :  { %vm1607_vm14 = vcmp.eq.f32.partialorder %v1606_v18, 8.507059e+37 }
 0x590   :  { %v3532_v48 = vmax.f32 %v1629_v46, %v1589_v41  ;;  %2088 = vpow2.f32 %v1627_v45 }
 0x591   :  { %2090 = vrcp.f32 %v1596_v55 }
 0x592   :  { %v1631_v53 = vsub.f32 %v1589_v41, %v3532_v48 }
 0x594   :  { %v1632_v56 = vmul.f32 1.442695, %v1631_v53 }
 0x596   :  { %2092 = vpow2.f32 %v1632_v56  ;;  %v2089_v51 = vpop.eup %2088 }
 0x597   :  { %v2091_v2 = vpop.eup %2090  ;;  %v1637_v11 = vmul.f32 %v2089_v51, %v3453_v47  ;;  %v1634_v54 = vmul.f32 %v2089_v51, %v3514_v59  ;;  %v1660_v59 = vld [vmem:[#allocation2 + $0xf0] sm:$0xff] }
 0x598   :  { %v1598_v3 = vmul.f32 %v2091_v2, %v1596_v55  ;;  %vm1603_vm7 = vweird.f32 %v2091_v2 }
 0x599   :  { %vm1604_vm10 = vmor %vm1602_vm9, %vm1603_vm7 }
 0x59a   :  { %v1599_v5 = vsub.f32 1.0, %v1598_v3 }
 0x59c   :  { %v2093_v16 = vpop.eup %2092  ;;  %v1600_v6 = vmul.f32 %v2091_v2, %v1599_v5 }
 0x59d   :  { %v3536_v57 = vadd.f32 %v2093_v16, %v1637_v11 }
 0x59e   :  { %v1601_v42 = vadd.f32 %v2091_v2, %v1600_v6 }
 0x59f   :  { %2094 = vrcp.f32 %v3536_v57  ;;  %v1650_v47 = vand.u32 2147483648, %v3536_v57  ;;  %v1648_v7 = vand.u32 2147483647, %v3536_v57  ;;  %vm1644_vm11 = vweird.f32 %v3536_v57 }
 0x5a0   :  { %2096 = vtanh.f32 %v1588_v19  ;;  %v1605_v9 = vsel %vm1604_vm10, %v2091_v2, %v1601_v42 }
 0x5a1   :  { %v1651_v8 = vor.u32 1.1754944e-38, %v1650_v47  ;;  %vm1649_vm13 = vcmp.eq.f32.partialorder %v1648_v7, 8.507059e+37  ;;  %v1610_v20 = vsel %vm1607_vm14, %v1609_v13, %v1605_v9 }
 0x5a5   :  { %v2095_v44 = vpop.eup %2094 }
 0x5a6   :  { %v1640_v61 = vmul.f32 %v2095_v44, %v3536_v57  ;;  %v2097_v36 = vpop.eup %2096  ;;  %vm1645_vm8 = vweird.f32 %v2095_v44 }
 0x5a7   :  { %v1635_v62 = vmul.f32 %v2097_v36, %v2093_v16  ;;  %vm1646_vm12 = vmor %vm1644_vm11, %vm1645_vm8 }
 0x5a8   :  { %v1641_v0 = vsub.f32 1.0, %v1640_v61 }
 0x5a9   :  { %v3544_v10 = vadd.f32 %v1635_v62, %v1634_v54 }
 0x5aa   :  { %v1642_v4 = vmul.f32 %v2095_v44, %v1641_v0 }
 0x5ac   :  { %v1643_v58 = vadd.f32 %v2095_v44, %v1642_v4 }
 0x5ae   :  { %v1647_v12 = vsel %vm1646_vm12, %v2095_v44, %v1643_v58 }
 0x5af   :  { %v1652_v14 = vsel %vm1649_vm13, %v1651_v8, %v1647_v12 }
 0x5b0   :  { %v1653_v17 = vmul.f32 %v1652_v14, %v3544_v10 }
 0x5b2   :  { %v1654_v25 = vmul.f32 %v1653_v17, %v1610_v20 }
 0x5b4   :  { %1656 = vst [vmem:[#allocation13 + $0x30] sm:$0xff] %v1654_v25  ;;  %1742 = vmatmul.f32.vlgmr.msrb.gmra.mxu0 %v1654_v25  ;;  %1762 = vmatmul.f32.vlgmr.msrb.gmra.mxu1 %v1654_v25 }
 0x5b5   :  { %1782 = vmatmul.f32.vlgmr.msrb.gmra.mxu2 %v1654_v25  ;;  %1802 = vmatmul.f32.vlgmr.msrb.gmra.mxu3 %v1654_v25 }
 0x631   :  { %v1763_v40 = vpop.f32.mrf.mxu1  ;;  %v1743_v41 = vpop.f32.mrf.mxu0 }
 0x632   :  { %v1807_v46 = vadd.f32 %v1763_v40, %v1659_v23  ;;  %v1806_v56 = vadd.f32 %v1743_v41, %v1658_v39 }
 0x638   :  { %v1783_v27 = vpop.f32.mrf.mxu2  ;;  %v1803_v60 = vpop.f32.mrf.mxu3 }
 0x639   :  { %v1808_v28 = vadd.f32 %v1783_v27, %v1660_v59  ;;  %v1809_v15 = vadd.f32 %v1803_v60, %v1661_v49 }
 0x63b   :  { %v1831_v30 = vand.u32 2147483647, %v1808_v28  ;;  %v1970_v35 = vmul.f32 -1.442695, %v1809_v15  ;;  %v1830_v34 = vmin.f32 %v1808_v28, 0.0 }
 0x63d   :  { %v1832_v22 = vsub.f32 0.0, %v1831_v30 }
 0x63f   :  { %v1833_v29 = vmul.f32 1.442695, %v1832_v22 }
 0x641   :  { %2098 = vpow2.f32 %v1833_v29 }
 0x647   :  { %v2099_v24 = vpop.eup %2098 }
 0x648   :  { %v1835_v63 = vadd.f32 1.0, %v2099_v24  ;;  %v1838_v33 = vmul.f32 -0.5, %v2099_v24  ;;  %v1841_v43 = vand.u32 2147483647, %v2099_v24 }
 0x64a   :  { %2100 = vlog2.f32 %v1835_v63  ;;  %v1839_v50 = vadd.f32 1.0, %v1838_v33  ;;  %vm1842_vm15 = vcmp.lt.f32.partialorder %v1841_v43, 0.0004427343 }
 0x64b   :  { %2102 = vpow2.f32 %v1970_v35 }
 0x64c   :  { %v1840_v31 = vmul.f32 %v2099_v24, %v1839_v50 }
 0x650   :  { %v2101_v32 = vpop.eup %2100 }
 0x651   :  { %v1837_v21 = vmul.f32 0.6931472, %v2101_v32  ;;  %v2103_v45 = vpop.eup %2102 }
 0x652   :  { %v3548_v2 = vadd.f32 1.0, %v2103_v45 }
 0x653   :  { %v1843_v1 = vsel %vm1842_vm15, %v1840_v31, %v1837_v21 }
 0x654   :  { %v1844_v38 = vsub.f32 %v1830_v34, %v1843_v1  ;;  %vm1820_vm2 = vweird.f32 %v3548_v2  ;;  %v1826_v18 = vand.u32 2147483648, %v3548_v2  ;;  %v1824_v8 = vand.u32 2147483647, %v3548_v2 }
 0x656   :  { %v1845_v55 = vmul.f32 1.442695, %v1844_v38  ;;  %v1847_v53 = vadd.f32 %v1844_v38, %v3532_v48  ;;  %v1827_v14 = vor.u32 1.1754944e-38, %v1826_v18  ;;  %vm1825_vm7 = vcmp.eq.f32.partialorder %v1824_v8, 8.507059e+37 }
 0x658   :  { %v1848_v51 = vmax.f32 %v1847_v53, %v1807_v46  ;;  %2104 = vpow2.f32 %v1845_v55 }
 0x659   :  { %2106 = vtanh.f32 %v1806_v56 }
 0x65a   :  { %v1849_v11 = vsub.f32 %v1807_v46, %v1848_v51  ;;  %1878 = vst [vmem:[#allocation19] sm:$0xff] %v1848_v51  ;;  %2108 = vrcp.f32 %v3548_v2 }
 0x65c   :  { %v1850_v16 = vmul.f32 1.442695, %v1849_v11 }
 0x65e   :  { %2110 = vpow2.f32 %v1850_v16  ;;  %v2105_v26 = vpop.eup %2104 }
 0x65f   :  { %v2107_v37 = vpop.eup %2106  ;;  %v1855_v3 = vmul.f32 %v2105_v26, %v3536_v57  ;;  %v1852_v5 = vmul.f32 %v2105_v26, %v3544_v10 }
 0x660   :  { %v2109_v48 = vpop.eup %2108 }
 0x661   :  { %v1816_v61 = vmul.f32 %v2109_v48, %v3548_v2  ;;  %vm1821_vm0 = vweird.f32 %v2109_v48 }
 0x662   :  { %vm3562_vm3 = vmor %vm1820_vm2, %vm1821_vm0 }
 0x663   :  { %v1817_v0 = vsub.f32 1.0, %v1816_v61 }
 0x664   :  { %v2111_v19 = vpop.eup %2110 }
 0x665   :  { %v1856_v44 = vadd.f32 %v2111_v19, %v1855_v3  ;;  %v1853_v6 = vmul.f32 %v2111_v19, %v2107_v37  ;;  %v1818_v42 = vmul.f32 %v2109_v48, %v1817_v0 }
 0x667   :  { %2112 = vrcp.f32 %v1856_v44  ;;  %1877 = vst [vmem:[#allocation17] sm:$0xff] %v1856_v44  ;;  %v1854_v57 = vadd.f32 %v1853_v6, %v1852_v5  ;;  %v1868_v4 = vand.u32 2147483648, %v1856_v44  ;;  %v1819_v7 = vadd.f32 %v2109_v48, %v1818_v42 }
 0x668   :  { %1924 = dma.vmem_to_hbm [thread:$0]  %s1920_s5, 128, %s1922_s23, [#allocation18]   ;;  %v1866_v54 = vand.u32 2147483647, %v1856_v44  ;;  %vm1862_vm4 = vweird.f32 %v1856_v44 }
 0x669   :  { %1876 = vst [vmem:[#allocation16] sm:$0xff] %v1854_v57  ;;  %1935 = dma.vmem_to_hbm [thread:$0]  %s1931_s25, 128, %s1933_s27, [#allocation18]   ;;  %v1869_v10 = vor.u32 1.1754944e-38, %v1868_v4  ;;  %v1823_v12 = vsel %vm3562_vm3, %v2109_v48, %v1819_v7 }
 0x66a   :  { %vm1867_vm6 = vcmp.eq.f32.partialorder %v1866_v54, 8.507059e+37  ;;  %v1828_v25 = vsel %vm1825_vm7, %v1827_v14, %v1823_v12 }
 0x66d   :  { %v2113_v36 = vpop.eup %2112 }
 0x66e   :  { %v1858_v47 = vmul.f32 %v2113_v36, %v1856_v44  ;;  %vm1863_vm1 = vweird.f32 %v2113_v36 }
 0x66f   :  { %vm1864_vm5 = vmor %vm1862_vm4, %vm1863_vm1 }
 0x670   :  { %v1859_v62 = vsub.f32 1.0, %v1858_v47 }
 0x672   :  { %v1860_v52 = vmul.f32 %v2113_v36, %v1859_v62 }
 0x674   :  { %v1861_v9 = vadd.f32 %v2113_v36, %v1860_v52 }
 0x676   :  { %v1865_v13 = vsel %vm1864_vm5, %v2113_v36, %v1861_v9 }
 0x677   :  { %v1870_v17 = vsel %vm1867_vm6, %v1869_v10, %v1865_v13 }
 0x678   :  { %v1871_v20 = vmul.f32 %v1870_v17, %v1854_v57 }
 0x67a   :  { %v1872_v59 = vmul.f32 %v1871_v20, %v1828_v25 }
 0x67c   :  { %1874 = vst [vmem:[#allocation13 + $0x38] sm:$0xff] %v1872_v59 }
 0x67d   :  { %1875 = vst [vmem:[#allocation14] sm:$0xff] %v1872_v59  ;;  %1891 = dma.vmem_to_hbm [thread:$0]  %s1884_s10, 1024, %s1886_s30, [#allocation4], %s2405_s18, %s2405_s18, %s2406_s7  }
 0x67e   :  { %1902 = dma.vmem_to_hbm [thread:$0]  %s1898_s11, 128, %s1900_s14, [#allocation15]  }
 0x67f   :  { %1913 = dma.vmem_to_hbm [thread:$0]  %s1909_s6, 128, %s1911_s17, [#allocation15]  }
 0x680   :  { %2386 = dma.done.wait [#allocation4], 1024  }
 0x681   :  { %2387 = vsyncadd [#allocation4], 4294966272 }
 0x682   :  { %2388 = dma.done.wait [#allocation15], 256  }
 0x683   :  { %2389 = vsyncadd [#allocation15], 4294967040 }
 0x684   :  { %2390 = dma.done.wait [#allocation18], 256  }
 0x685   :  { %2391 = vsyncadd [#allocation18], 4294967040 }
 0x686   :  { %1956 = vsyncpa [#allocation3], 1 }
 0x687   :  { %1957 = vsyncpa [#allocation6], 1 }
 0x688   :  { %1958 = vsyncpa [#allocation9], 1 }
 0x689   :  { %1959 = vsyncpa [#allocation12], 1 }
 0x68a   :  { %1960 = vsyncpa [#allocation4], 1 }
 0x68b   :  { %1961 = vsyncpa [#allocation15], 1 }
 0x68c   :  { %1962 = vsyncpa [#allocation18], 1 }

// kernel: tpu_custom_call.1
= control target key start
LH: loop header
LB: loop body
LE: loop exit
PB: predicated region body
PF: predicated region fallthrough
CT: control target
= control target key end

     0   :  { %16 = vsyncpa [#allocation3], 0  ;;  %s3581_s0 = inlined_call_operand.hbm [shape: f32[8,8,512], index: 0, kind: input, shape index: {}]   ;;  %s3582_s1 = inlined_call_operand.hbm [shape: f32[8,128], index: 1, kind: input, shape index: {}]   ;;  %s3583_s2 = inlined_call_operand.hbm [shape: f32[8,128], index: 2, kind: input, shape index: {}]   ;;  %s3584_s3 = inlined_call_operand.hbm [shape: f32[8,128], index: 3, kind: input, shape index: {}]   ;;  %s3585_s4 = inlined_call_operand.hbm [shape: f32[8,128], index: 4, kind: input, shape index: {}]   ;;  %s3586_s5 = inlined_call_operand.hbm [shape: f32[128,512], index: 5, kind: input, shape index: {}]   ;;  %s3587_s6 = inlined_call_operand.hbm [shape: f32[8,8,128], index: 6, kind: output, shape index: {0}]   ;;  %s3588_s7 = inlined_call_operand.hbm [shape: f32[8,128], index: 7, kind: output, shape index: {1}]   ;;  %s3589_s8 = inlined_call_operand.hbm [shape: f32[8,128], index: 8, kind: output, shape index: {2}]   ;;  %s3590_s9 = inlined_call_operand.hbm [shape: f32[8,128], index: 9, kind: output, shape index: {3}]   ;;  %s3591_s10 = inlined_call_operand.hbm [shape: f32[8,128], index: 10, kind: output, shape index: {4}]  }
   0x1   :  { %17 = vsyncpa [#allocation6], 0 }
   0x2   :  { %18 = vsyncpa [#allocation9], 0 }
   0x3   :  { %19 = vsyncpa [#allocation12], 0 }
   0x4   :  { %20 = vsyncpa [#allocation4], 0 }
   0x5   :  { %21 = vsyncpa [#allocation15], 0  ;;  %s41_s15 = sshll.u32 %s3582_s1, 4  ;;  %s42_s15 = int_to_ptr.hbm [resolvable:$true] %s41_s15 }
   0x6   :  { %22 = vsyncpa [#allocation18], 0  ;;  %s2392_s16 = smov [#allocation5]   ;;  %s63_s20 = sshll.u32 %s3584_s3, 4  ;;  %s64_s20 = int_to_ptr.hbm [resolvable:$true] %s63_s20 }
   0x7   :  { %s43_s17 = sshll.u32 %s2392_s16, 4  ;;  %s2393_s21 = smov [#allocation8]   ;;  %s44_s17 = int_to_ptr.vmem [resolvable:$true] %s43_s17 }
   0x8   :  { %46 = dma.hbm_to_vmem [thread:$0]  %s42_s15, 128, %s44_s17, [#allocation6]  }
   0x9   :  { %s65_s22 = sshll.u32 %s2393_s21, 4  ;;  %s27_s25 = sshll.u32 %s3581_s0, 4  ;;  %s66_s22 = int_to_ptr.vmem [resolvable:$true] %s65_s22  ;;  %s28_s25 = int_to_ptr.hbm [resolvable:$true] %s27_s25 }
   0xa   :  { %68 = dma.hbm_to_vmem [thread:$0]  %s64_s20, 128, %s66_s22, [#allocation9]  }
   0xb   :  { %s2394_s1 = smov [#allocation2]   ;;  %s52_s29 = sshll.u32 %s3583_s2, 4  ;;  %s53_s29 = int_to_ptr.hbm [resolvable:$true] %s52_s29 }
   0xc   :  { %s29_s26 = sshll.u32 %s2394_s1, 4  ;;  %s2395_s30 = smov 512   ;;  %s30_s26 = int_to_ptr.vmem [resolvable:$true] %s29_s26 }
   0xd   :  { %s2396_s3 = smov 32   ;;  %s2397_s11 = smov [#allocation7]  }
   0xe   :  { %35 = dma.hbm_to_vmem [thread:$0]  %s28_s25, 4096, %s30_s26, [#allocation3], %s2395_s30, %s2395_s30, %s2396_s3  }
   0xf   :  { %s54_s12 = sshll.u32 %s2397_s11, 4  ;;  %s74_s0 = sshll.u32 %s3585_s4, 4  ;;  %s55_s12 = int_to_ptr.vmem [resolvable:$true] %s54_s12  ;;  %s75_s0 = int_to_ptr.hbm [resolvable:$true] %s74_s0 }
  0x10   :  { %57 = dma.hbm_to_vmem [thread:$0]  %s53_s29, 128, %s55_s12, [#allocation6]  }
  0x11   :  { %s84_s17 = sshll.u32 %s3586_s5, 4  ;;  %s2398_s18 = smov [#allocation10]   ;;  %s85_s17 = int_to_ptr.hbm [resolvable:$true] %s84_s17 }
  0x12   :  { %s76_s19 = sshll.u32 %s2398_s18, 4  ;;  %s2399_s2 = smov [#allocation11]   ;;  %s77_s19 = int_to_ptr.vmem [resolvable:$true] %s76_s19 }
  0x13   :  { %79 = dma.hbm_to_vmem [thread:$0]  %s75_s0, 128, %s77_s19, [#allocation9]  }
  0x14   :  { %s86_s20 = sshll.u32 %s2399_s2, 4  ;;  %s87_s20 = int_to_ptr.vmem [resolvable:$true] %s86_s20 }
  0x15   :  { %92 = dma.hbm_to_vmem [thread:$0]  %s85_s17, 8192, %s87_s20, [#allocation12], %s2395_s30, %s2395_s30, %s2396_s3  }
  0x16   :  { %2378 = dma.done.wait [#allocation3], 4096  }
  0x17   :  { %2379 = vsyncadd [#allocation3], 4294963200 }
  0x18   :  { %2380 = dma.done.wait [#allocation6], 256  }
  0x19   :  { %2381 = vsyncadd [#allocation6], 4294967040 }
  0x1a   :  { %2382 = dma.done.wait [#allocation9], 256  }
  0x1b   :  { %2383 = vsyncadd [#allocation9], 4294967040 }
  0x1c   :  { %2384 = dma.done.wait [#allocation12], 8192  }
  0x1d   :  { %2385 = vsyncadd [#allocation12], 4294959104  ;;  %v2480_v0 = vld [vmem:[#allocation11 + $0x1f0] sm:$0xff]  ;;  %v2490_v4 = vld [vmem:[#allocation11 + $0x1f8] sm:$0xff]  ;;  %s2400_s4 = smov [#allocation17]   ;;  %s1921_s23 = sshll.u32 %s3590_s9, 4  ;;  %s1922_s23 = int_to_ptr.hbm [resolvable:$true] %s1921_s23 }
  0x1e   :  { %3631 = vst [vmem:[#allocation27_spill] sm:$0xff] %v2480_v0  ;;  %v2482_v1 = vld [vmem:[#allocation11 + $0x1d0] sm:$0xff]  ;;  %241 = vmatpush.msra.mxu2 %v2480_v0  ;;  %v2492_v5 = vld [vmem:[#allocation11 + $0x1d8] sm:$0xff]  ;;  %261 = vmatpush.msra.mxu3 %v2490_v4  ;;  %v2506_v10 = vld [vmem:[#allocation11 + $0x1e8] sm:$0xff]  ;;  %s1919_s5 = sshll.u32 %s2400_s4, 4  ;;  %s2401_s24 = smov [#allocation19]   ;;  %s1920_s5 = int_to_ptr.vmem [resolvable:$true] %s1919_s5 }
  0x1f   :  { %v2485_v2 = vld [vmem:[#allocation11 + $0x1b0] sm:$0xff]  ;;  %v2498_v7 = vld [vmem:[#allocation11 + $0x1b8] sm:$0xff]  ;;  %v2510_v11 = vld [vmem:[#allocation11 + $0x1c8] sm:$0xff]  ;;  %221 = vmatpush.msra.mxu1 %v2506_v10  ;;  %s1930_s25 = sshll.u32 %s2401_s24, 4  ;;  %s1932_s27 = sshll.u32 %s3591_s10, 4  ;;  %s1931_s25 = int_to_ptr.vmem [resolvable:$true] %s1930_s25  ;;  %s1933_s27 = int_to_ptr.hbm [resolvable:$true] %s1932_s27 }
  0x20   :  { %242 = vmatpush.msra.mxu2 %v2482_v1  ;;  %v2488_v3 = vld [vmem:[#allocation11 + $0x190] sm:$0xff]  ;;  %262 = vmatpush.msra.mxu3 %v2492_v5  ;;  %v2504_v9 = vld [vmem:[#allocation11 + $0x198] sm:$0xff]  ;;  %v2517_v14 = vld [vmem:[#allocation11 + $0x1e0] sm:$0xff]  ;;  %s2402_s9 = smov [#allocation13]   ;;  %s1885_s30 = sshll.u32 %s3587_s6, 4  ;;  %s1886_s30 = int_to_ptr.hbm [resolvable:$true] %s1885_s30 }
  0x21   :  { %v2496_v6 = vld [vmem:[#allocation11 + $0x170] sm:$0xff]  ;;  %v2514_v13 = vld [vmem:[#allocation11 + $0x178] sm:$0xff]  ;;  %v2521_v15 = vld [vmem:[#allocation11 + $0x1a8] sm:$0xff]  ;;  %222 = vmatpush.msra.mxu1 %v2510_v11  ;;  %201 = vmatpush.msra.mxu0 %v2517_v14  ;;  %s3567_s10 = sshll.u32 %s2402_s9, 4  ;;  %s2403_s3 = smov [#allocation14]   ;;  %s1884_s10 = int_to_ptr.vmem [resolvable:$true] %s3567_s10 }
  0x22   :  { %243 = vmatpush.msra.mxu2 %v2485_v2  ;;  %v2502_v8 = vld [vmem:[#allocation11 + $0x150] sm:$0xff]  ;;  %263 = vmatpush.msra.mxu3 %v2498_v7  ;;  %v2523_v16 = vld [vmem:[#allocation11 + $0x1c0] sm:$0xff]  ;;  %v2527_v18 = vld [vmem:[#allocation11 + $0x158] sm:$0xff]  ;;  %s1897_s11 = sshll.u32 %s2403_s3, 4  ;;  %s1899_s14 = sshll.u32 %s3588_s7, 4  ;;  %s1898_s11 = int_to_ptr.vmem [resolvable:$true] %s1897_s11  ;;  %s1900_s14 = int_to_ptr.hbm [resolvable:$true] %s1899_s14 }
  0x23   :  { %v2512_v12 = vld [vmem:[#allocation11 + $0x130] sm:$0xff]  ;;  %v2533_v19 = vld [vmem:[#allocation11 + $0x188] sm:$0xff]  ;;  %v2535_v20 = vld [vmem:[#allocation11 + $0x1a0] sm:$0xff]  ;;  %223 = vmatpush.msra.mxu1 %v2521_v15  ;;  %202 = vmatpush.msra.mxu0 %v2523_v16  ;;  %s2404_s0 = smov [#allocation16]   ;;  %s1910_s17 = sshll.u32 %s3589_s8, 4  ;;  %s1911_s17 = int_to_ptr.hbm [resolvable:$true] %s1910_s17 }
  0x24   :  { %244 = vmatpush.msra.mxu2 %v2488_v3  ;;  %264 = vmatpush.msra.mxu3 %v2504_v9  ;;  %v2525_v17 = vld [vmem:[#allocation11 + $0x110] sm:$0xff]  ;;  %v2539_v22 = vld [vmem:[#allocation11 + $0x138] sm:$0xff]  ;;  %v2545_v23 = vld [vmem:[#allocation11 + $0x168] sm:$0xff]  ;;  %s1908_s6 = sshll.u32 %s2404_s0, 4  ;;  %s2405_s18 = smov 128   ;;  %s1909_s6 = int_to_ptr.vmem [resolvable:$true] %s1908_s6 }
  0x25   :  { %v2537_v21 = vld [vmem:[#allocation11 + $0xf0] sm:$0xff]  ;;  %v2547_v24 = vld [vmem:[#allocation11 + $0x180] sm:$0xff]  ;;  %v2551_v26 = vld [vmem:[#allocation11 + $0x118] sm:$0xff]  ;;  %224 = vmatpush.msra.mxu1 %v2533_v19  ;;  %203 = vmatpush.msra.mxu0 %v2535_v20  ;;  %s2406_s7 = smov 8  }
  0x26   :  { %245 = vmatpush.msra.mxu2 %v2496_v6  ;;  %265 = vmatpush.msra.mxu3 %v2514_v13  ;;  %v2549_v25 = vld [vmem:[#allocation11 + $0xd0] sm:$0xff]  ;;  %v2557_v27 = vld [vmem:[#allocation11 + $0x148] sm:$0xff]  ;;  %v2559_v28 = vld [vmem:[#allocation11 + $0x160] sm:$0xff] }
  0x27   :  { %v2561_v29 = vld [vmem:[#allocation11 + $0xb0] sm:$0xff]  ;;  %v2563_v30 = vld [vmem:[#allocation11 + $0xf8] sm:$0xff]  ;;  %225 = vmatpush.msra.mxu1 %v2545_v23  ;;  %204 = vmatpush.msra.mxu0 %v2547_v24  ;;  %v2569_v31 = vld [vmem:[#allocation11 + $0x128] sm:$0xff] }
  0x28   :  { %246 = vmatpush.msra.mxu2 %v2502_v8  ;;  %266 = vmatpush.msra.mxu3 %v2527_v18  ;;  %v2571_v32 = vld [vmem:[#allocation11 + $0x140] sm:$0xff]  ;;  %v2573_v33 = vld [vmem:[#allocation11 + $0x90] sm:$0xff]  ;;  %v2575_v34 = vld [vmem:[#allocation11 + $0xd8] sm:$0xff] }
  0x29   :  { %226 = vmatpush.msra.mxu1 %v2557_v27  ;;  %205 = vmatpush.msra.mxu0 %v2559_v28  ;;  %v2581_v35 = vld [vmem:[#allocation11 + $0x108] sm:$0xff]  ;;  %v2583_v36 = vld [vmem:[#allocation11 + $0x120] sm:$0xff]  ;;  %v2585_v37 = vld [vmem:[#allocation11 + $0x70] sm:$0xff] }
  0x2a   :  { %247 = vmatpush.msra.mxu2 %v2512_v12  ;;  %267 = vmatpush.msra.mxu3 %v2539_v22  ;;  %v2587_v38 = vld [vmem:[#allocation11 + $0xb8] sm:$0xff]  ;;  %v2593_v39 = vld [vmem:[#allocation11 + $0xe8] sm:$0xff]  ;;  %v2595_v40 = vld [vmem:[#allocation11 + $0x100] sm:$0xff] }
  0x2b   :  { %227 = vmatpush.msra.mxu1 %v2569_v31  ;;  %206 = vmatpush.msra.mxu0 %v2571_v32  ;;  %v2597_v41 = vld [vmem:[#allocation11 + $0x50] sm:$0xff]  ;;  %v2599_v42 = vld [vmem:[#allocation11 + $0x98] sm:$0xff]  ;;  %v2605_v43 = vld [vmem:[#allocation11 + $0xc8] sm:$0xff] }
  0x2c   :  { %248 = vmatpush.msra.mxu2 %v2525_v17  ;;  %268 = vmatpush.msra.mxu3 %v2551_v26  ;;  %v2607_v44 = vld [vmem:[#allocation11 + $0xe0] sm:$0xff]  ;;  %v2609_v45 = vld [vmem:[#allocation11 + $0x30] sm:$0xff]  ;;  %v2611_v46 = vld [vmem:[#allocation11 + $0x78] sm:$0xff] }
  0x2d   :  { %228 = vmatpush.msra.mxu1 %v2581_v35  ;;  %207 = vmatpush.msra.mxu0 %v2583_v36  ;;  %v2617_v47 = vld [vmem:[#allocation11 + $0xa8] sm:$0xff]  ;;  %v2619_v48 = vld [vmem:[#allocation11 + $0xc0] sm:$0xff]  ;;  %v2621_v49 = vld [vmem:[#allocation11 + $0x10] sm:$0xff] }
  0x2e   :  { %249 = vmatpush.msra.mxu2 %v2537_v21  ;;  %269 = vmatpush.msra.mxu3 %v2563_v30  ;;  %v2623_v50 = vld [vmem:[#allocation11 + $0x58] sm:$0xff]  ;;  %v121_v51 = vld [vmem:[#allocation5] sm:$0xff]  ;;  %v2629_v52 = vld [vmem:[#allocation11 + $0x88] sm:$0xff] }
  0x2f   :  { %229 = vmatpush.msra.mxu1 %v2593_v39  ;;  %208 = vmatpush.msra.mxu0 %v2595_v40  ;;  %v2631_v53 = vld [vmem:[#allocation11 + $0x38] sm:$0xff]  ;;  %v2635_v54 = vld [vmem:[#allocation11 + $0xa0] sm:$0xff]  ;;  %v2639_v55 = vld [vmem:[#allocation11 + $0x68] sm:$0xff] }
  0x30   :  { %250 = vmatpush.msra.mxu2 %v2549_v25  ;;  %270 = vmatpush.msra.mxu3 %v2575_v34  ;;  %v2641_v56 = vld [vmem:[#allocation11 + $0x18] sm:$0xff]  ;;  %v2644_v57 = vld [vmem:[#allocation11 + $0x80] sm:$0xff]  ;;  %v2648_v58 = vld [vmem:[#allocation11 + $0x48] sm:$0xff] }
  0x31   :  { %230 = vmatpush.msra.mxu1 %v2605_v43  ;;  %209 = vmatpush.msra.mxu0 %v2607_v44  ;;  %v2651_v59 = vld [vmem:[#allocation11 + $0x60] sm:$0xff]  ;;  %v2656_v60 = vld [vmem:[#allocation11 + $0x28] sm:$0xff] }
  0x32   :  { %251 = vmatpush.msra.mxu2 %v2561_v29  ;;  %271 = vmatpush.msra.mxu3 %v2587_v38  ;;  %v2659_v61 = vld [vmem:[#allocation11 + $0x40] sm:$0xff]  ;;  %v2662_v62 = vld [vmem:[#allocation11 + $0x8] sm:$0xff] }
  0x33   :  { %231 = vmatpush.msra.mxu1 %v2617_v47  ;;  %210 = vmatpush.msra.mxu0 %v2619_v48  ;;  %v2666_v63 = vld [vmem:[#allocation11 + $0x20] sm:$0xff] }
  0x34   :  { %252 = vmatpush.msra.mxu2 %v2573_v33  ;;  %272 = vmatpush.msra.mxu3 %v2599_v42 }
  0x35   :  { %232 = vmatpush.msra.mxu1 %v2629_v52  ;;  %211 = vmatpush.msra.mxu0 %v2635_v54 }
  0x36   :  { %253 = vmatpush.msra.mxu2 %v2585_v37  ;;  %273 = vmatpush.msra.mxu3 %v2611_v46 }
  0x37   :  { %233 = vmatpush.msra.mxu1 %v2639_v55  ;;  %212 = vmatpush.msra.mxu0 %v2644_v57 }
  0x38   :  { %254 = vmatpush.msra.mxu2 %v2597_v41  ;;  %274 = vmatpush.msra.mxu3 %v2623_v50 }
  0x39   :  { %234 = vmatpush.msra.mxu1 %v2648_v58  ;;  %213 = vmatpush.msra.mxu0 %v2651_v59 }
  0x3a   :  { %255 = vmatpush.msra.mxu2 %v2609_v45  ;;  %275 = vmatpush.msra.mxu3 %v2631_v53 }
  0x3b   :  { %235 = vmatpush.msra.mxu1 %v2656_v60  ;;  %214 = vmatpush.msra.mxu0 %v2659_v61 }
  0x3c   :  { %256 = vmatpush.msra.mxu2 %v2621_v49  ;;  %276 = vmatpush.msra.mxu3 %v2641_v56 }
  0x3d   :  { %257 = vmatmul.f32.vlgmr.msra.gmra.mxu2 %v121_v51  ;;  %277 = vmatmul.f32.vlgmr.msra.gmra.mxu3 %v121_v51 }
  0x3e   :  { %458 = vmatpush.msrb.mxu2 %v2480_v0  ;;  %478 = vmatpush.msrb.mxu3 %v2490_v4  ;;  %v2672_v0 = vld [vmem:[#allocation11] sm:$0xff] }
  0x3f   :  { %236 = vmatpush.msra.mxu1 %v2662_v62  ;;  %215 = vmatpush.msra.mxu0 %v2666_v63 }
  0x40   :  { %459 = vmatpush.msrb.mxu2 %v2482_v1  ;;  %479 = vmatpush.msrb.mxu3 %v2492_v5 }
  0x41   :  { %237 = vmatmul.f32.vlgmr.msra.gmra.mxu1 %v121_v51  ;;  %216 = vmatpush.msra.mxu0 %v2672_v0 }
  0x42   :  { %460 = vmatpush.msrb.mxu2 %v2485_v2  ;;  %438 = vmatpush.msrb.mxu1 %v2506_v10 }
  0x43   :  { %480 = vmatpush.msrb.mxu3 %v2498_v7  ;;  %217 = vmatmul.f32.vlgmr.msra.gmra.mxu0 %v121_v51  ;;  %v3632_v51 = vld [vmem:[#allocation27_spill] sm:$0xff] }
  0x44   :  { %461 = vmatpush.msrb.mxu2 %v2488_v3  ;;  %439 = vmatpush.msrb.mxu1 %v2510_v11 }
  0x45   :  { %418 = vmatpush.msrb.mxu0 %v2517_v14  ;;  %481 = vmatpush.msrb.mxu3 %v2504_v9 }
  0x46   :  { %440 = vmatpush.msrb.mxu1 %v2521_v15  ;;  %462 = vmatpush.msrb.mxu2 %v2496_v6 }
  0x47   :  { %419 = vmatpush.msrb.mxu0 %v2523_v16  ;;  %482 = vmatpush.msrb.mxu3 %v2514_v13 }
  0x48   :  { %441 = vmatpush.msrb.mxu1 %v2533_v19  ;;  %463 = vmatpush.msrb.mxu2 %v2502_v8 }
  0x49   :  { %420 = vmatpush.msrb.mxu0 %v2535_v20  ;;  %483 = vmatpush.msrb.mxu3 %v2527_v18 }
  0x4a   :  { %442 = vmatpush.msrb.mxu1 %v2545_v23  ;;  %464 = vmatpush.msrb.mxu2 %v2512_v12 }
  0x4b   :  { %421 = vmatpush.msrb.mxu0 %v2547_v24  ;;  %484 = vmatpush.msrb.mxu3 %v2539_v22 }
  0x4c   :  { %443 = vmatpush.msrb.mxu1 %v2557_v27  ;;  %465 = vmatpush.msrb.mxu2 %v2525_v17 }
  0x4d   :  { %422 = vmatpush.msrb.mxu0 %v2559_v28  ;;  %485 = vmatpush.msrb.mxu3 %v2551_v26 }
  0x4e   :  { %444 = vmatpush.msrb.mxu1 %v2569_v31  ;;  %466 = vmatpush.msrb.mxu2 %v2537_v21 }
  0x4f   :  { %423 = vmatpush.msrb.mxu0 %v2571_v32  ;;  %486 = vmatpush.msrb.mxu3 %v2563_v30 }
  0x50   :  { %445 = vmatpush.msrb.mxu1 %v2581_v35  ;;  %467 = vmatpush.msrb.mxu2 %v2549_v25 }
  0x51   :  { %424 = vmatpush.msrb.mxu0 %v2583_v36  ;;  %487 = vmatpush.msrb.mxu3 %v2575_v34 }
  0x52   :  { %446 = vmatpush.msrb.mxu1 %v2593_v39  ;;  %468 = vmatpush.msrb.mxu2 %v2561_v29 }
  0x53   :  { %425 = vmatpush.msrb.mxu0 %v2595_v40  ;;  %488 = vmatpush.msrb.mxu3 %v2587_v38 }
  0x54   :  { %447 = vmatpush.msrb.mxu1 %v2605_v43  ;;  %469 = vmatpush.msrb.mxu2 %v2573_v33 }
  0x55   :  { %426 = vmatpush.msrb.mxu0 %v2607_v44  ;;  %489 = vmatpush.msrb.mxu3 %v2599_v42 }
  0x56   :  { %448 = vmatpush.msrb.mxu1 %v2617_v47  ;;  %470 = vmatpush.msrb.mxu2 %v2585_v37 }
  0x57   :  { %427 = vmatpush.msrb.mxu0 %v2619_v48  ;;  %490 = vmatpush.msrb.mxu3 %v2611_v46 }
  0x58   :  { %449 = vmatpush.msrb.mxu1 %v2629_v52  ;;  %471 = vmatpush.msrb.mxu2 %v2597_v41 }
  0x59   :  { %428 = vmatpush.msrb.mxu0 %v2635_v54  ;;  %491 = vmatpush.msrb.mxu3 %v2623_v50 }
  0x5a   :  { %450 = vmatpush.msrb.mxu1 %v2639_v55  ;;  %472 = vmatpush.msrb.mxu2 %v2609_v45 }
  0x5b   :  { %429 = vmatpush.msrb.mxu0 %v2644_v57  ;;  %492 = vmatpush.msrb.mxu3 %v2631_v53 }
  0x5c   :  { %451 = vmatpush.msrb.mxu1 %v2648_v58  ;;  %473 = vmatpush.msrb.mxu2 %v2621_v49 }
  0x5d   :  { %430 = vmatpush.msrb.mxu0 %v2651_v59  ;;  %493 = vmatpush.msrb.mxu3 %v2641_v56 }
  0x5e   :  { %452 = vmatpush.msrb.mxu1 %v2656_v60  ;;  %676 = vmatpush.msra.mxu2 %v3632_v51 }
  0x5f   :  { %431 = vmatpush.msrb.mxu0 %v2659_v61  ;;  %696 = vmatpush.msra.mxu3 %v2490_v4 }
  0x60   :  { %453 = vmatpush.msrb.mxu1 %v2662_v62  ;;  %677 = vmatpush.msra.mxu2 %v2482_v1  ;;  %v135_v1 = vld [vmem:[#allocation2 + $0x10] sm:$0xff] }
  0x61   :  { %432 = vmatpush.msrb.mxu0 %v2666_v63  ;;  %697 = vmatpush.msra.mxu3 %v2492_v5 }
  0x62   :  { %656 = vmatpush.msra.mxu1 %v2506_v10  ;;  %678 = vmatpush.msra.mxu2 %v2485_v2 }
  0x63   :  { %433 = vmatpush.msrb.mxu0 %v2672_v0  ;;  %698 = vmatpush.msra.mxu3 %v2498_v7  ;;  %v136_v7 = vld [vmem:[#allocation2 + $0x18] sm:$0xff] }
  0x64   :  { %657 = vmatpush.msra.mxu1 %v2510_v11  ;;  %679 = vmatpush.msra.mxu2 %v2488_v3 }
  0x65   :  { %636 = vmatpush.msra.mxu0 %v2517_v14  ;;  %699 = vmatpush.msra.mxu3 %v2504_v9 }
  0x66   :  { %658 = vmatpush.msra.mxu1 %v2521_v15  ;;  %680 = vmatpush.msra.mxu2 %v2496_v6 }
  0x67   :  { %637 = vmatpush.msra.mxu0 %v2523_v16  ;;  %700 = vmatpush.msra.mxu3 %v2514_v13 }
  0x68   :  { %659 = vmatpush.msra.mxu1 %v2533_v19  ;;  %681 = vmatpush.msra.mxu2 %v2502_v8 }
  0x69   :  { %638 = vmatpush.msra.mxu0 %v2535_v20  ;;  %701 = vmatpush.msra.mxu3 %v2527_v18  ;;  %v134_v18 = vld [vmem:[#allocation2 + $0x8] sm:$0xff] }
  0x6a   :  { %660 = vmatpush.msra.mxu1 %v2545_v23  ;;  %682 = vmatpush.msra.mxu2 %v2512_v12 }
  0x6b   :  { %639 = vmatpush.msra.mxu0 %v2547_v24  ;;  %702 = vmatpush.msra.mxu3 %v2539_v22  ;;  %v127_v22 = vld [vmem:[#allocation10] sm:$0xff] }
  0x6c   :  { %661 = vmatpush.msra.mxu1 %v2557_v27  ;;  %683 = vmatpush.msra.mxu2 %v2525_v17 }
  0x6d   :  { %640 = vmatpush.msra.mxu0 %v2559_v28  ;;  %703 = vmatpush.msra.mxu3 %v2551_v26 }
  0x6e   :  { %662 = vmatpush.msra.mxu1 %v2569_v31  ;;  %684 = vmatpush.msra.mxu2 %v2537_v21 }
  0x6f   :  { %641 = vmatpush.msra.mxu0 %v2571_v32  ;;  %704 = vmatpush.msra.mxu3 %v2563_v30 }
  0x70   :  { %663 = vmatpush.msra.mxu1 %v2581_v35  ;;  %685 = vmatpush.msra.mxu2 %v2549_v25  ;;  %v133_v35 = vld [vmem:[#allocation2] sm:$0xff] }
  0x71   :  { %642 = vmatpush.msra.mxu0 %v2583_v36  ;;  %705 = vmatpush.msra.mxu3 %v2575_v34 }
  0x72   :  { %664 = vmatpush.msra.mxu1 %v2593_v39  ;;  %686 = vmatpush.msra.mxu2 %v2561_v29 }
  0x73   :  { %643 = vmatpush.msra.mxu0 %v2595_v40  ;;  %706 = vmatpush.msra.mxu3 %v2587_v38 }
  0x74   :  { %665 = vmatpush.msra.mxu1 %v2605_v43  ;;  %687 = vmatpush.msra.mxu2 %v2573_v33  ;;  %v125_v33 = vld [vmem:[#allocation8] sm:$0xff] }
  0x75   :  { %644 = vmatpush.msra.mxu0 %v2607_v44  ;;  %707 = vmatpush.msra.mxu3 %v2599_v42 }
  0x76   :  { %666 = vmatpush.msra.mxu1 %v2617_v47  ;;  %688 = vmatpush.msra.mxu2 %v2585_v37 }
  0x77   :  { %645 = vmatpush.msra.mxu0 %v2619_v48  ;;  %708 = vmatpush.msra.mxu3 %v2611_v46 }
  0x78   :  { %667 = vmatpush.msra.mxu1 %v2629_v52  ;;  %689 = vmatpush.msra.mxu2 %v2597_v41 }
  0x79   :  { %646 = vmatpush.msra.mxu0 %v2635_v54  ;;  %709 = vmatpush.msra.mxu3 %v2623_v50 }
  0x7a   :  { %668 = vmatpush.msra.mxu1 %v2639_v55  ;;  %690 = vmatpush.msra.mxu2 %v2609_v45 }
  0x7b   :  { %647 = vmatpush.msra.mxu0 %v2644_v57  ;;  %710 = vmatpush.msra.mxu3 %v2631_v53 }
  0x7c   :  { %669 = vmatpush.msra.mxu1 %v2648_v58  ;;  %691 = vmatpush.msra.mxu2 %v2621_v49  ;;  %v123_v49 = vld [vmem:[#allocation7] sm:$0xff] }
  0x7d   :  { %648 = vmatpush.msra.mxu0 %v2651_v59  ;;  %711 = vmatpush.msra.mxu3 %v2641_v56 }
  0x7e   :  { %670 = vmatpush.msra.mxu1 %v2656_v60 }
  0x7f   :  { %649 = vmatpush.msra.mxu0 %v2659_v61 }
  0x80   :  { %671 = vmatpush.msra.mxu1 %v2662_v62 }
  0x81   :  { %650 = vmatpush.msra.mxu0 %v2666_v63 }
  0x83   :  { %651 = vmatpush.msra.mxu0 %v2672_v0 }
  0xbe   :  { %v238_v19 = vpop.f32.mrf.mxu1 }
  0xbf   :  { %v282_v24 = vadd.f32 %v238_v19, %v134_v18 }
  0xc0   :  { %v258_v2 = vpop.f32.mrf.mxu2  ;;  %v278_v8 = vpop.f32.mrf.mxu3 }
  0xc1   :  { %v283_v3 = vadd.f32 %v258_v2, %v135_v1  ;;  %v284_v10 = vadd.f32 %v278_v8, %v136_v7  ;;  %v218_v36 = vpop.f32.mrf.mxu0 }
  0xc2   :  { %v281_v41 = vadd.f32 %v218_v36, %v133_v35 }
  0xc3   :  { %v306_v4 = vand.u32 2147483647, %v283_v3  ;;  %v1963_v13 = vmul.f32 -1.442695, %v284_v10  ;;  %v305_v20 = vmin.f32 %v283_v3, 0.0  ;;  %v353_v10 = vld [vmem:[#allocation2 + $0x38] sm:$0xff] }
  0xc5   :  { %v307_v5 = vsub.f32 0.0, %v306_v4  ;;  %v352_v4 = vld [vmem:[#allocation2 + $0x30] sm:$0xff] }
  0xc7   :  { %v308_v6 = vmul.f32 1.442695, %v307_v5 }
  0xc9   :  { %1986 = vpow2.f32 %v308_v6 }
  0xcf   :  { %v1987_v9 = vpop.eup %1986 }
  0xd0   :  { %v310_v11 = vadd.f32 1.0, %v1987_v9  ;;  %v313_v12 = vmul.f32 -0.5, %v1987_v9  ;;  %v316_v15 = vand.u32 2147483647, %v1987_v9 }
  0xd2   :  { %1988 = vlog2.f32 %v310_v11  ;;  %v314_v14 = vadd.f32 1.0, %v313_v12  ;;  %vm317_vm0 = vcmp.lt.f32.partialorder %v316_v15, 0.0004427343 }
  0xd3   :  { %1990 = vpow2.f32 %v1963_v13 }
  0xd4   :  { %v315_v17 = vmul.f32 %v1987_v9, %v314_v14 }
  0xd8   :  { %v1989_v16 = vpop.eup %1988 }
  0xd9   :  { %v312_v0 = vmul.f32 0.6931472, %v1989_v16  ;;  %v1991_v25 = vpop.eup %1990 }
  0xda   :  { %v289_v28 = vadd.f32 1.0, %v1991_v25 }
  0xdb   :  { %v318_v21 = vsel %vm317_vm0, %v315_v17, %v312_v0 }
  0xdc   :  { %v319_v23 = vsub.f32 %v305_v20, %v318_v21  ;;  %vm295_vm1 = vweird.f32 %v289_v28  ;;  %v301_v48 = vand.u32 2147483648, %v289_v28  ;;  %v299_v53 = vand.u32 2147483647, %v289_v28 }
  0xde   :  { %v320_v26 = vmul.f32 1.442695, %v319_v23  ;;  %v322_v27 = vadd.f32 %v319_v23, %v127_v22  ;;  %v302_v59 = vor.u32 1.1754944e-38, %v301_v48  ;;  %vm300_vm7 = vcmp.eq.f32.partialorder %v299_v53, 8.507059e+37  ;;  %v351_v22 = vld [vmem:[#allocation2 + $0x28] sm:$0xff] }
  0xe0   :  { %v2800_v29 = vmax.f32 %v322_v27, %v282_v24  ;;  %1992 = vpow2.f32 %v320_v26 }
  0xe1   :  { %1994 = vrcp.f32 %v289_v28 }
  0xe2   :  { %v324_v30 = vsub.f32 %v282_v24, %v2800_v29 }
  0xe4   :  { %v325_v31 = vmul.f32 1.442695, %v324_v30 }
  0xe6   :  { %1996 = vpow2.f32 %v325_v31  ;;  %v1993_v32 = vpop.eup %1992 }
  0xe7   :  { %v1995_v34 = vpop.eup %1994  ;;  %v330_v37 = vmul.f32 %v1993_v32, %v125_v33  ;;  %v327_v57 = vmul.f32 %v1993_v32, %v123_v49 }
  0xe8   :  { %v291_v39 = vmul.f32 %v1995_v34, %v289_v28  ;;  %vm296_vm2 = vweird.f32 %v1995_v34 }
  0xe9   :  { %vm297_vm4 = vmor %vm295_vm1, %vm296_vm2 }
  0xea   :  { %v292_v42 = vsub.f32 1.0, %v291_v39  ;;  %v350_v39 = vld [vmem:[#allocation2 + $0x20] sm:$0xff] }
  0xec   :  { %v1997_v38 = vpop.eup %1996  ;;  %v293_v44 = vmul.f32 %v1995_v34, %v292_v42 }
  0xed   :  { %v2803_v40 = vadd.f32 %v1997_v38, %v330_v37 }
  0xee   :  { %v294_v52 = vadd.f32 %v1995_v34, %v293_v44 }
  0xef   :  { %1998 = vrcp.f32 %v2803_v40  ;;  %v343_v50 = vand.u32 2147483648, %v2803_v40  ;;  %v341_v56 = vand.u32 2147483647, %v2803_v40  ;;  %vm337_vm5 = vweird.f32 %v2803_v40 }
  0xf0   :  { %2000 = vtanh.f32 %v281_v41  ;;  %v298_v63 = vsel %vm297_vm4, %v1995_v34, %v294_v52 }
  0xf1   :  { %v344_v60 = vor.u32 1.1754944e-38, %v343_v50  ;;  %vm342_vm8 = vcmp.eq.f32.partialorder %v341_v56, 8.507059e+37  ;;  %v303_v2 = vsel %vm300_vm7, %v302_v59, %v298_v63 }
  0xf5   :  { %v1999_v43 = vpop.eup %1998 }
  0xf6   :  { %v333_v45 = vmul.f32 %v1999_v43, %v2803_v40  ;;  %v2001_v46 = vpop.eup %2000  ;;  %vm338_vm3 = vweird.f32 %v1999_v43 }
  0xf7   :  { %v328_v54 = vmul.f32 %v2001_v46, %v1997_v38  ;;  %vm339_vm6 = vmor %vm337_vm5, %vm338_vm3 }
  0xf8   :  { %v334_v47 = vsub.f32 1.0, %v333_v45 }
  0xf9   :  { %v2810_v61 = vadd.f32 %v328_v54, %v327_v57 }
  0xfa   :  { %v335_v55 = vmul.f32 %v1999_v43, %v334_v47 }
  0xfc   :  { %v336_v58 = vadd.f32 %v1999_v43, %v335_v55 }
  0xfe   :  { %v340_v62 = vsel %vm339_vm6, %v1999_v43, %v336_v58 }
  0xff   :  { %v345_v51 = vsel %vm342_vm8, %v344_v60, %v340_v62 }
 0x100   :  { %v346_v1 = vmul.f32 %v345_v51, %v2810_v61 }
 0x102   :  { %v347_v3 = vmul.f32 %v346_v1, %v303_v2 }
 0x104   :  { %348 = vst [vmem:[#allocation13] sm:$0xff] %v347_v3  ;;  %434 = vmatmul.f32.vlgmr.msrb.gmra.mxu0 %v347_v3  ;;  %454 = vmatmul.f32.vlgmr.msrb.gmra.mxu1 %v347_v3 }
 0x105   :  { %474 = vmatmul.f32.vlgmr.msrb.gmra.mxu2 %v347_v3  ;;  %494 = vmatmul.f32.vlgmr.msrb.gmra.mxu3 %v347_v3 }
 0x181   :  { %v455_v23 = vpop.f32.mrf.mxu1  ;;  %v435_v41 = vpop.f32.mrf.mxu0 }
 0x182   :  { %v499_v27 = vadd.f32 %v455_v23, %v351_v22  ;;  %v2870_v22 = vld [vmem:[#allocation11 + $0x188] sm:$0xff]  ;;  %v2872_v23 = vld [vmem:[#allocation11 + $0x190] sm:$0xff] }
 0x188   :  { %v475_v5 = vpop.f32.mrf.mxu2  ;;  %v495_v11 = vpop.f32.mrf.mxu3 }
 0x189   :  { %v500_v6 = vadd.f32 %v475_v5, %v352_v4  ;;  %v501_v13 = vadd.f32 %v495_v11, %v353_v10  ;;  %v2836_v10 = vld [vmem:[#allocation11 + $0x1f0] sm:$0xff] }
 0x18a   :  { %894 = vmatpush.msrb.mxu2 %v2836_v10 }
 0x18b   :  { %v523_v7 = vand.u32 2147483647, %v500_v6  ;;  %v1964_v16 = vmul.f32 -1.442695, %v501_v13  ;;  %v522_v21 = vmin.f32 %v500_v6, 0.0  ;;  %v2844_v13 = vld [vmem:[#allocation11 + $0x1c0] sm:$0xff] }
 0x18d   :  { %v524_v8 = vsub.f32 0.0, %v523_v7 }
 0x18f   :  { %v525_v9 = vmul.f32 1.442695, %v524_v8  ;;  %v2832_v8 = vld [vmem:[#allocation11 + $0x1e0] sm:$0xff] }
 0x190   :  { %854 = vmatpush.msrb.mxu0 %v2832_v8 }
 0x191   :  { %2002 = vpow2.f32 %v525_v9  ;;  %v2834_v9 = vld [vmem:[#allocation11 + $0x1e8] sm:$0xff] }
 0x192   :  { %874 = vmatpush.msrb.mxu1 %v2834_v9  ;;  %855 = vmatpush.msrb.mxu0 %v2844_v13 }
 0x197   :  { %v2003_v12 = vpop.eup %2002 }
 0x198   :  { %v527_v14 = vadd.f32 1.0, %v2003_v12  ;;  %v530_v15 = vmul.f32 -0.5, %v2003_v12  ;;  %v533_v17 = vand.u32 2147483647, %v2003_v12 }
 0x19a   :  { %2004 = vlog2.f32 %v527_v14  ;;  %v531_v0 = vadd.f32 1.0, %v530_v15  ;;  %vm534_vm9 = vcmp.lt.f32.partialorder %v533_v17, 0.0004427343  ;;  %v2846_v14 = vld [vmem:[#allocation11 + $0x1c8] sm:$0xff]  ;;  %v2848_v15 = vld [vmem:[#allocation11 + $0x1d0] sm:$0xff]  ;;  %v2856_v17 = vld [vmem:[#allocation11 + $0x1a0] sm:$0xff] }
 0x19b   :  { %2006 = vpow2.f32 %v1964_v16  ;;  %875 = vmatpush.msrb.mxu1 %v2846_v14  ;;  %895 = vmatpush.msrb.mxu2 %v2848_v15 }
 0x19c   :  { %v532_v20 = vmul.f32 %v2003_v12, %v531_v0  ;;  %v2840_v12 = vld [vmem:[#allocation11 + $0x1f8] sm:$0xff]  ;;  %856 = vmatpush.msrb.mxu0 %v2856_v17 }
 0x19d   :  { %914 = vmatpush.msrb.mxu3 %v2840_v12  ;;  %v2852_v0 = vld [vmem:[#allocation11 + $0x1d8] sm:$0xff] }
 0x19e   :  { %3634 = vst [vmem:[#allocation28_spill] sm:$0xff] %v2852_v0 }
 0x19f   :  { %915 = vmatpush.msrb.mxu3 %v2852_v0 }
 0x1a0   :  { %v2005_v18 = vpop.eup %2004 }
 0x1a1   :  { %v529_v19 = vmul.f32 0.6931472, %v2005_v18  ;;  %v2007_v26 = vpop.eup %2006  ;;  %v2858_v18 = vld [vmem:[#allocation11 + $0x1a8] sm:$0xff] }
 0x1a2   :  { %v506_v32 = vadd.f32 1.0, %v2007_v26  ;;  %3635 = vst [vmem:[#allocation29_spill] sm:$0xff] %v2858_v18  ;;  %876 = vmatpush.msrb.mxu1 %v2858_v18 }
 0x1a3   :  { %v535_v24 = vsel %vm534_vm9, %v532_v20, %v529_v19  ;;  %v2860_v19 = vld [vmem:[#allocation11 + $0x1b0] sm:$0xff]  ;;  %v2864_v20 = vld [vmem:[#allocation11 + $0x1b8] sm:$0xff] }
 0x1a4   :  { %v536_v25 = vsub.f32 %v522_v21, %v535_v24  ;;  %vm512_vm12 = vweird.f32 %v506_v32  ;;  %v518_v55 = vand.u32 2147483648, %v506_v32  ;;  %v516_v57 = vand.u32 2147483647, %v506_v32  ;;  %3636 = vst [vmem:[#allocation30_spill] sm:$0xff] %v2860_v19  ;;  %896 = vmatpush.msrb.mxu2 %v2860_v19  ;;  %916 = vmatpush.msrb.mxu3 %v2864_v20  ;;  %v2868_v21 = vld [vmem:[#allocation11 + $0x180] sm:$0xff]  ;;  %v571_v24 = vld [vmem:[#allocation2 + $0x58] sm:$0xff] }
 0x1a5   :  { %857 = vmatpush.msrb.mxu0 %v2868_v21  ;;  %877 = vmatpush.msrb.mxu1 %v2870_v22 }
 0x1a6   :  { %v537_v28 = vmul.f32 1.442695, %v536_v25  ;;  %v539_v30 = vadd.f32 %v536_v25, %v2800_v29  ;;  %v498_v29 = vadd.f32 %v435_v41, %v350_v39  ;;  %v519_v51 = vor.u32 1.1754944e-38, %v518_v55  ;;  %v2876_v25 = vld [vmem:[#allocation11 + $0x198] sm:$0xff]  ;;  %897 = vmatpush.msrb.mxu2 %v2872_v23  ;;  %v2902_v39 = vld [vmem:[#allocation11 + $0x120] sm:$0xff]  ;;  %v2904_v41 = vld [vmem:[#allocation11 + $0x128] sm:$0xff] }
 0x1a7   :  { %vm517_vm1 = vcmp.eq.f32.partialorder %v516_v57, 8.507059e+37  ;;  %917 = vmatpush.msrb.mxu3 %v2876_v25  ;;  %v2936_v55 = vld [vmem:[#allocation11 + $0xc0] sm:$0xff] }
 0x1a8   :  { %v2814_v31 = vmax.f32 %v539_v30, %v499_v27  ;;  %2008 = vpow2.f32 %v537_v28  ;;  %v2882_v28 = vld [vmem:[#allocation11 + $0x168] sm:$0xff]  ;;  %v2884_v30 = vld [vmem:[#allocation11 + $0x170] sm:$0xff]  ;;  %3640 = vst [vmem:[#allocation34_spill] sm:$0xff] %v2936_v55 }
 0x1a9   :  { %2010 = vrcp.f32 %v506_v32  ;;  %878 = vmatpush.msrb.mxu1 %v2882_v28  ;;  %898 = vmatpush.msrb.mxu2 %v2884_v30 }
 0x1aa   :  { %v541_v33 = vsub.f32 %v499_v27, %v2814_v31  ;;  %v2880_v27 = vld [vmem:[#allocation11 + $0x160] sm:$0xff] }
 0x1ab   :  { %858 = vmatpush.msrb.mxu0 %v2880_v27 }
 0x1ac   :  { %v542_v34 = vmul.f32 1.442695, %v541_v33  ;;  %v2892_v33 = vld [vmem:[#allocation11 + $0x140] sm:$0xff] }
 0x1ad   :  { %859 = vmatpush.msrb.mxu0 %v2892_v33 }
 0x1ae   :  { %2012 = vpow2.f32 %v542_v34  ;;  %v2009_v35 = vpop.eup %2008  ;;  %v2894_v34 = vld [vmem:[#allocation11 + $0x148] sm:$0xff] }
 0x1af   :  { %v2011_v36 = vpop.eup %2010  ;;  %v547_v37 = vmul.f32 %v2009_v35, %v2803_v40  ;;  %v544_v56 = vmul.f32 %v2009_v35, %v2810_v61  ;;  %v570_v61 = vld [vmem:[#allocation2 + $0x50] sm:$0xff]  ;;  %879 = vmatpush.msrb.mxu1 %v2894_v34  ;;  %860 = vmatpush.msrb.mxu0 %v2902_v39 }
 0x1b0   :  { %v508_v43 = vmul.f32 %v2011_v36, %v506_v32  ;;  %vm513_vm10 = vweird.f32 %v2011_v36  ;;  %v2888_v32 = vld [vmem:[#allocation11 + $0x178] sm:$0xff]  ;;  %v2896_v35 = vld [vmem:[#allocation11 + $0x150] sm:$0xff] }
 0x1b1   :  { %vm514_vm13 = vmor %vm512_vm12, %vm513_vm10  ;;  %918 = vmatpush.msrb.mxu3 %v2888_v32  ;;  %899 = vmatpush.msrb.mxu2 %v2896_v35 }
 0x1b2   :  { %v509_v44 = vsub.f32 1.0, %v508_v43  ;;  %880 = vmatpush.msrb.mxu1 %v2904_v41 }
 0x1b4   :  { %v2013_v38 = vpop.eup %2012  ;;  %v510_v46 = vmul.f32 %v2011_v36, %v509_v44 }
 0x1b5   :  { %v2818_v42 = vadd.f32 %v2013_v38, %v547_v37 }
 0x1b6   :  { %v511_v50 = vadd.f32 %v2011_v36, %v510_v46  ;;  %v2914_v46 = vld [vmem:[#allocation11 + $0x100] sm:$0xff] }
 0x1b7   :  { %2014 = vrcp.f32 %v2818_v42  ;;  %v560_v40 = vand.u32 2147483648, %v2818_v42  ;;  %v558_v54 = vand.u32 2147483647, %v2818_v42  ;;  %vm554_vm14 = vweird.f32 %v2818_v42  ;;  %861 = vmatpush.msrb.mxu0 %v2914_v46 }
 0x1b8   :  { %2016 = vtanh.f32 %v498_v29  ;;  %v515_v60 = vsel %vm514_vm13, %v2011_v36, %v511_v50  ;;  %v2908_v29 = vld [vmem:[#allocation11 + $0x130] sm:$0xff]  ;;  %v2924_v50 = vld [vmem:[#allocation11 + $0xe0] sm:$0xff] }
 0x1b9   :  { %v561_v59 = vor.u32 1.1754944e-38, %v560_v40  ;;  %vm559_vm0 = vcmp.eq.f32.partialorder %v558_v54, 8.507059e+37  ;;  %v520_v3 = vsel %vm517_vm1, %v519_v51, %v515_v60  ;;  %900 = vmatpush.msrb.mxu2 %v2908_v29  ;;  %3637 = vst [vmem:[#allocation31_spill] sm:$0xff] %v2924_v50  ;;  %v2932_v54 = vld [vmem:[#allocation11 + $0xf8] sm:$0xff]  ;;  %862 = vmatpush.msrb.mxu0 %v2924_v50  ;;  %v2950_v51 = vld [vmem:[#allocation11 + $0xa8] sm:$0xff] }
 0x1ba   :  { %3639 = vst [vmem:[#allocation33_spill] sm:$0xff] %v2932_v54 }
 0x1bb   :  { %3644 = vst [vmem:[#allocation38_spill] sm:$0xff] %v2950_v51  ;;  %863 = vmatpush.msrb.mxu0 %v2936_v55 }
 0x1bd   :  { %v2015_v45 = vpop.eup %2014 }
 0x1be   :  { %v550_v47 = vmul.f32 %v2015_v45, %v2818_v42  ;;  %v2017_v49 = vpop.eup %2016  ;;  %vm555_vm11 = vweird.f32 %v2015_v45 }
 0x1bf   :  { %v545_v52 = vmul.f32 %v2017_v49, %v2013_v38  ;;  %vm556_vm15 = vmor %vm554_vm14, %vm555_vm11  ;;  %v2900_v38 = vld [vmem:[#allocation11 + $0x158] sm:$0xff] }
 0x1c0   :  { %v551_v48 = vsub.f32 1.0, %v550_v47  ;;  %919 = vmatpush.msrb.mxu3 %v2900_v38  ;;  %v2916_v47 = vld [vmem:[#allocation11 + $0x108] sm:$0xff]  ;;  %v2922_v49 = vld [vmem:[#allocation11 + $0x118] sm:$0xff] }
 0x1c1   :  { %v2826_v62 = vadd.f32 %v545_v52, %v544_v56  ;;  %881 = vmatpush.msrb.mxu1 %v2916_v47  ;;  %v2928_v52 = vld [vmem:[#allocation11 + $0xe8] sm:$0xff] }
 0x1c2   :  { %v552_v53 = vmul.f32 %v2015_v45, %v551_v48  ;;  %v2920_v48 = vld [vmem:[#allocation11 + $0x110] sm:$0xff]  ;;  %3638 = vst [vmem:[#allocation32_spill] sm:$0xff] %v2928_v52  ;;  %v2938_v56 = vld [vmem:[#allocation11 + $0xc8] sm:$0xff] }
 0x1c3   :  { %3633 = vst [vmem:[#allocation27_spill] sm:$0xff] %v2826_v62  ;;  %901 = vmatpush.msrb.mxu2 %v2920_v48  ;;  %882 = vmatpush.msrb.mxu1 %v2928_v52 }
 0x1c4   :  { %v553_v58 = vadd.f32 %v2015_v45, %v552_v53  ;;  %v2930_v53 = vld [vmem:[#allocation11 + $0xf0] sm:$0xff] }
 0x1c5   :  { %902 = vmatpush.msrb.mxu2 %v2930_v53  ;;  %883 = vmatpush.msrb.mxu1 %v2938_v56 }
 0x1c6   :  { %v557_v63 = vsel %vm556_vm15, %v2015_v45, %v553_v58  ;;  %v2912_v45 = vld [vmem:[#allocation11 + $0x138] sm:$0xff]  ;;  %v2942_v58 = vld [vmem:[#allocation11 + $0xd0] sm:$0xff] }
 0x1c7   :  { %v562_v1 = vsel %vm559_vm0, %v561_v59, %v557_v63  ;;  %920 = vmatpush.msrb.mxu3 %v2912_v45  ;;  %3641 = vst [vmem:[#allocation35_spill] sm:$0xff] %v2942_v58  ;;  %v2944_v59 = vld [vmem:[#allocation11 + $0xd8] sm:$0xff]  ;;  %v2948_v63 = vld [vmem:[#allocation11 + $0xa0] sm:$0xff]  ;;  %903 = vmatpush.msrb.mxu2 %v2942_v58 }
 0x1c8   :  { %v563_v2 = vmul.f32 %v562_v1, %v2826_v62  ;;  %3642 = vst [vmem:[#allocation36_spill] sm:$0xff] %v2944_v59  ;;  %v2954_v1 = vld [vmem:[#allocation11 + $0xb0] sm:$0xff]  ;;  %864 = vmatpush.msrb.mxu0 %v2948_v63  ;;  %884 = vmatpush.msrb.mxu1 %v2950_v51 }
 0x1c9   :  { %921 = vmatpush.msrb.mxu3 %v2922_v49  ;;  %3643 = vst [vmem:[#allocation37_spill] sm:$0xff] %v2948_v63  ;;  %904 = vmatpush.msrb.mxu2 %v2954_v1 }
 0x1ca   :  { %v564_v4 = vmul.f32 %v563_v2, %v520_v3  ;;  %3645 = vst [vmem:[#allocation39_spill] sm:$0xff] %v2954_v1  ;;  %v2956_v2 = vld [vmem:[#allocation11 + $0xb8] sm:$0xff] }
 0x1cb   :  { %922 = vmatpush.msrb.mxu3 %v2932_v54  ;;  %3646 = vst [vmem:[#allocation40_spill] sm:$0xff] %v2956_v2 }
 0x1cc   :  { %566 = vst [vmem:[#allocation13 + $0x8] sm:$0xff] %v564_v4  ;;  %652 = vmatmul.f32.vlgmr.msra.gmra.mxu0 %v564_v4  ;;  %672 = vmatmul.f32.vlgmr.msra.gmra.mxu1 %v564_v4 }
 0x1cd   :  { %692 = vmatmul.f32.vlgmr.msra.gmra.mxu2 %v564_v4  ;;  %712 = vmatmul.f32.vlgmr.msra.gmra.mxu3 %v564_v4  ;;  %v2960_v4 = vld [vmem:[#allocation11 + $0x80] sm:$0xff] }
 0x1ce   :  { %923 = vmatpush.msrb.mxu3 %v2944_v59  ;;  %3647 = vst [vmem:[#allocation41_spill] sm:$0xff] %v2960_v4  ;;  %865 = vmatpush.msrb.mxu0 %v2960_v4 }
 0x1d0   :  { %924 = vmatpush.msrb.mxu3 %v2956_v2 }
 0x250   :  { %v693_v5 = vpop.f32.mrf.mxu2  ;;  %v713_v26 = vpop.f32.mrf.mxu3 }
 0x251   :  { %v2829_v6 = vadd.f32 %v693_v5, %v570_v61  ;;  %v719_v37 = vadd.f32 %v713_v26, %v571_v24  ;;  %v2962_v61 = vld [vmem:[#allocation11 + $0x88] sm:$0xff]  ;;  %v2973_v26 = vld [vmem:[#allocation11 + $0x60] sm:$0xff] }
 0x252   :  { %3648 = vst [vmem:[#allocation42_spill] sm:$0xff] %v2962_v61  ;;  %885 = vmatpush.msrb.mxu1 %v2962_v61  ;;  %866 = vmatpush.msrb.mxu0 %v2973_v26 }
 0x253   :  { %v741_v7 = vand.u32 2147483647, %v2829_v6  ;;  %v1965_v40 = vmul.f32 -1.442695, %v719_v37  ;;  %v740_v24 = vmin.f32 %v2829_v6, 0.0  ;;  %3650 = vst [vmem:[#allocation44_spill] sm:$0xff] %v2973_v26 }
 0x254   :  { %v2975_v37 = vld [vmem:[#allocation11 + $0x68] sm:$0xff]  ;;  %v3006_v26 = vld [vmem:[#allocation11 + $0x38] sm:$0xff] }
 0x255   :  { %v742_v11 = vsub.f32 0.0, %v741_v7  ;;  %3651 = vst [vmem:[#allocation45_spill] sm:$0xff] %v2975_v37  ;;  %886 = vmatpush.msrb.mxu1 %v2975_v37  ;;  %v3004_v37 = vld [vmem:[#allocation11 + $0x30] sm:$0xff] }
 0x257   :  { %v743_v16 = vmul.f32 1.442695, %v742_v11  ;;  %v2966_v11 = vld [vmem:[#allocation11 + $0x90] sm:$0xff] }
 0x258   :  { %905 = vmatpush.msrb.mxu2 %v2966_v11 }
 0x259   :  { %2018 = vpow2.f32 %v743_v16  ;;  %v2968_v16 = vld [vmem:[#allocation11 + $0x98] sm:$0xff] }
 0x25a   :  { %3649 = vst [vmem:[#allocation43_spill] sm:$0xff] %v2968_v16  ;;  %925 = vmatpush.msrb.mxu3 %v2968_v16  ;;  %v3000_v16 = vld [vmem:[#allocation11 + $0x28] sm:$0xff] }
 0x25f   :  { %v2019_v36 = vpop.eup %2018 }
 0x260   :  { %v745_v43 = vadd.f32 1.0, %v2019_v36  ;;  %v748_v44 = vmul.f32 -0.5, %v2019_v36  ;;  %v751_v60 = vand.u32 2147483647, %v2019_v36 }
 0x262   :  { %2020 = vlog2.f32 %v745_v43  ;;  %v749_v57 = vadd.f32 1.0, %v748_v44  ;;  %vm752_vm2 = vcmp.lt.f32.partialorder %v751_v60, 0.0004427343  ;;  %v673_v43 = vpop.f32.mrf.mxu1  ;;  %v2985_v60 = vld [vmem:[#allocation11 + $0x40] sm:$0xff] }
 0x263   :  { %2022 = vpow2.f32 %v1965_v40  ;;  %v2979_v40 = vld [vmem:[#allocation11 + $0x70] sm:$0xff]  ;;  %3652 = vst [vmem:[#allocation46_spill] sm:$0xff] %v2985_v60  ;;  %867 = vmatpush.msrb.mxu0 %v2985_v60  ;;  %v3022_v60 = vld [vmem:[#allocation11 + $0x18] sm:$0xff] }
 0x264   :  { %v750_v7 = vmul.f32 %v2019_v36, %v749_v57  ;;  %v569_v36 = vld [vmem:[#allocation2 + $0x48] sm:$0xff]  ;;  %v2981_v57 = vld [vmem:[#allocation11 + $0x78] sm:$0xff]  ;;  %906 = vmatpush.msrb.mxu2 %v2979_v40 }
 0x265   :  { %v717_v61 = vadd.f32 %v673_v43, %v569_v36  ;;  %926 = vmatpush.msrb.mxu3 %v2981_v57 }
 0x268   :  { %v2021_v3 = vpop.eup %2020 }
 0x269   :  { %v747_v5 = vmul.f32 0.6931472, %v2021_v3  ;;  %v2987_v3 = vld [vmem:[#allocation11 + $0x48] sm:$0xff]  ;;  %v2023_v62 = vpop.eup %2022 }
 0x26a   :  { %3653 = vst [vmem:[#allocation47_spill] sm:$0xff] %v2987_v3  ;;  %887 = vmatpush.msrb.mxu1 %v2987_v3  ;;  %v3010_v43 = vadd.f32 1.0, %v2023_v62  ;;  %v3020_v3 = vld [vmem:[#allocation11 + $0x10] sm:$0xff] }
 0x26b   :  { %v753_v44 = vsel %vm752_vm2, %v750_v7, %v747_v5  ;;  %v2991_v5 = vld [vmem:[#allocation11 + $0x50] sm:$0xff]  ;;  %v2993_v7 = vld [vmem:[#allocation11 + $0x58] sm:$0xff] }
 0x26c   :  { %v754_v6 = vsub.f32 %v740_v24, %v753_v44  ;;  %v2998_v44 = vld [vmem:[#allocation11 + $0x20] sm:$0xff]  ;;  %907 = vmatpush.msrb.mxu2 %v2991_v5  ;;  %927 = vmatpush.msrb.mxu3 %v2993_v7  ;;  %vm730_vm5 = vweird.f32 %v3010_v43 }
 0x26d   :  { %868 = vmatpush.msrb.mxu0 %v2998_v44  ;;  %888 = vmatpush.msrb.mxu1 %v3000_v16 }
 0x26e   :  { %v755_v4 = vmul.f32 1.442695, %v754_v6  ;;  %v757_v24 = vadd.f32 %v754_v6, %v2814_v31  ;;  %v3014_v31 = vld [vmem:[#allocation11] sm:$0xff]  ;;  %v3016_v6 = vld [vmem:[#allocation11 + $0x8] sm:$0xff]  ;;  %908 = vmatpush.msrb.mxu2 %v3004_v37  ;;  %928 = vmatpush.msrb.mxu3 %v3006_v26 }
 0x26f   :  { %869 = vmatpush.msrb.mxu0 %v3014_v31  ;;  %889 = vmatpush.msrb.mxu1 %v3016_v6 }
 0x270   :  { %v3008_v36 = vmax.f32 %v757_v24, %v717_v61  ;;  %2024 = vpow2.f32 %v755_v4  ;;  %909 = vmatpush.msrb.mxu2 %v3020_v3  ;;  %929 = vmatpush.msrb.mxu3 %v3022_v60 }
 0x271   :  { %2026 = vrcp.f32 %v3010_v43  ;;  %1072 = vmatpush.msra.mxu0 %v2832_v8  ;;  %1092 = vmatpush.msra.mxu1 %v2834_v9 }
 0x272   :  { %3654 = vst [vmem:[#allocation48_spill] sm:$0xff] %v3008_v36  ;;  %v759_v62 = vsub.f32 %v717_v61, %v3008_v36  ;;  %1112 = vmatpush.msra.mxu2 %v2836_v10  ;;  %1132 = vmatpush.msra.mxu3 %v2840_v12  ;;  %v568_v36 = vld [vmem:[#allocation2 + $0x40] sm:$0xff] }
 0x273   :  { %1073 = vmatpush.msra.mxu0 %v2844_v13  ;;  %1093 = vmatpush.msra.mxu1 %v2846_v14 }
 0x274   :  { %v760_v24 = vmul.f32 1.442695, %v759_v62  ;;  %1113 = vmatpush.msra.mxu2 %v2848_v15  ;;  %1133 = vmatpush.msra.mxu3 %v2852_v0  ;;  %v653_v0 = vpop.f32.mrf.mxu0 }
 0x275   :  { %1074 = vmatpush.msra.mxu0 %v2856_v17  ;;  %1094 = vmatpush.msra.mxu1 %v2858_v18 }
 0x276   :  { %2028 = vpow2.f32 %v760_v24  ;;  %v3038_v4 = vpop.eup %2024  ;;  %1114 = vmatpush.msra.mxu2 %v2860_v19  ;;  %1134 = vmatpush.msra.mxu3 %v2864_v20 }
 0x277   :  { %v3044_v61 = vpop.eup %2026  ;;  %v765_v62 = vmul.f32 %v3038_v4, %v2818_v42  ;;  %1075 = vmatpush.msra.mxu0 %v2868_v21  ;;  %1095 = vmatpush.msra.mxu1 %v2870_v22  ;;  %v716_v42 = vadd.f32 %v653_v0, %v568_v36 }
 0x278   :  { %1115 = vmatpush.msra.mxu2 %v2872_v23  ;;  %1135 = vmatpush.msra.mxu3 %v2876_v25  ;;  %v726_v19 = vmul.f32 %v3044_v61, %v3010_v43  ;;  %vm731_vm3 = vweird.f32 %v3044_v61 }
 0x279   :  { %1076 = vmatpush.msra.mxu0 %v2880_v27  ;;  %1096 = vmatpush.msra.mxu1 %v2882_v28  ;;  %vm3101_vm6 = vmor %vm730_vm5, %vm731_vm3 }
 0x27a   :  { %1116 = vmatpush.msra.mxu2 %v2884_v30  ;;  %1136 = vmatpush.msra.mxu3 %v2888_v32 }
 0x27b   :  { %1077 = vmatpush.msra.mxu0 %v2892_v33  ;;  %1097 = vmatpush.msra.mxu1 %v2894_v34 }
 0x27c   :  { %v2029_v24 = vpop.eup %2028  ;;  %1117 = vmatpush.msra.mxu2 %v2896_v35  ;;  %1137 = vmatpush.msra.mxu3 %v2900_v38 }
 0x27d   :  { %v3054_v18 = vadd.f32 %v2029_v24, %v765_v62  ;;  %v727_v62 = vsub.f32 1.0, %v726_v19  ;;  %1078 = vmatpush.msra.mxu0 %v2902_v39  ;;  %1098 = vmatpush.msra.mxu1 %v2904_v41 }
 0x27e   :  { %1118 = vmatpush.msra.mxu2 %v2908_v29  ;;  %1138 = vmatpush.msra.mxu3 %v2912_v45 }
 0x27f   :  { %3655 = vst [vmem:[#allocation49_spill] sm:$0xff] %v3054_v18  ;;  %2030 = vrcp.f32 %v3054_v18  ;;  %1079 = vmatpush.msra.mxu0 %v2914_v46  ;;  %1099 = vmatpush.msra.mxu1 %v2916_v47  ;;  %v728_v19 = vmul.f32 %v3044_v61, %v727_v62  ;;  %vm772_vm7 = vweird.f32 %v3054_v18 }
 0x280   :  { %2032 = vtanh.f32 %v716_v42  ;;  %1119 = vmatpush.msra.mxu2 %v2920_v48  ;;  %1139 = vmatpush.msra.mxu3 %v2922_v49 }
 0x281   :  { %1080 = vmatpush.msra.mxu0 %v2924_v50  ;;  %1100 = vmatpush.msra.mxu1 %v2928_v52  ;;  %v729_v52 = vadd.f32 %v3044_v61, %v728_v19  ;;  %v778_v50 = vand.u32 2147483648, %v3054_v18  ;;  %v3656_v19 = vld [vmem:[#allocation41_spill] sm:$0xff] }
 0x282   :  { %1120 = vmatpush.msra.mxu2 %v2930_v53  ;;  %1140 = vmatpush.msra.mxu3 %v2932_v54 }
 0x283   :  { %1081 = vmatpush.msra.mxu0 %v2936_v55  ;;  %1101 = vmatpush.msra.mxu1 %v2938_v56 }
 0x284   :  { %1121 = vmatpush.msra.mxu2 %v2942_v58  ;;  %1141 = vmatpush.msra.mxu3 %v2944_v59  ;;  %v736_v59 = vand.u32 2147483648, %v3010_v43  ;;  %v3657_v58 = vld [vmem:[#allocation42_spill] sm:$0xff] }
 0x285   :  { %v2031_v0 = vpop.eup %2030  ;;  %1082 = vmatpush.msra.mxu0 %v2948_v63  ;;  %1102 = vmatpush.msra.mxu1 %v2950_v51  ;;  %v3658_v63 = vld [vmem:[#allocation27_spill] sm:$0xff] }
 0x286   :  { %v768_v36 = vmul.f32 %v2031_v0, %v3054_v18  ;;  %v2033_v62 = vpop.eup %2032  ;;  %vm773_vm4 = vweird.f32 %v2031_v0  ;;  %1122 = vmatpush.msra.mxu2 %v2954_v1  ;;  %1142 = vmatpush.msra.mxu3 %v2956_v2  ;;  %v762_v51 = vmul.f32 %v3038_v4, %v3658_v63  ;;  %v3661_v2 = vld [vmem:[#allocation43_spill] sm:$0xff]  ;;  %v3663_v63 = vld [vmem:[#allocation45_spill] sm:$0xff]  ;;  %v733_v4 = vsel %vm3101_vm6, %v3044_v61, %v729_v52 }
 0x287   :  { %v763_v54 = vmul.f32 %v2033_v62, %v2029_v24  ;;  %1083 = vmatpush.msra.mxu0 %v3656_v19  ;;  %1103 = vmatpush.msra.mxu1 %v3657_v58  ;;  %vm774_vm8 = vmor %vm772_vm7, %vm773_vm4  ;;  %v779_v58 = vor.u32 1.1754944e-38, %v778_v50  ;;  %v3662_v19 = vld [vmem:[#allocation44_spill] sm:$0xff]  ;;  %v3665_v50 = vld [vmem:[#allocation47_spill] sm:$0xff] }
 0x288   :  { %v769_v42 = vsub.f32 1.0, %v768_v36  ;;  %v776_v36 = vand.u32 2147483647, %v3054_v18  ;;  %1123 = vmatpush.msra.mxu2 %v2966_v11  ;;  %1143 = vmatpush.msra.mxu3 %v3661_v2  ;;  %v3664_v2 = vld [vmem:[#allocation46_spill] sm:$0xff] }
 0x289   :  { %1084 = vmatpush.msra.mxu0 %v3662_v19  ;;  %1104 = vmatpush.msra.mxu1 %v3663_v63  ;;  %v3115_v1 = vadd.f32 %v763_v54, %v762_v51 }
 0x28a   :  { %v770_v55 = vmul.f32 %v2031_v0, %v769_v42  ;;  %v734_v42 = vand.u32 2147483647, %v3010_v43  ;;  %vm777_vm9 = vcmp.eq.f32.partialorder %v776_v36, 8.507059e+37  ;;  %1124 = vmatpush.msra.mxu2 %v2979_v40  ;;  %1144 = vmatpush.msra.mxu3 %v2981_v57  ;;  %v737_v43 = vor.u32 1.1754944e-38, %v736_v59  ;;  %v3668_v59 = vld [vmem:[#allocation30_spill] sm:$0xff]  ;;  %v3684_v36 = vld [vmem:[#allocation49_spill] sm:$0xff] }
 0x28b   :  { %1085 = vmatpush.msra.mxu0 %v3664_v2  ;;  %1105 = vmatpush.msra.mxu1 %v3665_v50 }
 0x28c   :  { %v771_v62 = vadd.f32 %v2031_v0, %v770_v55  ;;  %vm735_vm10 = vcmp.eq.f32.partialorder %v734_v42, 8.507059e+37  ;;  %1125 = vmatpush.msra.mxu2 %v2991_v5  ;;  %1145 = vmatpush.msra.mxu3 %v2993_v7  ;;  %v786_v42 = vld [vmem:[#allocation2 + $0x60] sm:$0xff] }
 0x28d   :  { %v738_v52 = vsel %vm735_vm10, %v737_v43, %v733_v4  ;;  %1086 = vmatpush.msra.mxu0 %v2998_v44  ;;  %1106 = vmatpush.msra.mxu1 %v3000_v16 }
 0x28e   :  { %v775_v55 = vsel %vm774_vm8, %v2031_v0, %v771_v62  ;;  %1126 = vmatpush.msra.mxu2 %v3004_v37  ;;  %1146 = vmatpush.msra.mxu3 %v3006_v26 }
 0x28f   :  { %v780_v18 = vsel %vm777_vm9, %v779_v58, %v775_v55  ;;  %1087 = vmatpush.msra.mxu0 %v3014_v31  ;;  %1107 = vmatpush.msra.mxu1 %v3016_v6  ;;  %v3667_v58 = vld [vmem:[#allocation29_spill] sm:$0xff] }
 0x290   :  { %v781_v63 = vmul.f32 %v780_v18, %v3115_v1  ;;  %1127 = vmatpush.msra.mxu2 %v3020_v3  ;;  %1147 = vmatpush.msra.mxu3 %v3022_v60  ;;  %v3666_v18 = vld [vmem:[#allocation28_spill] sm:$0xff] }
 0x292   :  { %v782_v54 = vmul.f32 %v781_v63, %v738_v52 }
 0x294   :  { %784 = vst [vmem:[#allocation13 + $0x10] sm:$0xff] %v782_v54  ;;  %870 = vmatmul.f32.vlgmr.msrb.gmra.mxu0 %v782_v54  ;;  %890 = vmatmul.f32.vlgmr.msrb.gmra.mxu1 %v782_v54 }
 0x295   :  { %910 = vmatmul.f32.vlgmr.msrb.gmra.mxu2 %v782_v54  ;;  %930 = vmatmul.f32.vlgmr.msrb.gmra.mxu3 %v782_v54 }
 0x296   :  { %1290 = vmatpush.msrb.mxu0 %v2832_v8  ;;  %1310 = vmatpush.msrb.mxu1 %v2834_v9  ;;  %v3669_v8 = vld [vmem:[#allocation31_spill] sm:$0xff]  ;;  %v3670_v9 = vld [vmem:[#allocation32_spill] sm:$0xff] }
 0x297   :  { %1330 = vmatpush.msrb.mxu2 %v2836_v10  ;;  %1350 = vmatpush.msrb.mxu3 %v2840_v12  ;;  %v3671_v10 = vld [vmem:[#allocation33_spill] sm:$0xff]  ;;  %v3672_v12 = vld [vmem:[#allocation34_spill] sm:$0xff] }
 0x298   :  { %1291 = vmatpush.msrb.mxu0 %v2844_v13  ;;  %1311 = vmatpush.msrb.mxu1 %v2846_v14  ;;  %v3673_v13 = vld [vmem:[#allocation35_spill] sm:$0xff]  ;;  %v3674_v14 = vld [vmem:[#allocation36_spill] sm:$0xff] }
 0x299   :  { %1331 = vmatpush.msrb.mxu2 %v2848_v15  ;;  %1351 = vmatpush.msrb.mxu3 %v3666_v18  ;;  %v3675_v15 = vld [vmem:[#allocation37_spill] sm:$0xff] }
 0x29a   :  { %1292 = vmatpush.msrb.mxu0 %v2856_v17  ;;  %1312 = vmatpush.msrb.mxu1 %v3667_v58  ;;  %v3676_v17 = vld [vmem:[#allocation38_spill] sm:$0xff] }
 0x29b   :  { %1332 = vmatpush.msrb.mxu2 %v3668_v59  ;;  %1352 = vmatpush.msrb.mxu3 %v2864_v20  ;;  %v3677_v20 = vld [vmem:[#allocation39_spill] sm:$0xff] }
 0x29c   :  { %1293 = vmatpush.msrb.mxu0 %v2868_v21  ;;  %1313 = vmatpush.msrb.mxu1 %v2870_v22  ;;  %v3678_v21 = vld [vmem:[#allocation40_spill] sm:$0xff]  ;;  %v3679_v22 = vld [vmem:[#allocation41_spill] sm:$0xff] }
 0x29d   :  { %1333 = vmatpush.msrb.mxu2 %v2872_v23  ;;  %1353 = vmatpush.msrb.mxu3 %v2876_v25  ;;  %v3680_v23 = vld [vmem:[#allocation42_spill] sm:$0xff]  ;;  %v3681_v25 = vld [vmem:[#allocation43_spill] sm:$0xff] }
 0x29e   :  { %1294 = vmatpush.msrb.mxu0 %v2880_v27  ;;  %1314 = vmatpush.msrb.mxu1 %v2882_v28  ;;  %v3682_v27 = vld [vmem:[#allocation45_spill] sm:$0xff] }
 0x29f   :  { %1334 = vmatpush.msrb.mxu2 %v2884_v30  ;;  %1354 = vmatpush.msrb.mxu3 %v2888_v32  ;;  %v788_v28 = vld [vmem:[#allocation2 + $0x70] sm:$0xff] }
 0x2a0   :  { %1295 = vmatpush.msrb.mxu0 %v2892_v33  ;;  %1315 = vmatpush.msrb.mxu1 %v2894_v34 }
 0x2a1   :  { %1335 = vmatpush.msrb.mxu2 %v2896_v35  ;;  %1355 = vmatpush.msrb.mxu3 %v2900_v38  ;;  %v789_v38 = vld [vmem:[#allocation2 + $0x78] sm:$0xff] }
 0x2a2   :  { %1296 = vmatpush.msrb.mxu0 %v2902_v39  ;;  %1316 = vmatpush.msrb.mxu1 %v2904_v41 }
 0x2a3   :  { %1336 = vmatpush.msrb.mxu2 %v2908_v29  ;;  %1356 = vmatpush.msrb.mxu3 %v2912_v45 }
 0x2a4   :  { %1297 = vmatpush.msrb.mxu0 %v2914_v46  ;;  %1317 = vmatpush.msrb.mxu1 %v2916_v47 }
 0x2a5   :  { %1337 = vmatpush.msrb.mxu2 %v2920_v48  ;;  %1357 = vmatpush.msrb.mxu3 %v2922_v49 }
 0x2a6   :  { %1298 = vmatpush.msrb.mxu0 %v3669_v8  ;;  %1318 = vmatpush.msrb.mxu1 %v3670_v9 }
 0x2a7   :  { %1338 = vmatpush.msrb.mxu2 %v2930_v53  ;;  %1358 = vmatpush.msrb.mxu3 %v3671_v10 }
 0x2a8   :  { %1299 = vmatpush.msrb.mxu0 %v3672_v12  ;;  %1319 = vmatpush.msrb.mxu1 %v2938_v56 }
 0x2a9   :  { %1339 = vmatpush.msrb.mxu2 %v3673_v13  ;;  %1359 = vmatpush.msrb.mxu3 %v3674_v14 }
 0x2aa   :  { %1300 = vmatpush.msrb.mxu0 %v3675_v15  ;;  %1320 = vmatpush.msrb.mxu1 %v3676_v17 }
 0x2ab   :  { %1340 = vmatpush.msrb.mxu2 %v3677_v20  ;;  %1360 = vmatpush.msrb.mxu3 %v3678_v21 }
 0x2ac   :  { %1301 = vmatpush.msrb.mxu0 %v3679_v22  ;;  %1321 = vmatpush.msrb.mxu1 %v3680_v23 }
 0x2ad   :  { %1341 = vmatpush.msrb.mxu2 %v2966_v11  ;;  %1361 = vmatpush.msrb.mxu3 %v3681_v25  ;;  %v787_v11 = vld [vmem:[#allocation2 + $0x68] sm:$0xff] }
 0x2ae   :  { %1302 = vmatpush.msrb.mxu0 %v3662_v19  ;;  %1322 = vmatpush.msrb.mxu1 %v3682_v27 }
 0x2af   :  { %1342 = vmatpush.msrb.mxu2 %v2979_v40  ;;  %1362 = vmatpush.msrb.mxu3 %v2981_v57 }
 0x2b0   :  { %1303 = vmatpush.msrb.mxu0 %v3664_v2  ;;  %1323 = vmatpush.msrb.mxu1 %v3665_v50 }
 0x2b1   :  { %1343 = vmatpush.msrb.mxu2 %v2991_v5  ;;  %1363 = vmatpush.msrb.mxu3 %v2993_v7 }
 0x2b2   :  { %1304 = vmatpush.msrb.mxu0 %v2998_v44  ;;  %1324 = vmatpush.msrb.mxu1 %v3000_v16 }
 0x2b3   :  { %1344 = vmatpush.msrb.mxu2 %v3004_v37  ;;  %1364 = vmatpush.msrb.mxu3 %v3006_v26 }
 0x2b4   :  { %1305 = vmatpush.msrb.mxu0 %v3014_v31  ;;  %1325 = vmatpush.msrb.mxu1 %v3016_v6 }
 0x2b5   :  { %1345 = vmatpush.msrb.mxu2 %v3020_v3  ;;  %1365 = vmatpush.msrb.mxu3 %v3022_v60  ;;  %v3683_v3 = vld [vmem:[#allocation48_spill] sm:$0xff] }
 0x311   :  { %v891_v16 = vpop.f32.mrf.mxu1  ;;  %v871_v62 = vpop.f32.mrf.mxu0 }
 0x312   :  { %v935_v57 = vadd.f32 %v891_v16, %v787_v11  ;;  %v934_v55 = vadd.f32 %v871_v62, %v786_v42  ;;  %v1004_v62 = vld [vmem:[#allocation2 + $0x80] sm:$0xff] }
 0x318   :  { %v911_v30 = vpop.f32.mrf.mxu2  ;;  %v931_v39 = vpop.f32.mrf.mxu3 }
 0x319   :  { %v936_v32 = vadd.f32 %v911_v30, %v788_v28  ;;  %v937_v29 = vadd.f32 %v931_v39, %v789_v38 }
 0x31b   :  { %v959_v33 = vand.u32 2147483647, %v936_v32  ;;  %v1966_v47 = vmul.f32 -1.442695, %v937_v29  ;;  %v958_v2 = vmin.f32 %v936_v32, 0.0 }
 0x31d   :  { %v960_v34 = vsub.f32 0.0, %v959_v33 }
 0x31f   :  { %v961_v35 = vmul.f32 1.442695, %v960_v34 }
 0x321   :  { %2034 = vpow2.f32 %v961_v35 }
 0x327   :  { %v2035_v41 = vpop.eup %2034 }
 0x328   :  { %v963_v45 = vadd.f32 1.0, %v2035_v41  ;;  %v966_v46 = vmul.f32 -0.5, %v2035_v41  ;;  %v969_v49 = vand.u32 2147483647, %v2035_v41 }
 0x32a   :  { %2036 = vlog2.f32 %v963_v45  ;;  %v967_v48 = vadd.f32 1.0, %v966_v46  ;;  %vm970_vm11 = vcmp.lt.f32.partialorder %v969_v49, 0.0004427343 }
 0x32b   :  { %2038 = vpow2.f32 %v1966_v47 }
 0x32c   :  { %v968_v51 = vmul.f32 %v2035_v41, %v967_v48  ;;  %v1007_v41 = vld [vmem:[#allocation2 + $0x98] sm:$0xff] }
 0x330   :  { %v2037_v53 = vpop.eup %2036 }
 0x331   :  { %v965_v56 = vmul.f32 0.6931472, %v2037_v53  ;;  %v2039_v40 = vpop.eup %2038 }
 0x332   :  { %v942_v44 = vadd.f32 1.0, %v2039_v40 }
 0x333   :  { %v971_v26 = vsel %vm970_vm11, %v968_v51, %v965_v56 }
 0x334   :  { %v972_v37 = vsub.f32 %v958_v2, %v971_v26  ;;  %vm948_vm14 = vweird.f32 %v942_v44  ;;  %v954_v13 = vand.u32 2147483648, %v942_v44  ;;  %v952_v15 = vand.u32 2147483647, %v942_v44  ;;  %v1005_v26 = vld [vmem:[#allocation2 + $0x88] sm:$0xff] }
 0x336   :  { %v973_v60 = vmul.f32 1.442695, %v972_v37  ;;  %v975_v5 = vadd.f32 %v972_v37, %v3683_v3  ;;  %v955_v25 = vor.u32 1.1754944e-38, %v954_v13  ;;  %vm953_vm3 = vcmp.eq.f32.partialorder %v952_v15, 8.507059e+37 }
 0x338   :  { %v3197_v7 = vmax.f32 %v975_v5, %v935_v57  ;;  %2040 = vpow2.f32 %v973_v60 }
 0x339   :  { %2042 = vrcp.f32 %v942_v44 }
 0x33a   :  { %v977_v31 = vsub.f32 %v935_v57, %v3197_v7 }
 0x33c   :  { %v978_v6 = vmul.f32 1.442695, %v977_v31 }
 0x33e   :  { %2044 = vpow2.f32 %v978_v6  ;;  %v2041_v61 = vpop.eup %2040 }
 0x33f   :  { %v2043_v0 = vpop.eup %2042  ;;  %v983_v19 = vmul.f32 %v2041_v61, %v3684_v36  ;;  %v980_v14 = vmul.f32 %v2041_v61, %v3115_v1  ;;  %v1006_v1 = vld [vmem:[#allocation2 + $0x90] sm:$0xff] }
 0x340   :  { %v944_v4 = vmul.f32 %v2043_v0, %v942_v44  ;;  %vm949_vm12 = vweird.f32 %v2043_v0 }
 0x341   :  { %vm950_vm15 = vmor %vm948_vm14, %vm949_vm12 }
 0x342   :  { %v945_v43 = vsub.f32 1.0, %v944_v4 }
 0x344   :  { %v2045_v24 = vpop.eup %2044  ;;  %v946_v52 = vmul.f32 %v2043_v0, %v945_v43 }
 0x345   :  { %v3201_v63 = vadd.f32 %v2045_v24, %v983_v19 }
 0x346   :  { %v947_v59 = vadd.f32 %v2043_v0, %v946_v52 }
 0x347   :  { %2046 = vrcp.f32 %v3201_v63  ;;  %v996_v8 = vand.u32 2147483648, %v3201_v63  ;;  %v994_v12 = vand.u32 2147483647, %v3201_v63  ;;  %vm990_vm0 = vweird.f32 %v3201_v63 }
 0x348   :  { %2048 = vtanh.f32 %v934_v55  ;;  %v951_v21 = vsel %vm950_vm15, %v2043_v0, %v947_v59 }
 0x349   :  { %v997_v20 = vor.u32 1.1754944e-38, %v996_v8  ;;  %vm995_vm2 = vcmp.eq.f32.partialorder %v994_v12, 8.507059e+37  ;;  %v956_v30 = vsel %vm953_vm3, %v955_v25, %v951_v21 }
 0x34d   :  { %v2047_v50 = vpop.eup %2046 }
 0x34e   :  { %v986_v54 = vmul.f32 %v2047_v50, %v3201_v63  ;;  %v2049_v58 = vpop.eup %2048  ;;  %vm991_vm13 = vweird.f32 %v2047_v50 }
 0x34f   :  { %v981_v9 = vmul.f32 %v2049_v58, %v2045_v24  ;;  %vm992_vm1 = vmor %vm990_vm0, %vm991_vm13 }
 0x350   :  { %v987_v18 = vsub.f32 1.0, %v986_v54 }
 0x351   :  { %v3209_v22 = vadd.f32 %v981_v9, %v980_v14 }
 0x352   :  { %v988_v10 = vmul.f32 %v2047_v50, %v987_v18 }
 0x354   :  { %v989_v17 = vadd.f32 %v2047_v50, %v988_v10 }
 0x356   :  { %v993_v23 = vsel %vm992_vm1, %v2047_v50, %v989_v17 }
 0x357   :  { %v998_v27 = vsel %vm995_vm2, %v997_v20, %v993_v23 }
 0x358   :  { %v999_v28 = vmul.f32 %v998_v27, %v3209_v22 }
 0x35a   :  { %v1000_v32 = vmul.f32 %v999_v28, %v956_v30 }
 0x35c   :  { %1002 = vst [vmem:[#allocation13 + $0x18] sm:$0xff] %v1000_v32  ;;  %1088 = vmatmul.f32.vlgmr.msra.gmra.mxu0 %v1000_v32  ;;  %1108 = vmatmul.f32.vlgmr.msra.gmra.mxu1 %v1000_v32 }
 0x35d   :  { %1128 = vmatmul.f32.vlgmr.msra.gmra.mxu2 %v1000_v32  ;;  %1148 = vmatmul.f32.vlgmr.msra.gmra.mxu3 %v1000_v32 }
 0x3d9   :  { %v1109_v37 = vpop.f32.mrf.mxu1  ;;  %v1089_v4 = vpop.f32.mrf.mxu0 }
 0x3da   :  { %v1153_v3 = vadd.f32 %v1109_v37, %v1005_v26  ;;  %v3269_v26 = vld [vmem:[#allocation11 + $0x188] sm:$0xff]  ;;  %v3271_v37 = vld [vmem:[#allocation11 + $0x190] sm:$0xff] }
 0x3e0   :  { %v1129_v33 = vpop.f32.mrf.mxu2  ;;  %v1149_v29 = vpop.f32.mrf.mxu3 }
 0x3e1   :  { %v1154_v34 = vadd.f32 %v1129_v33, %v1006_v1  ;;  %v1155_v46 = vadd.f32 %v1149_v29, %v1007_v41  ;;  %v3235_v41 = vld [vmem:[#allocation11 + $0x1f0] sm:$0xff] }
 0x3e2   :  { %1548 = vmatpush.msra.mxu2 %v3235_v41 }
 0x3e3   :  { %v1177_v35 = vand.u32 2147483647, %v1154_v34  ;;  %v1967_v49 = vmul.f32 -1.442695, %v1155_v46  ;;  %v1176_v16 = vmin.f32 %v1154_v34, 0.0  ;;  %v3243_v46 = vld [vmem:[#allocation11 + $0x1c0] sm:$0xff] }
 0x3e5   :  { %v1178_v38 = vsub.f32 0.0, %v1177_v35 }
 0x3e7   :  { %v1179_v39 = vmul.f32 1.442695, %v1178_v38  ;;  %v3231_v38 = vld [vmem:[#allocation11 + $0x1e0] sm:$0xff] }
 0x3e8   :  { %1508 = vmatpush.msra.mxu0 %v3231_v38 }
 0x3e9   :  { %2050 = vpow2.f32 %v1179_v39  ;;  %v3233_v39 = vld [vmem:[#allocation11 + $0x1e8] sm:$0xff] }
 0x3ea   :  { %1528 = vmatpush.msra.mxu1 %v3233_v39  ;;  %1509 = vmatpush.msra.mxu0 %v3243_v46 }
 0x3ef   :  { %v2051_v45 = vpop.eup %2050 }
 0x3f0   :  { %v1181_v47 = vadd.f32 1.0, %v2051_v45  ;;  %v1184_v48 = vmul.f32 -0.5, %v2051_v45  ;;  %v1187_v56 = vand.u32 2147483647, %v2051_v45 }
 0x3f2   :  { %2052 = vlog2.f32 %v1181_v47  ;;  %v1185_v53 = vadd.f32 1.0, %v1184_v48  ;;  %vm1188_vm4 = vcmp.lt.f32.partialorder %v1187_v56, 0.0004427343  ;;  %v3245_v47 = vld [vmem:[#allocation11 + $0x1c8] sm:$0xff]  ;;  %v3247_v48 = vld [vmem:[#allocation11 + $0x1d0] sm:$0xff]  ;;  %v3255_v56 = vld [vmem:[#allocation11 + $0x1a0] sm:$0xff] }
 0x3f3   :  { %2054 = vpow2.f32 %v1967_v49  ;;  %1529 = vmatpush.msra.mxu1 %v3245_v47  ;;  %1549 = vmatpush.msra.mxu2 %v3247_v48 }
 0x3f4   :  { %v1186_v11 = vmul.f32 %v2051_v45, %v1185_v53  ;;  %v3239_v45 = vld [vmem:[#allocation11 + $0x1f8] sm:$0xff]  ;;  %1510 = vmatpush.msra.mxu0 %v3255_v56 }
 0x3f5   :  { %1568 = vmatpush.msra.mxu3 %v3239_v45  ;;  %v3251_v53 = vld [vmem:[#allocation11 + $0x1d8] sm:$0xff] }
 0x3f7   :  { %1569 = vmatpush.msra.mxu3 %v3251_v53 }
 0x3f8   :  { %v2053_v51 = vpop.eup %2052 }
 0x3f9   :  { %v1183_v2 = vmul.f32 0.6931472, %v2053_v51  ;;  %v2055_v60 = vpop.eup %2054  ;;  %v3257_v51 = vld [vmem:[#allocation11 + $0x1a8] sm:$0xff] }
 0x3fa   :  { %v1160_v6 = vadd.f32 1.0, %v2055_v60  ;;  %1530 = vmatpush.msra.mxu1 %v3257_v51 }
 0x3fb   :  { %v1189_v40 = vsel %vm1188_vm4, %v1186_v11, %v1183_v2  ;;  %v3259_v2 = vld [vmem:[#allocation11 + $0x1b0] sm:$0xff]  ;;  %v3263_v11 = vld [vmem:[#allocation11 + $0x1b8] sm:$0xff] }
 0x3fc   :  { %v1190_v57 = vsub.f32 %v1176_v16, %v1189_v40  ;;  %vm1166_vm7 = vweird.f32 %v1160_v6  ;;  %v1172_v13 = vand.u32 2147483648, %v1160_v6  ;;  %v1170_v15 = vand.u32 2147483647, %v1160_v6  ;;  %1550 = vmatpush.msra.mxu2 %v3259_v2  ;;  %1570 = vmatpush.msra.mxu3 %v3263_v11  ;;  %v3267_v16 = vld [vmem:[#allocation11 + $0x180] sm:$0xff]  ;;  %v1225_v40 = vld [vmem:[#allocation2 + $0xb8] sm:$0xff] }
 0x3fd   :  { %1511 = vmatpush.msra.mxu0 %v3267_v16  ;;  %1531 = vmatpush.msra.mxu1 %v3269_v26 }
 0x3fe   :  { %v1191_v5 = vmul.f32 1.442695, %v1190_v57  ;;  %v1193_v44 = vadd.f32 %v1190_v57, %v3197_v7  ;;  %v1152_v7 = vadd.f32 %v1089_v4, %v1004_v62  ;;  %v1173_v27 = vor.u32 1.1754944e-38, %v1172_v13  ;;  %v3275_v57 = vld [vmem:[#allocation11 + $0x198] sm:$0xff]  ;;  %1551 = vmatpush.msra.mxu2 %v3271_v37  ;;  %v3301_v62 = vld [vmem:[#allocation11 + $0x120] sm:$0xff]  ;;  %v3303_v4 = vld [vmem:[#allocation11 + $0x128] sm:$0xff] }
 0x3ff   :  { %vm1171_vm12 = vcmp.eq.f32.partialorder %v1170_v15, 8.507059e+37  ;;  %1571 = vmatpush.msra.mxu3 %v3275_v57  ;;  %v3335_v13 = vld [vmem:[#allocation11 + $0xc0] sm:$0xff] }
 0x400   :  { %v3213_v31 = vmax.f32 %v1193_v44, %v1153_v3  ;;  %2056 = vpow2.f32 %v1191_v5  ;;  %v3281_v5 = vld [vmem:[#allocation11 + $0x168] sm:$0xff]  ;;  %v3283_v44 = vld [vmem:[#allocation11 + $0x170] sm:$0xff] }
 0x401   :  { %2058 = vrcp.f32 %v1160_v6  ;;  %1532 = vmatpush.msra.mxu1 %v3281_v5  ;;  %1552 = vmatpush.msra.mxu2 %v3283_v44 }
 0x402   :  { %v1195_v61 = vsub.f32 %v1153_v3, %v3213_v31  ;;  %v3279_v3 = vld [vmem:[#allocation11 + $0x160] sm:$0xff] }
 0x403   :  { %1512 = vmatpush.msra.mxu0 %v3279_v3 }
 0x404   :  { %v1196_v0 = vmul.f32 1.442695, %v1195_v61  ;;  %v3291_v61 = vld [vmem:[#allocation11 + $0x140] sm:$0xff] }
 0x405   :  { %1513 = vmatpush.msra.mxu0 %v3291_v61 }
 0x406   :  { %2060 = vpow2.f32 %v1196_v0  ;;  %v2057_v36 = vpop.eup %2056  ;;  %v3293_v0 = vld [vmem:[#allocation11 + $0x148] sm:$0xff] }
 0x407   :  { %v2059_v19 = vpop.eup %2058  ;;  %v1201_v24 = vmul.f32 %v2057_v36, %v3201_v63  ;;  %v1198_v14 = vmul.f32 %v2057_v36, %v3209_v22  ;;  %v1224_v22 = vld [vmem:[#allocation2 + $0xb0] sm:$0xff]  ;;  %1533 = vmatpush.msra.mxu1 %v3293_v0  ;;  %1514 = vmatpush.msra.mxu0 %v3301_v62 }
 0x408   :  { %v1162_v43 = vmul.f32 %v2059_v19, %v1160_v6  ;;  %vm1167_vm5 = vweird.f32 %v2059_v19  ;;  %v3287_v6 = vld [vmem:[#allocation11 + $0x178] sm:$0xff]  ;;  %v3295_v36 = vld [vmem:[#allocation11 + $0x150] sm:$0xff] }
 0x409   :  { %vm1168_vm8 = vmor %vm1166_vm7, %vm1167_vm5  ;;  %1572 = vmatpush.msra.mxu3 %v3287_v6  ;;  %1553 = vmatpush.msra.mxu2 %v3295_v36 }
 0x40a   :  { %v1163_v50 = vsub.f32 1.0, %v1162_v43  ;;  %1534 = vmatpush.msra.mxu1 %v3303_v4 }
 0x40c   :  { %v2061_v42 = vpop.eup %2060  ;;  %v1164_v54 = vmul.f32 %v2059_v19, %v1163_v50 }
 0x40d   :  { %v3217_v55 = vadd.f32 %v2061_v42, %v1201_v24 }
 0x40e   :  { %v1165_v8 = vadd.f32 %v2059_v19, %v1164_v54  ;;  %v3313_v54 = vld [vmem:[#allocation11 + $0x100] sm:$0xff] }
 0x40f   :  { %2062 = vrcp.f32 %v3217_v55  ;;  %v1214_v63 = vand.u32 2147483648, %v3217_v55  ;;  %v1212_v12 = vand.u32 2147483647, %v3217_v55  ;;  %vm1208_vm9 = vweird.f32 %v3217_v55  ;;  %1515 = vmatpush.msra.mxu0 %v3313_v54 }
 0x410   :  { %2064 = vtanh.f32 %v1152_v7  ;;  %v1169_v21 = vsel %vm1168_vm8, %v2059_v19, %v1165_v8  ;;  %v3307_v7 = vld [vmem:[#allocation11 + $0x130] sm:$0xff]  ;;  %v3323_v8 = vld [vmem:[#allocation11 + $0xe0] sm:$0xff] }
 0x411   :  { %v1215_v20 = vor.u32 1.1754944e-38, %v1214_v63  ;;  %vm1213_vm11 = vcmp.eq.f32.partialorder %v1212_v12, 8.507059e+37  ;;  %v1174_v32 = vsel %vm1171_vm12, %v1173_v27, %v1169_v21  ;;  %1554 = vmatpush.msra.mxu2 %v3307_v7  ;;  %v3331_v12 = vld [vmem:[#allocation11 + $0xf8] sm:$0xff]  ;;  %1516 = vmatpush.msra.mxu0 %v3323_v8  ;;  %v3349_v27 = vld [vmem:[#allocation11 + $0xa8] sm:$0xff] }
 0x413   :  { %1517 = vmatpush.msra.mxu0 %v3335_v13 }
 0x415   :  { %v2063_v52 = vpop.eup %2062 }
 0x416   :  { %v1204_v18 = vmul.f32 %v2063_v52, %v3217_v55  ;;  %v2065_v59 = vpop.eup %2064  ;;  %vm1209_vm6 = vweird.f32 %v2063_v52 }
 0x417   :  { %v1199_v9 = vmul.f32 %v2065_v59, %v2061_v42  ;;  %vm1210_vm10 = vmor %vm1208_vm9, %vm1209_vm6  ;;  %v3299_v42 = vld [vmem:[#allocation11 + $0x158] sm:$0xff] }
 0x418   :  { %v1205_v58 = vsub.f32 1.0, %v1204_v18  ;;  %1573 = vmatpush.msra.mxu3 %v3299_v42  ;;  %v3315_v18 = vld [vmem:[#allocation11 + $0x108] sm:$0xff]  ;;  %v3321_v59 = vld [vmem:[#allocation11 + $0x118] sm:$0xff] }
 0x419   :  { %v3225_v23 = vadd.f32 %v1199_v9, %v1198_v14  ;;  %1535 = vmatpush.msra.mxu1 %v3315_v18  ;;  %v3327_v9 = vld [vmem:[#allocation11 + $0xe8] sm:$0xff] }
 0x41a   :  { %v1206_v10 = vmul.f32 %v2063_v52, %v1205_v58  ;;  %v3319_v58 = vld [vmem:[#allocation11 + $0x110] sm:$0xff]  ;;  %v3337_v14 = vld [vmem:[#allocation11 + $0xc8] sm:$0xff] }
 0x41b   :  { %3685 = vst [vmem:[#allocation27_spill] sm:$0xff] %v3225_v23  ;;  %1555 = vmatpush.msra.mxu2 %v3319_v58  ;;  %1536 = vmatpush.msra.mxu1 %v3327_v9 }
 0x41c   :  { %v1207_v17 = vadd.f32 %v2063_v52, %v1206_v10  ;;  %v3329_v10 = vld [vmem:[#allocation11 + $0xf0] sm:$0xff] }
 0x41d   :  { %1556 = vmatpush.msra.mxu2 %v3329_v10  ;;  %1537 = vmatpush.msra.mxu1 %v3337_v14 }
 0x41e   :  { %v1211_v25 = vsel %vm1210_vm10, %v2063_v52, %v1207_v17  ;;  %v3311_v52 = vld [vmem:[#allocation11 + $0x138] sm:$0xff]  ;;  %v3341_v17 = vld [vmem:[#allocation11 + $0xd0] sm:$0xff] }
 0x41f   :  { %v1216_v28 = vsel %vm1213_vm11, %v1215_v20, %v1211_v25  ;;  %1574 = vmatpush.msra.mxu3 %v3311_v52  ;;  %v3343_v20 = vld [vmem:[#allocation11 + $0xd8] sm:$0xff]  ;;  %v3347_v25 = vld [vmem:[#allocation11 + $0xa0] sm:$0xff]  ;;  %1557 = vmatpush.msra.mxu2 %v3341_v17 }
 0x420   :  { %v1217_v30 = vmul.f32 %v1216_v28, %v3225_v23  ;;  %v3353_v28 = vld [vmem:[#allocation11 + $0xb0] sm:$0xff]  ;;  %1518 = vmatpush.msra.mxu0 %v3347_v25  ;;  %1538 = vmatpush.msra.mxu1 %v3349_v27 }
 0x421   :  { %1575 = vmatpush.msra.mxu3 %v3321_v59  ;;  %1558 = vmatpush.msra.mxu2 %v3353_v28 }
 0x422   :  { %v1218_v1 = vmul.f32 %v1217_v30, %v1174_v32  ;;  %v3355_v30 = vld [vmem:[#allocation11 + $0xb8] sm:$0xff] }
 0x423   :  { %1576 = vmatpush.msra.mxu3 %v3331_v12 }
 0x424   :  { %1220 = vst [vmem:[#allocation13 + $0x20] sm:$0xff] %v1218_v1  ;;  %1306 = vmatmul.f32.vlgmr.msrb.gmra.mxu0 %v1218_v1  ;;  %1326 = vmatmul.f32.vlgmr.msrb.gmra.mxu1 %v1218_v1 }
 0x425   :  { %1346 = vmatmul.f32.vlgmr.msrb.gmra.mxu2 %v1218_v1  ;;  %1366 = vmatmul.f32.vlgmr.msrb.gmra.mxu3 %v1218_v1  ;;  %v3359_v1 = vld [vmem:[#allocation11 + $0x80] sm:$0xff] }
 0x426   :  { %1577 = vmatpush.msra.mxu3 %v3343_v20  ;;  %3686 = vst [vmem:[#allocation44_spill] sm:$0xff] %v3359_v1  ;;  %1519 = vmatpush.msra.mxu0 %v3359_v1 }
 0x428   :  { %1578 = vmatpush.msra.mxu3 %v3355_v30 }
 0x4a8   :  { %v1347_v33 = vpop.f32.mrf.mxu2  ;;  %v1367_v60 = vpop.f32.mrf.mxu3 }
 0x4a9   :  { %v3228_v34 = vadd.f32 %v1347_v33, %v1224_v22  ;;  %v1373_v24 = vadd.f32 %v1367_v60, %v1225_v40  ;;  %v3361_v22 = vld [vmem:[#allocation11 + $0x88] sm:$0xff]  ;;  %v3372_v60 = vld [vmem:[#allocation11 + $0x60] sm:$0xff] }
 0x4aa   :  { %3687 = vst [vmem:[#allocation46_spill] sm:$0xff] %v3361_v22  ;;  %1539 = vmatpush.msra.mxu1 %v3361_v22  ;;  %1520 = vmatpush.msra.mxu0 %v3372_v60 }
 0x4ab   :  { %v1395_v35 = vand.u32 2147483647, %v3228_v34  ;;  %v1968_v63 = vmul.f32 -1.442695, %v1373_v24  ;;  %v1394_v40 = vmin.f32 %v3228_v34, 0.0  ;;  %3689 = vst [vmem:[#allocation28_spill] sm:$0xff] %v3372_v60 }
 0x4ac   :  { %v3374_v24 = vld [vmem:[#allocation11 + $0x68] sm:$0xff]  ;;  %v3405_v60 = vld [vmem:[#allocation11 + $0x38] sm:$0xff] }
 0x4ad   :  { %v1396_v29 = vsub.f32 0.0, %v1395_v35  ;;  %3690 = vst [vmem:[#allocation29_spill] sm:$0xff] %v3374_v24  ;;  %1540 = vmatpush.msra.mxu1 %v3374_v24  ;;  %v3403_v24 = vld [vmem:[#allocation11 + $0x30] sm:$0xff] }
 0x4af   :  { %v1397_v49 = vmul.f32 1.442695, %v1396_v29  ;;  %v3365_v29 = vld [vmem:[#allocation11 + $0x90] sm:$0xff] }
 0x4b0   :  { %1559 = vmatpush.msra.mxu2 %v3365_v29 }
 0x4b1   :  { %2066 = vpow2.f32 %v1397_v49  ;;  %v3367_v49 = vld [vmem:[#allocation11 + $0x98] sm:$0xff] }
 0x4b2   :  { %3688 = vst [vmem:[#allocation47_spill] sm:$0xff] %v3367_v49  ;;  %1579 = vmatpush.msra.mxu3 %v3367_v49  ;;  %v3399_v49 = vld [vmem:[#allocation11 + $0x28] sm:$0xff] }
 0x4b7   :  { %v2067_v19 = vpop.eup %2066 }
 0x4b8   :  { %v1399_v43 = vadd.f32 1.0, %v2067_v19  ;;  %v1402_v50 = vmul.f32 -0.5, %v2067_v19  ;;  %v1405_v21 = vand.u32 2147483647, %v2067_v19 }
 0x4ba   :  { %2068 = vlog2.f32 %v1399_v43  ;;  %v1403_v15 = vadd.f32 1.0, %v1402_v50  ;;  %vm1406_vm13 = vcmp.lt.f32.partialorder %v1405_v21, 0.0004427343  ;;  %v1327_v43 = vpop.f32.mrf.mxu1  ;;  %v3384_v21 = vld [vmem:[#allocation11 + $0x40] sm:$0xff] }
 0x4bb   :  { %2070 = vpow2.f32 %v1968_v63  ;;  %v3378_v63 = vld [vmem:[#allocation11 + $0x70] sm:$0xff]  ;;  %3691 = vst [vmem:[#allocation30_spill] sm:$0xff] %v3384_v21  ;;  %1521 = vmatpush.msra.mxu0 %v3384_v21  ;;  %v3421_v21 = vld [vmem:[#allocation11 + $0x18] sm:$0xff] }
 0x4bc   :  { %v1404_v35 = vmul.f32 %v2067_v19, %v1403_v15  ;;  %v1223_v19 = vld [vmem:[#allocation2 + $0xa8] sm:$0xff]  ;;  %v3380_v15 = vld [vmem:[#allocation11 + $0x78] sm:$0xff]  ;;  %1560 = vmatpush.msra.mxu2 %v3378_v63 }
 0x4bd   :  { %v1371_v22 = vadd.f32 %v1327_v43, %v1223_v19  ;;  %1580 = vmatpush.msra.mxu3 %v3380_v15 }
 0x4c0   :  { %v2069_v32 = vpop.eup %2068 }
 0x4c1   :  { %v1401_v33 = vmul.f32 0.6931472, %v2069_v32  ;;  %v3386_v32 = vld [vmem:[#allocation11 + $0x48] sm:$0xff]  ;;  %v2071_v23 = vpop.eup %2070 }
 0x4c2   :  { %3692 = vst [vmem:[#allocation31_spill] sm:$0xff] %v3386_v32  ;;  %1541 = vmatpush.msra.mxu1 %v3386_v32  ;;  %v3409_v43 = vadd.f32 1.0, %v2071_v23  ;;  %v3419_v32 = vld [vmem:[#allocation11 + $0x10] sm:$0xff] }
 0x4c3   :  { %v1407_v50 = vsel %vm1406_vm13, %v1404_v35, %v1401_v33  ;;  %v3390_v33 = vld [vmem:[#allocation11 + $0x50] sm:$0xff]  ;;  %v3392_v35 = vld [vmem:[#allocation11 + $0x58] sm:$0xff] }
 0x4c4   :  { %v1408_v34 = vsub.f32 %v1394_v40, %v1407_v50  ;;  %v3397_v50 = vld [vmem:[#allocation11 + $0x20] sm:$0xff]  ;;  %1561 = vmatpush.msra.mxu2 %v3390_v33  ;;  %1581 = vmatpush.msra.mxu3 %v3392_v35  ;;  %vm1384_vm0 = vweird.f32 %v3409_v43 }
 0x4c5   :  { %1522 = vmatpush.msra.mxu0 %v3397_v50  ;;  %1542 = vmatpush.msra.mxu1 %v3399_v49 }
 0x4c6   :  { %v1409_v1 = vmul.f32 1.442695, %v1408_v34  ;;  %v1411_v40 = vadd.f32 %v1408_v34, %v3213_v31  ;;  %v3413_v31 = vld [vmem:[#allocation11] sm:$0xff]  ;;  %v3415_v34 = vld [vmem:[#allocation11 + $0x8] sm:$0xff]  ;;  %1562 = vmatpush.msra.mxu2 %v3403_v24  ;;  %1582 = vmatpush.msra.mxu3 %v3405_v60 }
 0x4c7   :  { %1523 = vmatpush.msra.mxu0 %v3413_v31  ;;  %1543 = vmatpush.msra.mxu1 %v3415_v34 }
 0x4c8   :  { %v3407_v19 = vmax.f32 %v1411_v40, %v1371_v22  ;;  %2072 = vpow2.f32 %v1409_v1  ;;  %1563 = vmatpush.msra.mxu2 %v3419_v32  ;;  %1583 = vmatpush.msra.mxu3 %v3421_v21 }
 0x4c9   :  { %2074 = vrcp.f32 %v3409_v43  ;;  %1726 = vmatpush.msrb.mxu0 %v3231_v38  ;;  %1746 = vmatpush.msrb.mxu1 %v3233_v39 }
 0x4ca   :  { %v1413_v23 = vsub.f32 %v1371_v22, %v3407_v19  ;;  %1766 = vmatpush.msrb.mxu2 %v3235_v41  ;;  %1786 = vmatpush.msrb.mxu3 %v3239_v45  ;;  %v1222_v45 = vld [vmem:[#allocation2 + $0xa0] sm:$0xff] }
 0x4cb   :  { %1727 = vmatpush.msrb.mxu0 %v3243_v46  ;;  %1747 = vmatpush.msrb.mxu1 %v3245_v47  ;;  %v1307_v46 = vpop.f32.mrf.mxu0 }
 0x4cc   :  { %v1414_v40 = vmul.f32 1.442695, %v1413_v23  ;;  %1767 = vmatpush.msrb.mxu2 %v3247_v48  ;;  %1787 = vmatpush.msrb.mxu3 %v3251_v53  ;;  %v1441_v23 = vld [vmem:[#allocation2 + $0xc8] sm:$0xff] }
 0x4cd   :  { %1728 = vmatpush.msrb.mxu0 %v3255_v56  ;;  %1748 = vmatpush.msrb.mxu1 %v3257_v51 }
 0x4ce   :  { %2076 = vpow2.f32 %v1414_v40  ;;  %v3437_v1 = vpop.eup %2072  ;;  %1768 = vmatpush.msrb.mxu2 %v3259_v2  ;;  %1788 = vmatpush.msrb.mxu3 %v3263_v11 }
 0x4cf   :  { %v3443_v38 = vpop.eup %2074  ;;  %v1419_v39 = vmul.f32 %v3437_v1, %v3217_v55  ;;  %1729 = vmatpush.msrb.mxu0 %v3267_v16  ;;  %1749 = vmatpush.msrb.mxu1 %v3269_v26  ;;  %v1370_v55 = vadd.f32 %v1307_v46, %v1222_v45 }
 0x4d0   :  { %1769 = vmatpush.msrb.mxu2 %v3271_v37  ;;  %1789 = vmatpush.msrb.mxu3 %v3275_v57  ;;  %v1380_v48 = vmul.f32 %v3443_v38, %v3409_v43  ;;  %vm1385_vm14 = vweird.f32 %v3443_v38 }
 0x4d1   :  { %1730 = vmatpush.msrb.mxu0 %v3279_v3  ;;  %1750 = vmatpush.msrb.mxu1 %v3281_v5  ;;  %vm3500_vm1 = vmor %vm1384_vm0, %vm1385_vm14 }
 0x4d2   :  { %1770 = vmatpush.msrb.mxu2 %v3283_v44  ;;  %1790 = vmatpush.msrb.mxu3 %v3287_v6  ;;  %v1381_v53 = vsub.f32 1.0, %v1380_v48  ;;  %v1390_v44 = vand.u32 2147483648, %v3409_v43  ;;  %v3693_v6 = vld [vmem:[#allocation44_spill] sm:$0xff] }
 0x4d3   :  { %1731 = vmatpush.msrb.mxu0 %v3291_v61  ;;  %1751 = vmatpush.msrb.mxu1 %v3293_v0  ;;  %v3694_v61 = vld [vmem:[#allocation46_spill] sm:$0xff]  ;;  %v3695_v0 = vld [vmem:[#allocation27_spill] sm:$0xff] }
 0x4d4   :  { %v2077_v41 = vpop.eup %2076  ;;  %1771 = vmatpush.msrb.mxu2 %v3295_v36  ;;  %1791 = vmatpush.msrb.mxu3 %v3299_v42  ;;  %v1382_v51 = vmul.f32 %v3443_v38, %v1381_v53  ;;  %v1416_v36 = vmul.f32 %v3437_v1, %v3695_v0 }
 0x4d5   :  { %v3453_v47 = vadd.f32 %v2077_v41, %v1419_v39  ;;  %1732 = vmatpush.msrb.mxu0 %v3301_v62  ;;  %1752 = vmatpush.msrb.mxu1 %v3303_v4  ;;  %v1388_v62 = vand.u32 2147483647, %v3409_v43 }
 0x4d6   :  { %1772 = vmatpush.msrb.mxu2 %v3307_v7  ;;  %1792 = vmatpush.msrb.mxu3 %v3311_v52  ;;  %v1383_v26 = vadd.f32 %v3443_v38, %v1382_v51  ;;  %v3698_v7 = vld [vmem:[#allocation47_spill] sm:$0xff] }
 0x4d7   :  { %2078 = vrcp.f32 %v3453_v47  ;;  %1733 = vmatpush.msrb.mxu0 %v3313_v54  ;;  %1753 = vmatpush.msrb.mxu1 %v3315_v18  ;;  %v1432_v37 = vand.u32 2147483648, %v3453_v47  ;;  %v1430_v5 = vand.u32 2147483647, %v3453_v47  ;;  %vm1426_vm2 = vweird.f32 %v3453_v47  ;;  %v3699_v54 = vld [vmem:[#allocation28_spill] sm:$0xff]  ;;  %v3700_v18 = vld [vmem:[#allocation29_spill] sm:$0xff] }
 0x4d8   :  { %2080 = vtanh.f32 %v1370_v55  ;;  %1773 = vmatpush.msrb.mxu2 %v3319_v58  ;;  %1793 = vmatpush.msrb.mxu3 %v3321_v59  ;;  %v1387_v58 = vsel %vm3500_vm1, %v3443_v38, %v1383_v26  ;;  %vm1389_vm5 = vcmp.eq.f32.partialorder %v1388_v62, 8.507059e+37  ;;  %v1440_v26 = vld [vmem:[#allocation2 + $0xc0] sm:$0xff] }
 0x4d9   :  { %1734 = vmatpush.msrb.mxu0 %v3323_v8  ;;  %1754 = vmatpush.msrb.mxu1 %v3327_v9  ;;  %v1433_v52 = vor.u32 1.1754944e-38, %v1432_v37  ;;  %vm1431_vm4 = vcmp.eq.f32.partialorder %v1430_v5, 8.507059e+37  ;;  %v1391_v9 = vor.u32 1.1754944e-38, %v1390_v44 }
 0x4da   :  { %1774 = vmatpush.msrb.mxu2 %v3329_v10  ;;  %1794 = vmatpush.msrb.mxu3 %v3331_v12  ;;  %v3701_v12 = vld [vmem:[#allocation30_spill] sm:$0xff] }
 0x4db   :  { %1735 = vmatpush.msrb.mxu0 %v3335_v13  ;;  %1755 = vmatpush.msrb.mxu1 %v3337_v14  ;;  %v3702_v13 = vld [vmem:[#allocation31_spill] sm:$0xff] }
 0x4dc   :  { %1775 = vmatpush.msrb.mxu2 %v3341_v17  ;;  %1795 = vmatpush.msrb.mxu3 %v3343_v20  ;;  %v1392_v17 = vsel %vm1389_vm5, %v1391_v9, %v1387_v58 }
 0x4dd   :  { %v2079_v56 = vpop.eup %2078  ;;  %1736 = vmatpush.msrb.mxu0 %v3347_v25  ;;  %1756 = vmatpush.msrb.mxu1 %v3349_v27  ;;  %v1442_v25 = vld [vmem:[#allocation2 + $0xd0] sm:$0xff] }
 0x4de   :  { %v1422_v2 = vmul.f32 %v2079_v56, %v3453_v47  ;;  %v2081_v16 = vpop.eup %2080  ;;  %vm1427_vm15 = vweird.f32 %v2079_v56  ;;  %1776 = vmatpush.msrb.mxu2 %v3353_v28  ;;  %1796 = vmatpush.msrb.mxu3 %v3355_v30 }
 0x4df   :  { %v1417_v57 = vmul.f32 %v2081_v16, %v2077_v41  ;;  %1737 = vmatpush.msrb.mxu0 %v3693_v6  ;;  %1757 = vmatpush.msrb.mxu1 %v3694_v61  ;;  %vm1428_vm3 = vmor %vm1426_vm2, %vm1427_vm15 }
 0x4e0   :  { %v1423_v11 = vsub.f32 1.0, %v1422_v2  ;;  %1777 = vmatpush.msrb.mxu2 %v3365_v29  ;;  %1797 = vmatpush.msrb.mxu3 %v3698_v7 }
 0x4e1   :  { %1738 = vmatpush.msrb.mxu0 %v3699_v54  ;;  %1758 = vmatpush.msrb.mxu1 %v3700_v18  ;;  %v3514_v59 = vadd.f32 %v1417_v57, %v1416_v36 }
 0x4e2   :  { %v1424_v3 = vmul.f32 %v2079_v56, %v1423_v11  ;;  %1778 = vmatpush.msrb.mxu2 %v3378_v63  ;;  %1798 = vmatpush.msrb.mxu3 %v3380_v15 }
 0x4e3   :  { %1739 = vmatpush.msrb.mxu0 %v3701_v12  ;;  %1759 = vmatpush.msrb.mxu1 %v3702_v13 }
 0x4e4   :  { %v1425_v4 = vadd.f32 %v2079_v56, %v1424_v3  ;;  %1779 = vmatpush.msrb.mxu2 %v3390_v33  ;;  %1799 = vmatpush.msrb.mxu3 %v3392_v35 }
 0x4e5   :  { %1740 = vmatpush.msrb.mxu0 %v3397_v50  ;;  %1760 = vmatpush.msrb.mxu1 %v3399_v49  ;;  %v1443_v49 = vld [vmem:[#allocation2 + $0xd8] sm:$0xff] }
 0x4e6   :  { %v1429_v8 = vsel %vm1428_vm3, %v2079_v56, %v1425_v4  ;;  %1780 = vmatpush.msrb.mxu2 %v3403_v24  ;;  %1800 = vmatpush.msrb.mxu3 %v3405_v60 }
 0x4e7   :  { %v1434_v10 = vsel %vm1431_vm4, %v1433_v52, %v1429_v8  ;;  %1741 = vmatpush.msrb.mxu0 %v3413_v31  ;;  %1761 = vmatpush.msrb.mxu1 %v3415_v34 }
 0x4e8   :  { %v1435_v14 = vmul.f32 %v1434_v10, %v3514_v59  ;;  %1781 = vmatpush.msrb.mxu2 %v3419_v32  ;;  %1801 = vmatpush.msrb.mxu3 %v3421_v21 }
 0x4ea   :  { %v1436_v20 = vmul.f32 %v1435_v14, %v1392_v17 }
 0x4ec   :  { %1438 = vst [vmem:[#allocation13 + $0x28] sm:$0xff] %v1436_v20  ;;  %1524 = vmatmul.f32.vlgmr.msra.gmra.mxu0 %v1436_v20  ;;  %1544 = vmatmul.f32.vlgmr.msra.gmra.mxu1 %v1436_v20 }
 0x4ed   :  { %1564 = vmatmul.f32.vlgmr.msra.gmra.mxu2 %v1436_v20  ;;  %1584 = vmatmul.f32.vlgmr.msra.gmra.mxu3 %v1436_v20 }
 0x569   :  { %v1545_v40 = vpop.f32.mrf.mxu1  ;;  %v1525_v37 = vpop.f32.mrf.mxu0 }
 0x56a   :  { %v1589_v41 = vadd.f32 %v1545_v40, %v1441_v23  ;;  %v1659_v23 = vld [vmem:[#allocation2 + $0xe8] sm:$0xff] }
 0x570   :  { %v1565_v27 = vpop.f32.mrf.mxu2  ;;  %v1585_v60 = vpop.f32.mrf.mxu3 }
 0x571   :  { %v1590_v28 = vadd.f32 %v1565_v27, %v1442_v25  ;;  %v1591_v63 = vadd.f32 %v1585_v60, %v1443_v49  ;;  %v1661_v49 = vld [vmem:[#allocation2 + $0xf8] sm:$0xff] }
 0x573   :  { %v1613_v30 = vand.u32 2147483647, %v1590_v28  ;;  %v1969_v35 = vmul.f32 -1.442695, %v1591_v63  ;;  %v1612_v34 = vmin.f32 %v1590_v28, 0.0 }
 0x575   :  { %v1614_v22 = vsub.f32 0.0, %v1613_v30 }
 0x577   :  { %v1615_v29 = vmul.f32 1.442695, %v1614_v22 }
 0x579   :  { %2082 = vpow2.f32 %v1615_v29 }
 0x57f   :  { %v2083_v24 = vpop.eup %2082 }
 0x580   :  { %v1617_v15 = vadd.f32 1.0, %v2083_v24  ;;  %v1620_v33 = vmul.f32 -0.5, %v2083_v24  ;;  %v1623_v43 = vand.u32 2147483647, %v2083_v24 }
 0x582   :  { %2084 = vlog2.f32 %v1617_v15  ;;  %v1621_v50 = vadd.f32 1.0, %v1620_v33  ;;  %vm1624_vm6 = vcmp.lt.f32.partialorder %v1623_v43, 0.0004427343 }
 0x583   :  { %2086 = vpow2.f32 %v1969_v35 }
 0x584   :  { %v1622_v31 = vmul.f32 %v2083_v24, %v1621_v50 }
 0x588   :  { %v2085_v32 = vpop.eup %2084 }
 0x589   :  { %v1619_v21 = vmul.f32 0.6931472, %v2085_v32  ;;  %v2087_v39 = vpop.eup %2086 }
 0x58a   :  { %v1596_v55 = vadd.f32 1.0, %v2087_v39  ;;  %v1658_v39 = vld [vmem:[#allocation2 + $0xe0] sm:$0xff] }
 0x58b   :  { %v1625_v1 = vsel %vm1624_vm6, %v1622_v31, %v1619_v21 }
 0x58c   :  { %v1626_v38 = vsub.f32 %v1612_v34, %v1625_v1  ;;  %vm1602_vm9 = vweird.f32 %v1596_v55  ;;  %v1608_v52 = vand.u32 2147483648, %v1596_v55  ;;  %v1606_v18 = vand.u32 2147483647, %v1596_v55 }
 0x58e   :  { %v1627_v45 = vmul.f32 1.442695, %v1626_v38  ;;  %v1629_v46 = vadd.f32 %v1626_v38, %v3407_v19  ;;  %v1588_v19 = vadd.f32 %v1525_v37, %v1440_v26  ;;  %v1609_v13 = vor.u32 1.1754944e-38, %v1608_v52 }
 0x58f   :  { %vm1607_vm14 = vcmp.eq.f32.partialorder %v1606_v18, 8.507059e+37 }
 0x590   :  { %v3532_v48 = vmax.f32 %v1629_v46, %v1589_v41  ;;  %2088 = vpow2.f32 %v1627_v45 }
 0x591   :  { %2090 = vrcp.f32 %v1596_v55 }
 0x592   :  { %v1631_v53 = vsub.f32 %v1589_v41, %v3532_v48 }
 0x594   :  { %v1632_v56 = vmul.f32 1.442695, %v1631_v53 }
 0x596   :  { %2092 = vpow2.f32 %v1632_v56  ;;  %v2089_v51 = vpop.eup %2088 }
 0x597   :  { %v2091_v2 = vpop.eup %2090  ;;  %v1637_v11 = vmul.f32 %v2089_v51, %v3453_v47  ;;  %v1634_v54 = vmul.f32 %v2089_v51, %v3514_v59  ;;  %v1660_v59 = vld [vmem:[#allocation2 + $0xf0] sm:$0xff] }
 0x598   :  { %v1598_v3 = vmul.f32 %v2091_v2, %v1596_v55  ;;  %vm1603_vm7 = vweird.f32 %v2091_v2 }
 0x599   :  { %vm1604_vm10 = vmor %vm1602_vm9, %vm1603_vm7 }
 0x59a   :  { %v1599_v5 = vsub.f32 1.0, %v1598_v3 }
 0x59c   :  { %v2093_v16 = vpop.eup %2092  ;;  %v1600_v6 = vmul.f32 %v2091_v2, %v1599_v5 }
 0x59d   :  { %v3536_v57 = vadd.f32 %v2093_v16, %v1637_v11 }
 0x59e   :  { %v1601_v42 = vadd.f32 %v2091_v2, %v1600_v6 }
 0x59f   :  { %2094 = vrcp.f32 %v3536_v57  ;;  %v1650_v47 = vand.u32 2147483648, %v3536_v57  ;;  %v1648_v7 = vand.u32 2147483647, %v3536_v57  ;;  %vm1644_vm11 = vweird.f32 %v3536_v57 }
 0x5a0   :  { %2096 = vtanh.f32 %v1588_v19  ;;  %v1605_v9 = vsel %vm1604_vm10, %v2091_v2, %v1601_v42 }
 0x5a1   :  { %v1651_v8 = vor.u32 1.1754944e-38, %v1650_v47  ;;  %vm1649_vm13 = vcmp.eq.f32.partialorder %v1648_v7, 8.507059e+37  ;;  %v1610_v20 = vsel %vm1607_vm14, %v1609_v13, %v1605_v9 }
 0x5a5   :  { %v2095_v44 = vpop.eup %2094 }
 0x5a6   :  { %v1640_v61 = vmul.f32 %v2095_v44, %v3536_v57  ;;  %v2097_v36 = vpop.eup %2096  ;;  %vm1645_vm8 = vweird.f32 %v2095_v44 }
 0x5a7   :  { %v1635_v62 = vmul.f32 %v2097_v36, %v2093_v16  ;;  %vm1646_vm12 = vmor %vm1644_vm11, %vm1645_vm8 }
 0x5a8   :  { %v1641_v0 = vsub.f32 1.0, %v1640_v61 }
 0x5a9   :  { %v3544_v10 = vadd.f32 %v1635_v62, %v1634_v54 }
 0x5aa   :  { %v1642_v4 = vmul.f32 %v2095_v44, %v1641_v0 }
 0x5ac   :  { %v1643_v58 = vadd.f32 %v2095_v44, %v1642_v4 }
 0x5ae   :  { %v1647_v12 = vsel %vm1646_vm12, %v2095_v44, %v1643_v58 }
 0x5af   :  { %v1652_v14 = vsel %vm1649_vm13, %v1651_v8, %v1647_v12 }
 0x5b0   :  { %v1653_v17 = vmul.f32 %v1652_v14, %v3544_v10 }
 0x5b2   :  { %v1654_v25 = vmul.f32 %v1653_v17, %v1610_v20 }
 0x5b4   :  { %1656 = vst [vmem:[#allocation13 + $0x30] sm:$0xff] %v1654_v25  ;;  %1742 = vmatmul.f32.vlgmr.msrb.gmra.mxu0 %v1654_v25  ;;  %1762 = vmatmul.f32.vlgmr.msrb.gmra.mxu1 %v1654_v25 }
 0x5b5   :  { %1782 = vmatmul.f32.vlgmr.msrb.gmra.mxu2 %v1654_v25  ;;  %1802 = vmatmul.f32.vlgmr.msrb.gmra.mxu3 %v1654_v25 }
 0x631   :  { %v1763_v40 = vpop.f32.mrf.mxu1  ;;  %v1743_v41 = vpop.f32.mrf.mxu0 }
 0x632   :  { %v1807_v46 = vadd.f32 %v1763_v40, %v1659_v23  ;;  %v1806_v56 = vadd.f32 %v1743_v41, %v1658_v39 }
 0x638   :  { %v1783_v27 = vpop.f32.mrf.mxu2  ;;  %v1803_v60 = vpop.f32.mrf.mxu3 }
 0x639   :  { %v1808_v28 = vadd.f32 %v1783_v27, %v1660_v59  ;;  %v1809_v15 = vadd.f32 %v1803_v60, %v1661_v49 }
 0x63b   :  { %v1831_v30 = vand.u32 2147483647, %v1808_v28  ;;  %v1970_v35 = vmul.f32 -1.442695, %v1809_v15  ;;  %v1830_v34 = vmin.f32 %v1808_v28, 0.0 }
 0x63d   :  { %v1832_v22 = vsub.f32 0.0, %v1831_v30 }
 0x63f   :  { %v1833_v29 = vmul.f32 1.442695, %v1832_v22 }
 0x641   :  { %2098 = vpow2.f32 %v1833_v29 }
 0x647   :  { %v2099_v24 = vpop.eup %2098 }
 0x648   :  { %v1835_v63 = vadd.f32 1.0, %v2099_v24  ;;  %v1838_v33 = vmul.f32 -0.5, %v2099_v24  ;;  %v1841_v43 = vand.u32 2147483647, %v2099_v24 }
 0x64a   :  { %2100 = vlog2.f32 %v1835_v63  ;;  %v1839_v50 = vadd.f32 1.0, %v1838_v33  ;;  %vm1842_vm15 = vcmp.lt.f32.partialorder %v1841_v43, 0.0004427343 }
 0x64b   :  { %2102 = vpow2.f32 %v1970_v35 }
 0x64c   :  { %v1840_v31 = vmul.f32 %v2099_v24, %v1839_v50 }
 0x650   :  { %v2101_v32 = vpop.eup %2100 }
 0x651   :  { %v1837_v21 = vmul.f32 0.6931472, %v2101_v32  ;;  %v2103_v45 = vpop.eup %2102 }
 0x652   :  { %v3548_v2 = vadd.f32 1.0, %v2103_v45 }
 0x653   :  { %v1843_v1 = vsel %vm1842_vm15, %v1840_v31, %v1837_v21 }
 0x654   :  { %v1844_v38 = vsub.f32 %v1830_v34, %v1843_v1  ;;  %vm1820_vm2 = vweird.f32 %v3548_v2  ;;  %v1826_v18 = vand.u32 2147483648, %v3548_v2  ;;  %v1824_v8 = vand.u32 2147483647, %v3548_v2 }
 0x656   :  { %v1845_v55 = vmul.f32 1.442695, %v1844_v38  ;;  %v1847_v53 = vadd.f32 %v1844_v38, %v3532_v48  ;;  %v1827_v14 = vor.u32 1.1754944e-38, %v1826_v18  ;;  %vm1825_vm7 = vcmp.eq.f32.partialorder %v1824_v8, 8.507059e+37 }
 0x658   :  { %v1848_v51 = vmax.f32 %v1847_v53, %v1807_v46  ;;  %2104 = vpow2.f32 %v1845_v55 }
 0x659   :  { %2106 = vtanh.f32 %v1806_v56 }
 0x65a   :  { %v1849_v11 = vsub.f32 %v1807_v46, %v1848_v51  ;;  %1878 = vst [vmem:[#allocation19] sm:$0xff] %v1848_v51  ;;  %2108 = vrcp.f32 %v3548_v2 }
 0x65c   :  { %v1850_v16 = vmul.f32 1.442695, %v1849_v11 }
 0x65e   :  { %2110 = vpow2.f32 %v1850_v16  ;;  %v2105_v26 = vpop.eup %2104 }
 0x65f   :  { %v2107_v37 = vpop.eup %2106  ;;  %v1855_v3 = vmul.f32 %v2105_v26, %v3536_v57  ;;  %v1852_v5 = vmul.f32 %v2105_v26, %v3544_v10 }
 0x660   :  { %v2109_v48 = vpop.eup %2108 }
 0x661   :  { %v1816_v61 = vmul.f32 %v2109_v48, %v3548_v2  ;;  %vm1821_vm0 = vweird.f32 %v2109_v48 }
 0x662   :  { %vm3562_vm3 = vmor %vm1820_vm2, %vm1821_vm0 }
 0x663   :  { %v1817_v0 = vsub.f32 1.0, %v1816_v61 }
 0x664   :  { %v2111_v19 = vpop.eup %2110 }
 0x665   :  { %v1856_v44 = vadd.f32 %v2111_v19, %v1855_v3  ;;  %v1853_v6 = vmul.f32 %v2111_v19, %v2107_v37  ;;  %v1818_v42 = vmul.f32 %v2109_v48, %v1817_v0 }
 0x667   :  { %2112 = vrcp.f32 %v1856_v44  ;;  %1877 = vst [vmem:[#allocation17] sm:$0xff] %v1856_v44  ;;  %v1854_v57 = vadd.f32 %v1853_v6, %v1852_v5  ;;  %v1868_v4 = vand.u32 2147483648, %v1856_v44  ;;  %v1819_v7 = vadd.f32 %v2109_v48, %v1818_v42 }
 0x668   :  { %1924 = dma.vmem_to_hbm [thread:$0]  %s1920_s5, 128, %s1922_s23, [#allocation18]   ;;  %v1866_v54 = vand.u32 2147483647, %v1856_v44  ;;  %vm1862_vm4 = vweird.f32 %v1856_v44 }
 0x669   :  { %1876 = vst [vmem:[#allocation16] sm:$0xff] %v1854_v57  ;;  %1935 = dma.vmem_to_hbm [thread:$0]  %s1931_s25, 128, %s1933_s27, [#allocation18]   ;;  %v1869_v10 = vor.u32 1.1754944e-38, %v1868_v4  ;;  %v1823_v12 = vsel %vm3562_vm3, %v2109_v48, %v1819_v7 }
 0x66a   :  { %vm1867_vm6 = vcmp.eq.f32.partialorder %v1866_v54, 8.507059e+37  ;;  %v1828_v25 = vsel %vm1825_vm7, %v1827_v14, %v1823_v12 }
 0x66d   :  { %v2113_v36 = vpop.eup %2112 }
 0x66e   :  { %v1858_v47 = vmul.f32 %v2113_v36, %v1856_v44  ;;  %vm1863_vm1 = vweird.f32 %v2113_v36 }
 0x66f   :  { %vm1864_vm5 = vmor %vm1862_vm4, %vm1863_vm1 }
 0x670   :  { %v1859_v62 = vsub.f32 1.0, %v1858_v47 }
 0x672   :  { %v1860_v52 = vmul.f32 %v2113_v36, %v1859_v62 }
 0x674   :  { %v1861_v9 = vadd.f32 %v2113_v36, %v1860_v52 }
 0x676   :  { %v1865_v13 = vsel %vm1864_vm5, %v2113_v36, %v1861_v9 }
 0x677   :  { %v1870_v17 = vsel %vm1867_vm6, %v1869_v10, %v1865_v13 }
 0x678   :  { %v1871_v20 = vmul.f32 %v1870_v17, %v1854_v57 }
 0x67a   :  { %v1872_v59 = vmul.f32 %v1871_v20, %v1828_v25 }
 0x67c   :  { %1874 = vst [vmem:[#allocation13 + $0x38] sm:$0xff] %v1872_v59 }
 0x67d   :  { %1875 = vst [vmem:[#allocation14] sm:$0xff] %v1872_v59  ;;  %1891 = dma.vmem_to_hbm [thread:$0]  %s1884_s10, 1024, %s1886_s30, [#allocation4], %s2405_s18, %s2405_s18, %s2406_s7  }
 0x67e   :  { %1902 = dma.vmem_to_hbm [thread:$0]  %s1898_s11, 128, %s1900_s14, [#allocation15]  }
 0x67f   :  { %1913 = dma.vmem_to_hbm [thread:$0]  %s1909_s6, 128, %s1911_s17, [#allocation15]  }
 0x680   :  { %2386 = dma.done.wait [#allocation4], 1024  }
 0x681   :  { %2387 = vsyncadd [#allocation4], 4294966272 }
 0x682   :  { %2388 = dma.done.wait [#allocation15], 256  }
 0x683   :  { %2389 = vsyncadd [#allocation15], 4294967040 }
 0x684   :  { %2390 = dma.done.wait [#allocation18], 256  }
 0x685   :  { %2391 = vsyncadd [#allocation18], 4294967040 }
 0x686   :  { %1956 = vsyncpa [#allocation3], 1 }
 0x687   :  { %1957 = vsyncpa [#allocation6], 1 }
 0x688   :  { %1958 = vsyncpa [#allocation9], 1 }
 0x689   :  { %1959 = vsyncpa [#allocation12], 1 }
 0x68a   :  { %1960 = vsyncpa [#allocation4], 1 }
 0x68b   :  { %1961 = vsyncpa [#allocation15], 1 }
 0x68c   :  { %1962 = vsyncpa [#allocation18], 1 }

</bundles_post_ra>
